<compile_context>
chip_gen: v6e
topology: v6e:2x2x1
jax: 0.10.0
libtpu: 0.0.40
codegen_flags: <defaults>
</compile_context>

<pallas_src>
import jax
import jax.numpy as jnp
from jax import lax
from jax.experimental import pallas as pl
from jax.experimental.pallas import tpu as pltpu

EPS = 1e-5


def _pick_tile(n, cap):
    t = min(n, cap)
    while t > 1 and n % t:
        t //= 2
    return t


# ----------------------------------------------------------------------------
# Pallas kernels
# ----------------------------------------------------------------------------
def _lin_ct0_kernel(x_ref, wl_ref, b_ref, w0_ref, o_ref):
    # Linear(nz,64) + bias, then the 1x1-input ConvTranspose2d(64, C0, 4, 1, 0)
    # which is just another matmul against [64, 4*4*C0]. Two chained MXU dots.
    h = jnp.dot(x_ref[...], wl_ref[...], preferred_element_type=jnp.float32)
    h = h + b_ref[...]
    o_ref[...] = jnp.dot(h.astype(jnp.bfloat16), w0_ref[...],
                         preferred_element_type=jnp.float32)


def _phase_mm_stats_kernel(a_ref, w_ref, y_ref, s_ref, q_ref):
    # One phase of the deconv as an MXU matmul (bf16 in, f32 acc), plus
    # per-block BN partial sums (sum, sum of squares) so no extra HBM pass
    # over y is needed to get mean/var.
    acc = jnp.dot(a_ref[0], w_ref[0], preferred_element_type=jnp.float32)
    y_ref[0] = acc
    s_ref[0, 0] = jnp.sum(acc, axis=0, keepdims=True)
    q_ref[0, 0] = jnp.sum(acc * acc, axis=0, keepdims=True)


def _scale_shift_lrelu_kernel(x_ref, sc_ref, sh_ref, o_ref):
    # Fused BN-apply + LeakyReLU(0.2); operates on a lane-dense [rows, 128] view.
    y = x_ref[...] * sc_ref[...] + sh_ref[...]
    o_ref[...] = jnp.where(y > 0, y, 0.2 * y).astype(o_ref.dtype)


def _matvec_sigmoid_kernel(w_ref, a_ref, o_ref):
    # Last layer (Cout=1), computed transposed: [1,K] @ [K,tm] -> lane-dense
    # output along the spatial axis. Sigmoid fused (exact division kept so the
    # result matches the jax.nn.sigmoid reference tightly).
    y = jnp.dot(w_ref[0], a_ref[0], preferred_element_type=jnp.float32)
    o_ref[0] = 1.0 / (1.0 + jnp.exp(-y))


# ----------------------------------------------------------------------------
# Pallas wrappers
# ----------------------------------------------------------------------------
def linear_unflatten_ct0(x16, wl16, b, w016):
    B = x16.shape[0]
    N0 = w016.shape[1]
    return pl.pallas_call(
        _lin_ct0_kernel,
        out_shape=jax.ShapeDtypeStruct((B, N0), jnp.float32),
        grid_spec=pltpu.PrefetchScalarGridSpec(
            num_scalar_prefetch=0,
            grid=(1,),
            in_specs=[
                pl.BlockSpec(x16.shape, lambda i: (0, 0)),
                pl.BlockSpec(wl16.shape, lambda i: (0, 0)),
                pl.BlockSpec(b.shape, lambda i: (0, 0)),
                pl.BlockSpec(w016.shape, lambda i: (0, 0)),
            ],
            out_specs=pl.BlockSpec((B, N0), lambda i: (0, 0)),
        ),
        compiler_params=pltpu.CompilerParams(
            dimension_semantics=("arbitrary",)),
    )(x16, wl16, b, w016)


def phase_deconv_matmul(A, Wp):
    """A: [4, M, K] bf16, Wp: [4, K, C] bf16 ->
       Y [4, M, C] f32, per-block partial sums [4, nmb, 1, C] x2 (f32)."""
    P, M, K = A.shape
    C = Wp.shape[-1]
    tm = _pick_tile(M, 512)
    nmb = M // tm
    return pl.pallas_call(
        _phase_mm_stats_kernel,
        out_shape=(
            jax.ShapeDtypeStruct((P, M, C), jnp.float32),
            jax.ShapeDtypeStruct((P, nmb, 1, C), jnp.float32),
            jax.ShapeDtypeStruct((P, nmb, 1, C), jnp.float32),
        ),
        grid_spec=pltpu.PrefetchScalarGridSpec(
            num_scalar_prefetch=0,
            grid=(P, nmb),
            in_specs=[
                pl.BlockSpec((1, tm, K), lambda p, i: (p, i, 0)),
                pl.BlockSpec((1, K, C), lambda p, i: (p, 0, 0)),
            ],
            out_specs=[
                pl.BlockSpec((1, tm, C), lambda p, i: (p, i, 0)),
                pl.BlockSpec((1, 1, 1, C), lambda p, i: (p, i, 0, 0)),
                pl.BlockSpec((1, 1, 1, C), lambda p, i: (p, i, 0, 0)),
            ],
        ),
        compiler_params=pltpu.CompilerParams(
            dimension_semantics=("parallel", "parallel")),
    )(A, Wp)


def bn_lrelu_apply(y_flat, scale, shift):
    """y_flat: [Mtot, C] f32 -> bf16 [Mtot, C]; applied through a lane-dense
       [rows, 128] view (for C<128 dividing 128) so vector stores are unmasked."""
    Mtot, C = y_flat.shape
    scale = scale.astype(jnp.float32)
    shift = shift.astype(jnp.float32)
    if C % 128 == 0:
        width, x = C, y_flat
        sc, sh = scale.reshape(1, C), shift.reshape(1, C)
    elif 128 % C == 0 and (Mtot * C) % 128 == 0:
        width = 128
        x = y_flat.reshape((Mtot * C) // 128, 128)          # contiguous view
        rep = 128 // C
        sc = jnp.tile(scale, rep).reshape(1, 128)
        sh = jnp.tile(shift, rep).reshape(1, 128)
    else:  # fallback (not hit for this architecture)
        width, x = C, y_flat
        sc, sh = scale.reshape(1, C), shift.reshape(1, C)
    R = x.shape[0]
    tr = _pick_tile(R, 512)
    out = pl.pallas_call(
        _scale_shift_lrelu_kernel,
        out_shape=jax.ShapeDtypeStruct((R, width), jnp.bfloat16),
        grid_spec=pltpu.PrefetchScalarGridSpec(
            num_scalar_prefetch=0,
            grid=(R // tr,),
            in_specs=[
                pl.BlockSpec((tr, width), lambda i: (i, 0)),
                pl.BlockSpec((1, width), lambda i: (0, 0)),
                pl.BlockSpec((1, width), lambda i: (0, 0)),
            ],
            out_specs=pl.BlockSpec((tr, width), lambda i: (i, 0)),
        ),
        compiler_params=pltpu.CompilerParams(
            dimension_semantics=("parallel",)),
    )(x, sc, sh)
    return out.reshape(Mtot, C)


def last_layer_sigmoid(Wt, At):
    """Wt: [4, 1, K] bf16, At: [4, K, M] bf16 -> [4, 1, M] f32 (lane-dense)."""
    P, _, K = Wt.shape
    M = At.shape[-1]
    tm = _pick_tile(M, 1024)
    return pl.pallas_call(
        _matvec_sigmoid_kernel,
        out_shape=jax.ShapeDtypeStruct((P, 1, M), jnp.float32),
        grid_spec=pltpu.PrefetchScalarGridSpec(
            num_scalar_prefetch=0,
            grid=(P, M // tm),
            in_specs=[
                pl.BlockSpec((1, 1, K), lambda p, j: (p, 0, 0)),
                pl.BlockSpec((1, K, tm), lambda p, j: (p, 0, j)),
            ],
            out_specs=pl.BlockSpec((1, 1, tm), lambda p, j: (p, 0, j)),
        ),
        compiler_params=pltpu.CompilerParams(
            dimension_semantics=("parallel", "parallel")),
    )(Wt, At)


# ----------------------------------------------------------------------------
# Glue: phase-decomposed ConvTranspose2d (stride=2, k=4, pad=1)
# ----------------------------------------------------------------------------
# For output (2m+py, 2n+px) the contributing taps are the 2x2 window of the
# padded input starting at (m+py, n+px), multiplied by w[..., 3-py-2dy, 3-px-2dx].
# TODO(synk): im2col slices are still staged through HBM by XLA; they could be
# gathered in-kernel via manual DMA (pl.ANY + make_async_copy) to remove that pass.
def phase_im2col(h):
    B, H, W, C = h.shape
    hp = jnp.pad(h, ((0, 0), (1, 1), (1, 1), (0, 0)))
    cols = []
    for py in (0, 1):
        for px in (0, 1):
            taps = [hp[:, py + dy:py + dy + H, px + dx:px + dx + W, :]
                    for dy in (0, 1) for dx in (0, 1)]
            cols.append(jnp.concatenate(taps, axis=-1).reshape(B * H * W, 4 * C))
    return jnp.stack(cols, axis=0)                        # [4, B*H*W, 4*C]


def phase_im2col_T(h):
    B, H, W, C = h.shape
    hp = jnp.pad(h, ((0, 0), (1, 1), (1, 1), (0, 0)))
    cols = []
    for py in (0, 1):
        for px in (0, 1):
            taps = [hp[:, py + dy:py + dy + H, px + dx:px + dx + W, :]
                    for dy in (0, 1) for dx in (0, 1)]
            A = jnp.concatenate(taps, axis=-1).reshape(B * H * W, 4 * C)
            cols.append(A.T)
    return jnp.stack(cols, axis=0)                        # [4, 4*C, B*H*W]


def phase_weights(w):
    """w: [Cin, Cout, 4, 4] (PyTorch ConvTranspose2d) -> [4, 4*Cin, Cout]."""
    Cin, Cout = w.shape[0], w.shape[1]
    phases = []
    for py in (0, 1):
        for px in (0, 1):
            taps = [w[:, :, 3 - py - 2 * dy, 3 - px - 2 * dx]
                    for dy in (0, 1) for dx in (0, 1)]     # each [Cin, Cout]
            phases.append(jnp.stack(taps, axis=0).reshape(4 * Cin, Cout))
    return jnp.stack(phases, axis=0)


def interleave_phases(Y, B, H, W, C):
    """Y: [4, B*H*W, C] (phase p = 2*py+px) -> NHWC [B, 2H, 2W, C]."""
    Y = Y.reshape(2, 2, B, H, W, C).transpose(2, 3, 0, 4, 1, 5)
    return Y.reshape(B, 2 * H, 2 * W, C)


def interleave_phases_last(O, B, H, W):
    """O: [4, 1, B*H*W] -> NCHW [B, 1, 2H, 2W]."""
    O = O.reshape(2, 2, B, H, W).transpose(2, 3, 0, 4, 1)
    return O.reshape(B, 1, 2 * H, 2 * W)


# ----------------------------------------------------------------------------
# Parameter preprocessing (cheap; constant-shaped weight shuffles)
# ----------------------------------------------------------------------------
def preprocess_params(p):
    pp = {}
    pp["lin_wT"] = p["lin_w"].T.astype(jnp.bfloat16)                   # [nz, 64]
    pp["lin_b"] = p["lin_b"].reshape(1, -1).astype(jnp.float32)
    w0 = p["ct0_w"]                                                    # [64, C0, 4, 4]
    C0 = w0.shape[1]
    pp["ct0_wmat"] = w0.transpose(0, 2, 3, 1).reshape(64, 16 * C0).astype(jnp.bfloat16)
    for li in range(1, 5):
        pp[f"ct{li}_wp"] = phase_weights(p[f"ct{li}_w"]).astype(jnp.bfloat16)
    pp["ct4_wpT"] = pp["ct4_wp"].transpose(0, 2, 1)                    # [4, 1, 4*Cin]
    return pp


# ----------------------------------------------------------------------------
# Full decoder forward (Pallas path)
# ----------------------------------------------------------------------------
def decoder_forward_pallas(x, params):
    pp = preprocess_params(params)
    B = x.shape[0]
    C0 = params["ct0_w"].shape[1]

    # Linear + UnFlatten + ConvTranspose2d(64, C0, 4, 1, 0)  (one fused kernel)
    y0 = linear_unflatten_ct0(x.astype(jnp.bfloat16), pp["lin_wT"],
                              pp["lin_b"], pp["ct0_wmat"])             # [B, 16*C0] f32
    y0f = y0.reshape(B * 16, C0)                                       # NHWC rows
    # BN0 stats: tiny ([B*16, C0]) -> plain XLA reduction is cheapest here.
    mean0 = jnp.mean(y0f, axis=0)
    var0 = jnp.mean(y0f * y0f, axis=0) - mean0 * mean0
    scale0 = params["bn0_g"] / jnp.sqrt(var0 + EPS)
    shift0 = params["bn0_b"] - mean0 * scale0
    h = bn_lrelu_apply(y0f, scale0, shift0).reshape(B, 4, 4, C0)       # bf16 NHWC

    # ConvTranspose2d layers 1..3 (stride 2): phase-decomposed matmul + BN + LReLU
    for li in (1, 2, 3):
        Wp = pp[f"ct{li}_wp"]                                          # [4, 4*Cin, Cout]
        Bc, H, W, Cin = h.shape
        Cout = Wp.shape[-1]
        A = phase_im2col(h)                                            # [4, M, 4*Cin] bf16
        Y, psum, psq = phase_deconv_matmul(A, Wp)                      # f32
        Mtot = 4 * Bc * H * W
        mean = jnp.sum(psum, axis=(0, 1, 2)) / Mtot
        var = jnp.sum(psq, axis=(0, 1, 2)) / Mtot - mean * mean        # biased var
        scale = params[f"bn{li}_g"] / jnp.sqrt(var + EPS)
        shift = params[f"bn{li}_b"] - mean * scale
        Hflat = bn_lrelu_apply(Y.reshape(Mtot, Cout), scale, shift)    # bf16
        h = interleave_phases(Hflat.reshape(4, Bc * H * W, Cout), Bc, H, W, Cout)

    # Final layer: ConvTranspose2d(ngf, 1, 4, 2, 1) + Sigmoid, lane-dense output.
    Bc, H, W, Cin = h.shape
    At = phase_im2col_T(h)                                             # [4, 4*Cin, M] bf16
    O = last_layer_sigmoid(pp["ct4_wpT"], At)                          # [4, 1, M] f32
    return interleave_phases_last(O, Bc, H, W)                         # [B, 1, 2H, 2W]


# ----------------------------------------------------------------------------
# Pure-JAX reference (independent lowering via lax.conv_general_dilated),
# with the same bf16 operand casting as the kernels.
# ----------------------------------------------------------------------------
def ref_conv_transpose(h, w, stride, padding):
    k = w.shape[2]
    kern = jnp.flip(w, axis=(2, 3)).transpose(2, 3, 0, 1).astype(jnp.bfloat16)
    pad = k - 1 - padding
    return lax.conv_general_dilated(
        h.astype(jnp.bfloat16), kern, window_strides=(1, 1),
        padding=[(pad, pad), (pad, pad)], lhs_dilation=(stride, stride),
        dimension_numbers=("NHWC", "HWIO", "NHWC"),
        preferred_element_type=jnp.float32)


def decoder_forward_reference(x, params):
    B = x.shape[0]
    h = jnp.dot(x.astype(jnp.bfloat16), params["lin_w"].T.astype(jnp.bfloat16),
                preferred_element_type=jnp.float32) + params["lin_b"][None, :]
    h = h.reshape(B, 1, 1, 64)
    strides = (1, 2, 2, 2, 2)
    pads = (0, 1, 1, 1, 1)
    for li in range(5):
        y = ref_conv_transpose(h, params[f"ct{li}_w"], strides[li], pads[li])
        if li < 4:
            mean = jnp.mean(y, axis=(0, 1, 2))
            var = jnp.var(y, axis=(0, 1, 2))
            yh = (y - mean) / jnp.sqrt(var + EPS) * params[f"bn{li}_g"] + params[f"bn{li}_b"]
            h = jnp.where(yh > 0, yh, 0.2 * yh).astype(jnp.bfloat16)
        else:
            h = jax.nn.sigmoid(y)
    return jnp.transpose(h, (0, 3, 1, 2))                              # NCHW


# ----------------------------------------------------------------------------
# Deterministic parameter construction (PyTorch layouts)
# ----------------------------------------------------------------------------
def make_params(key, nz, ngf):
    ks = jax.random.split(key, 16)
    p = {}
    p["lin_w"] = 0.05 * jax.random.normal(ks[0], (64, nz), jnp.float32)
    p["lin_b"] = 0.05 * jax.random.normal(ks[1], (64,), jnp.float32)
    chans_in = (64, ngf * 8, ngf * 4, ngf * 2, ngf)
    chans_out = (ngf * 8, ngf * 4, ngf * 2, ngf, 1)
    for li in range(5):
        p[f"ct{li}_w"] = 0.05 * jax.random.normal(
            ks[2 + li], (chans_in[li], chans_out[li], 4, 4), jnp.float32)
    for li in range(4):
        p[f"bn{li}_g"] = 1.0 + 0.1 * jax.random.normal(
            ks[8 + li], (chans_out[li],), jnp.float32)
        p[f"bn{li}_b"] = 0.1 * jax.random.normal(
            ks[12 + li], (chans_out[li],), jnp.float32)
    return p


if __name__ == "__main__":
    B, NZ, NGF = 2, 32, 16          # small but architecture-consistent sizes
    key = jax.random.PRNGKey(0)
    kx, kp = jax.random.split(key)
    x = jax.random.normal(kx, (B, NZ), jnp.float32)
    params = make_params(kp, NZ, NGF)

    out = jax.block_until_ready(jax.jit(decoder_forward_pallas)(x, params))
    assert out.shape == (B, 1, 64, 64), out.shape
    assert bool(jnp.all(jnp.isfinite(out)))
    assert bool(jnp.all((out >= 0.0) & (out <= 1.0)))

    ref = jax.block_until_ready(jax.jit(decoder_forward_reference)(x, params))
    assert bool(jnp.allclose(out, ref, rtol=2e-3, atol=2e-3)), \
        float(jnp.max(jnp.abs(out - ref)))

    print("KERNEL_OK")
</pallas_src>

<mosaic_0001>
module attributes {stable_mosaic.version = 11 : i64} {
  func.func @_lin_ct0_kernel(%arg0: i32, %arg1: memref<2x32xbf16, #tpu.memory_space<vmem>>, %arg2: memref<32x64xbf16, #tpu.memory_space<vmem>>, %arg3: memref<1x64xf32, #tpu.memory_space<vmem>>, %arg4: memref<64x2048xbf16, #tpu.memory_space<vmem>>, %arg5: memref<2x2048xf32, #tpu.memory_space<vmem>>) attributes {dimension_semantics = [#tpu.dimension_semantics<arbitrary>], iteration_bounds = array<i64: 1>, scalar_prefetch = 0 : i64, scratch_operands = 0 : i64, tpu.core_type = #tpu.core_type<tc>, window_params = [{pipeline_mode = #tpu.pipeline_mode<synchronous>, transform_indices = @transform_0, window_bounds = array<i64: 2, 32>}, {pipeline_mode = #tpu.pipeline_mode<synchronous>, transform_indices = @transform_1, window_bounds = array<i64: 32, 64>}, {pipeline_mode = #tpu.pipeline_mode<synchronous>, transform_indices = @transform_2, window_bounds = array<i64: 1, 64>}, {pipeline_mode = #tpu.pipeline_mode<synchronous>, transform_indices = @transform_3, window_bounds = array<i64: 64, 2048>}, {pipeline_mode = #tpu.pipeline_mode<synchronous>, transform_indices = @transform_4, window_bounds = array<i64: 2, 2048>}]} {
    %c0 = arith.constant 0 : index
    %c0_0 = arith.constant 0 : index
    %0 = vector.load %arg1[%c0, %c0_0] : memref<2x32xbf16, #tpu.memory_space<vmem>>, vector<2x32xbf16>
    %c0_1 = arith.constant 0 : index
    %c0_2 = arith.constant 0 : index
    %1 = vector.load %arg2[%c0_1, %c0_2] : memref<32x64xbf16, #tpu.memory_space<vmem>>, vector<32x64xbf16>
    %cst = arith.constant dense<0.000000e+00> : vector<2x64xf32>
    %2 = tpu.matmul %0, %1, %cst {dimension_numbers = #tpu.dot_dimension_numbers<[1], [0], [0], [1], [0, 0, 1, 1], [], []>} : vector<2x32xbf16>, vector<32x64xbf16>, vector<2x64xf32> -> vector<2x64xf32>
    %c0_3 = arith.constant 0 : index
    %c0_4 = arith.constant 0 : index
    %3 = vector.load %arg3[%c0_3, %c0_4] : memref<1x64xf32, #tpu.memory_space<vmem>>, vector<1x64xf32>
    %4 = vector.broadcast %3 : vector<1x64xf32> to vector<2x64xf32>
    %5 = arith.addf %2, %4 : vector<2x64xf32>
    %6 = arith.truncf %5 : vector<2x64xf32> to vector<2x64xbf16>
    %c0_5 = arith.constant 0 : index
    %c0_6 = arith.constant 0 : index
    %7 = vector.load %arg4[%c0_5, %c0_6] : memref<64x2048xbf16, #tpu.memory_space<vmem>>, vector<64x2048xbf16>
    %cst_7 = arith.constant dense<0.000000e+00> : vector<2x2048xf32>
    %8 = tpu.matmul %6, %7, %cst_7 {dimension_numbers = #tpu.dot_dimension_numbers<[1], [0], [0], [1], [0, 0, 1, 1], [], []>} : vector<2x64xbf16>, vector<64x2048xbf16>, vector<2x2048xf32> -> vector<2x2048xf32>
    %c0_8 = arith.constant 0 : index
    %c0_9 = arith.constant 0 : index
    %9 = vector.load %arg5[%c0_8, %c0_9] : memref<2x2048xf32, #tpu.memory_space<vmem>>, vector<2x2048xf32>
    tpu.vector_store %arg5[%c0_8, %c0_9], %8 {strides = array<i32>} : memref<2x2048xf32, #tpu.memory_space<vmem>>, vector<2x2048xf32>,
    return
  }
  func.func @transform_0(%arg0: i32) -> (i32, i32) {
    %c0_i32 = arith.constant 0 : i32
    %c0_i32_0 = arith.constant 0 : i32
    %c0_i32_1 = arith.constant 0 : i32
    return %c0_i32, %c0_i32_0 : i32, i32
  }
  func.func @transform_1(%arg0: i32) -> (i32, i32) {
    %c0_i32 = arith.constant 0 : i32
    %c0_i32_0 = arith.constant 0 : i32
    %c0_i32_1 = arith.constant 0 : i32
    return %c0_i32, %c0_i32_0 : i32, i32
  }
  func.func @transform_2(%arg0: i32) -> (i32, i32) {
    %c0_i32 = arith.constant 0 : i32
    %c0_i32_0 = arith.constant 0 : i32
    %c0_i32_1 = arith.constant 0 : i32
    return %c0_i32, %c0_i32_0 : i32, i32
  }
  func.func @transform_3(%arg0: i32) -> (i32, i32) {
    %c0_i32 = arith.constant 0 : i32
    %c0_i32_0 = arith.constant 0 : i32
    %c0_i32_1 = arith.constant 0 : i32
    return %c0_i32, %c0_i32_0 : i32, i32
  }
  func.func @transform_4(%arg0: i32) -> (i32, i32) {
    %c0_i32 = arith.constant 0 : i32
    %c0_i32_0 = arith.constant 0 : i32
    %c0_i32_1 = arith.constant 0 : i32
    return %c0_i32, %c0_i32_0 : i32, i32
  }
}

module attributes {stable_mosaic.version = 11 : i64} {
  func.func @_scale_shift_lrelu_kernel(%arg0: i32, %arg1: memref<32x128xf32, #tpu.memory_space<vmem>>, %arg2: memref<1x128xf32, #tpu.memory_space<vmem>>, %arg3: memref<1x128xf32, #tpu.memory_space<vmem>>, %arg4: memref<32x128xbf16, #tpu.memory_space<vmem>>) attributes {dimension_semantics = [#tpu.dimension_semantics<parallel>], iteration_bounds = array<i64: 1>, scalar_prefetch = 0 : i64, scratch_operands = 0 : i64, tpu.core_type = #tpu.core_type<tc>, window_params = [{transform_indices = @transform_0, window_bounds = array<i64: 32, 128>}, {pipeline_mode = #tpu.pipeline_mode<synchronous>, transform_indices = @transform_1, window_bounds = array<i64: 1, 128>}, {pipeline_mode = #tpu.pipeline_mode<synchronous>, transform_indices = @transform_2, window_bounds = array<i64: 1, 128>}, {transform_indices = @transform_3, window_bounds = array<i64: 32, 128>}]} {
    %c0 = arith.constant 0 : index
    %c0_0 = arith.constant 0 : index
    %0 = vector.load %arg1[%c0, %c0_0] : memref<32x128xf32, #tpu.memory_space<vmem>>, vector<32x128xf32>
    %c0_1 = arith.constant 0 : index
    %c0_2 = arith.constant 0 : index
    %1 = vector.load %arg2[%c0_1, %c0_2] : memref<1x128xf32, #tpu.memory_space<vmem>>, vector<1x128xf32>
    %2 = vector.broadcast %1 : vector<1x128xf32> to vector<32x128xf32>
    %3 = arith.mulf %0, %2 : vector<32x128xf32>
    %c0_3 = arith.constant 0 : index
    %c0_4 = arith.constant 0 : index
    %4 = vector.load %arg3[%c0_3, %c0_4] : memref<1x128xf32, #tpu.memory_space<vmem>>, vector<1x128xf32>
    %5 = vector.broadcast %4 : vector<1x128xf32> to vector<32x128xf32>
    %6 = arith.addf %3, %5 : vector<32x128xf32>
    %cst = arith.constant 0.000000e+00 : f32
    %7 = vector.broadcast %cst : f32 to vector<32x128xf32>
    %8 = arith.cmpf ogt, %6, %7 : vector<32x128xf32>
    %cst_5 = arith.constant 2.000000e-01 : f32
    %9 = vector.broadcast %cst_5 : f32 to vector<32x128xf32>
    %10 = arith.mulf %9, %6 : vector<32x128xf32>
    %11 = arith.select %8, %6, %10 : vector<32x128xi1>, vector<32x128xf32>
    %12 = arith.truncf %11 : vector<32x128xf32> to vector<32x128xbf16>
    %c0_6 = arith.constant 0 : index
    %c0_7 = arith.constant 0 : index
    %13 = vector.load %arg4[%c0_6, %c0_7] : memref<32x128xbf16, #tpu.memory_space<vmem>>, vector<32x128xbf16>
    tpu.vector_store %arg4[%c0_6, %c0_7], %12 {strides = array<i32>} : memref<32x128xbf16, #tpu.memory_space<vmem>>, vector<32x128xbf16>,
    return
  }
  func.func @transform_0(%arg0: i32) -> (i32, i32) {
    %c0_i32 = arith.constant 0 : i32
    %c0_i32_0 = arith.constant 0 : i32
    return %arg0, %c0_i32 : i32, i32
  }
  func.func @transform_1(%arg0: i32) -> (i32, i32) {
    %c0_i32 = arith.constant 0 : i32
    %c0_i32_0 = arith.constant 0 : i32
    %c0_i32_1 = arith.constant 0 : i32
    return %c0_i32, %c0_i32_0 : i32, i32
  }
  func.func @transform_2(%arg0: i32) -> (i32, i32) {
    %c0_i32 = arith.constant 0 : i32
    %c0_i32_0 = arith.constant 0 : i32
    %c0_i32_1 = arith.constant 0 : i32
    return %c0_i32, %c0_i32_0 : i32, i32
  }
  func.func @transform_3(%arg0: i32) -> (i32, i32) {
    %c0_i32 = arith.constant 0 : i32
    %c0_i32_0 = arith.constant 0 : i32
    return %arg0, %c0_i32 : i32, i32
  }
}

module attributes {stable_mosaic.version = 11 : i64} {
  func.func @_phase_mm_stats_kernel(%arg0: i32, %arg1: i32, %arg2: memref<1x32x512xbf16, #tpu.memory_space<vmem>>, %arg3: memref<1x512x64xbf16, #tpu.memory_space<vmem>>, %arg4: memref<1x32x64xf32, #tpu.memory_space<vmem>>, %arg5: memref<1x1x1x64xf32, #tpu.memory_space<vmem>>, %arg6: memref<1x1x1x64xf32, #tpu.memory_space<vmem>>) attributes {dimension_semantics = [#tpu.dimension_semantics<parallel>, #tpu.dimension_semantics<parallel>], iteration_bounds = array<i64: 4, 1>, scalar_prefetch = 0 : i64, scratch_operands = 0 : i64, tpu.core_type = #tpu.core_type<tc>, window_params = [{transform_indices = @transform_0, window_bounds = array<i64: 1, 32, 512>}, {transform_indices = @transform_1, window_bounds = array<i64: 1, 512, 64>}, {transform_indices = @transform_2, window_bounds = array<i64: 1, 32, 64>}, {transform_indices = @transform_3, window_bounds = array<i64: 1, 1, 1, 64>}, {transform_indices = @transform_4, window_bounds = array<i64: 1, 1, 1, 64>}]} {
    %c0 = arith.constant 0 : index
    %c0_0 = arith.constant 0 : index
    %c0_1 = arith.constant 0 : index
    %0 = vector.load %arg2[%c0, %c0_0, %c0_1] : memref<1x32x512xbf16, #tpu.memory_space<vmem>>, vector<1x32x512xbf16>
    %1 = vector.shape_cast %0 : vector<1x32x512xbf16> to vector<32x512xbf16>
    %c0_2 = arith.constant 0 : index
    %c0_3 = arith.constant 0 : index
    %c0_4 = arith.constant 0 : index
    %2 = vector.load %arg3[%c0_2, %c0_3, %c0_4] : memref<1x512x64xbf16, #tpu.memory_space<vmem>>, vector<1x512x64xbf16>
    %3 = vector.shape_cast %2 : vector<1x512x64xbf16> to vector<512x64xbf16>
    %cst = arith.constant dense<0.000000e+00> : vector<32x64xf32>
    %4 = tpu.matmul %1, %3, %cst {dimension_numbers = #tpu.dot_dimension_numbers<[1], [0], [0], [1], [0, 0, 1, 1], [], []>} : vector<32x512xbf16>, vector<512x64xbf16>, vector<32x64xf32> -> vector<32x64xf32>
    %c0_5 = arith.constant 0 : index
    %c0_6 = arith.constant 0 : index
    %c0_7 = arith.constant 0 : index
    %5 = vector.load %arg4[%c0_5, %c0_6, %c0_7] : memref<1x32x64xf32, #tpu.memory_space<vmem>>, vector<1x32x64xf32>
    %6 = vector.shape_cast %5 : vector<1x32x64xf32> to vector<32x64xf32>
    %7 = vector.shape_cast %4 : vector<32x64xf32> to vector<1x32x64xf32>
    tpu.vector_store %arg4[%c0_5, %c0_6, %c0_7], %7 {strides = array<i32>} : memref<1x32x64xf32, #tpu.memory_space<vmem>>, vector<1x32x64xf32>,
    %cst_8 = arith.constant dense<0.000000e+00> : vector<64xf32>
    %8 = vector.multi_reduction <add>, %4, %cst_8 [0] : vector<32x64xf32> to vector<64xf32>
    %9 = vector.shape_cast %8 : vector<64xf32> to vector<1x64xf32>
    %c0_9 = arith.constant 0 : index
    %c0_10 = arith.constant 0 : index
    %c0_11 = arith.constant 0 : index
    %c0_12 = arith.constant 0 : index
    %10 = vector.load %arg5[%c0_9, %c0_10, %c0_11, %c0_12] : memref<1x1x1x64xf32, #tpu.memory_space<vmem>>, vector<1x1x1x64xf32>
    %11 = vector.shape_cast %10 : vector<1x1x1x64xf32> to vector<1x64xf32>
    %12 = vector.shape_cast %9 : vector<1x64xf32> to vector<1x1x1x64xf32>
    tpu.vector_store %arg5[%c0_9, %c0_10, %c0_11, %c0_12], %12 {strides = array<i32>} : memref<1x1x1x64xf32, #tpu.memory_space<vmem>>, vector<1x1x1x64xf32>,
    %13 = arith.mulf %4, %4 : vector<32x64xf32>
    %cst_13 = arith.constant dense<0.000000e+00> : vector<64xf32>
    %14 = vector.multi_reduction <add>, %13, %cst_13 [0] : vector<32x64xf32> to vector<64xf32>
    %15 = vector.shape_cast %14 : vector<64xf32> to vector<1x64xf32>
    %c0_14 = arith.constant 0 : index
    %c0_15 = arith.constant 0 : index
    %c0_16 = arith.constant 0 : index
    %c0_17 = arith.constant 0 : index
    %16 = vector.load %arg6[%c0_14, %c0_15, %c0_16, %c0_17] : memref<1x1x1x64xf32, #tpu.memory_space<vmem>>, vector<1x1x1x64xf32>
    %17 = vector.shape_cast %16 : vector<1x1x1x64xf32> to vector<1x64xf32>
    %18 = vector.shape_cast %15 : vector<1x64xf32> to vector<1x1x1x64xf32>
    tpu.vector_store %arg6[%c0_14, %c0_15, %c0_16, %c0_17], %18 {strides = array<i32>} : memref<1x1x1x64xf32, #tpu.memory_space<vmem>>, vector<1x1x1x64xf32>,
    return
  }
  func.func @transform_0(%arg0: i32, %arg1: i32) -> (i32, i32, i32) {
    %c0_i32 = arith.constant 0 : i32
    %c0_i32_0 = arith.constant 0 : i32
    return %arg0, %arg1, %c0_i32 : i32, i32, i32
  }
  func.func @transform_1(%arg0: i32, %arg1: i32) -> (i32, i32, i32) {
    %c0_i32 = arith.constant 0 : i32
    %c0_i32_0 = arith.constant 0 : i32
    %c0_i32_1 = arith.constant 0 : i32
    return %arg0, %c0_i32, %c0_i32_0 : i32, i32, i32
  }
  func.func @transform_2(%arg0: i32, %arg1: i32) -> (i32, i32, i32) {
    %c0_i32 = arith.constant 0 : i32
    %c0_i32_0 = arith.constant 0 : i32
    return %arg0, %arg1, %c0_i32 : i32, i32, i32
  }
  func.func @transform_3(%arg0: i32, %arg1: i32) -> (i32, i32, i32, i32) {
    %c0_i32 = arith.constant 0 : i32
    %c0_i32_0 = arith.constant 0 : i32
    %c0_i32_1 = arith.constant 0 : i32
    return %arg0, %arg1, %c0_i32, %c0_i32_0 : i32, i32, i32, i32
  }
  func.func @transform_4(%arg0: i32, %arg1: i32) -> (i32, i32, i32, i32) {
    %c0_i32 = arith.constant 0 : i32
    %c0_i32_0 = arith.constant 0 : i32
    %c0_i32_1 = arith.constant 0 : i32
    return %arg0, %arg1, %c0_i32, %c0_i32_0 : i32, i32, i32, i32
  }
}

module attributes {stable_mosaic.version = 11 : i64} {
  func.func @_scale_shift_lrelu_kernel(%arg0: i32, %arg1: memref<64x128xf32, #tpu.memory_space<vmem>>, %arg2: memref<1x128xf32, #tpu.memory_space<vmem>>, %arg3: memref<1x128xf32, #tpu.memory_space<vmem>>, %arg4: memref<64x128xbf16, #tpu.memory_space<vmem>>) attributes {dimension_semantics = [#tpu.dimension_semantics<parallel>], iteration_bounds = array<i64: 1>, scalar_prefetch = 0 : i64, scratch_operands = 0 : i64, tpu.core_type = #tpu.core_type<tc>, window_params = [{transform_indices = @transform_0, window_bounds = array<i64: 64, 128>}, {pipeline_mode = #tpu.pipeline_mode<synchronous>, transform_indices = @transform_1, window_bounds = array<i64: 1, 128>}, {pipeline_mode = #tpu.pipeline_mode<synchronous>, transform_indices = @transform_2, window_bounds = array<i64: 1, 128>}, {transform_indices = @transform_3, window_bounds = array<i64: 64, 128>}]} {
    %c0 = arith.constant 0 : index
    %c0_0 = arith.constant 0 : index
    %0 = vector.load %arg1[%c0, %c0_0] : memref<64x128xf32, #tpu.memory_space<vmem>>, vector<64x128xf32>
    %c0_1 = arith.constant 0 : index
    %c0_2 = arith.constant 0 : index
    %1 = vector.load %arg2[%c0_1, %c0_2] : memref<1x128xf32, #tpu.memory_space<vmem>>, vector<1x128xf32>
    %2 = vector.broadcast %1 : vector<1x128xf32> to vector<64x128xf32>
    %3 = arith.mulf %0, %2 : vector<64x128xf32>
    %c0_3 = arith.constant 0 : index
    %c0_4 = arith.constant 0 : index
    %4 = vector.load %arg3[%c0_3, %c0_4] : memref<1x128xf32, #tpu.memory_space<vmem>>, vector<1x128xf32>
    %5 = vector.broadcast %4 : vector<1x128xf32> to vector<64x128xf32>
    %6 = arith.addf %3, %5 : vector<64x128xf32>
    %cst = arith.constant 0.000000e+00 : f32
    %7 = vector.broadcast %cst : f32 to vector<64x128xf32>
    %8 = arith.cmpf ogt, %6, %7 : vector<64x128xf32>
    %cst_5 = arith.constant 2.000000e-01 : f32
    %9 = vector.broadcast %cst_5 : f32 to vector<64x128xf32>
    %10 = arith.mulf %9, %6 : vector<64x128xf32>
    %11 = arith.select %8, %6, %10 : vector<64x128xi1>, vector<64x128xf32>
    %12 = arith.truncf %11 : vector<64x128xf32> to vector<64x128xbf16>
    %c0_6 = arith.constant 0 : index
    %c0_7 = arith.constant 0 : index
    %13 = vector.load %arg4[%c0_6, %c0_7] : memref<64x128xbf16, #tpu.memory_space<vmem>>, vector<64x128xbf16>
    tpu.vector_store %arg4[%c0_6, %c0_7], %12 {strides = array<i32>} : memref<64x128xbf16, #tpu.memory_space<vmem>>, vector<64x128xbf16>,
    return
  }
  func.func @transform_0(%arg0: i32) -> (i32, i32) {
    %c0_i32 = arith.constant 0 : i32
    %c0_i32_0 = arith.constant 0 : i32
    return %arg0, %c0_i32 : i32, i32
  }
  func.func @transform_1(%arg0: i32) -> (i32, i32) {
    %c0_i32 = arith.constant 0 : i32
    %c0_i32_0 = arith.constant 0 : i32
    %c0_i32_1 = arith.constant 0 : i32
    return %c0_i32, %c0_i32_0 : i32, i32
  }
  func.func @transform_2(%arg0: i32) -> (i32, i32) {
    %c0_i32 = arith.constant 0 : i32
    %c0_i32_0 = arith.constant 0 : i32
    %c0_i32_1 = arith.constant 0 : i32
    return %c0_i32, %c0_i32_0 : i32, i32
  }
  func.func @transform_3(%arg0: i32) -> (i32, i32) {
    %c0_i32 = arith.constant 0 : i32
    %c0_i32_0 = arith.constant 0 : i32
    return %arg0, %c0_i32 : i32, i32
  }
}

module attributes {stable_mosaic.version = 11 : i64} {
  func.func @_phase_mm_stats_kernel(%arg0: i32, %arg1: i32, %arg2: memref<1x128x256xbf16, #tpu.memory_space<vmem>>, %arg3: memref<1x256x32xbf16, #tpu.memory_space<vmem>>, %arg4: memref<1x128x32xf32, #tpu.memory_space<vmem>>, %arg5: memref<1x1x1x32xf32, #tpu.memory_space<vmem>>, %arg6: memref<1x1x1x32xf32, #tpu.memory_space<vmem>>) attributes {dimension_semantics = [#tpu.dimension_semantics<parallel>, #tpu.dimension_semantics<parallel>], iteration_bounds = array<i64: 4, 1>, scalar_prefetch = 0 : i64, scratch_operands = 0 : i64, tpu.core_type = #tpu.core_type<tc>, window_params = [{transform_indices = @transform_0, window_bounds = array<i64: 1, 128, 256>}, {transform_indices = @transform_1, window_bounds = array<i64: 1, 256, 32>}, {transform_indices = @transform_2, window_bounds = array<i64: 1, 128, 32>}, {transform_indices = @transform_3, window_bounds = array<i64: 1, 1, 1, 32>}, {transform_indices = @transform_4, window_bounds = array<i64: 1, 1, 1, 32>}]} {
    %c0 = arith.constant 0 : index
    %c0_0 = arith.constant 0 : index
    %c0_1 = arith.constant 0 : index
    %0 = vector.load %arg2[%c0, %c0_0, %c0_1] : memref<1x128x256xbf16, #tpu.memory_space<vmem>>, vector<1x128x256xbf16>
    %1 = vector.shape_cast %0 : vector<1x128x256xbf16> to vector<128x256xbf16>
    %c0_2 = arith.constant 0 : index
    %c0_3 = arith.constant 0 : index
    %c0_4 = arith.constant 0 : index
    %2 = vector.load %arg3[%c0_2, %c0_3, %c0_4] : memref<1x256x32xbf16, #tpu.memory_space<vmem>>, vector<1x256x32xbf16>
    %3 = vector.shape_cast %2 : vector<1x256x32xbf16> to vector<256x32xbf16>
    %cst = arith.constant dense<0.000000e+00> : vector<128x32xf32>
    %4 = tpu.matmul %1, %3, %cst {dimension_numbers = #tpu.dot_dimension_numbers<[1], [0], [0], [1], [0, 0, 1, 1], [], []>} : vector<128x256xbf16>, vector<256x32xbf16>, vector<128x32xf32> -> vector<128x32xf32>
    %c0_5 = arith.constant 0 : index
    %c0_6 = arith.constant 0 : index
    %c0_7 = arith.constant 0 : index
    %5 = vector.load %arg4[%c0_5, %c0_6, %c0_7] : memref<1x128x32xf32, #tpu.memory_space<vmem>>, vector<1x128x32xf32>
    %6 = vector.shape_cast %5 : vector<1x128x32xf32> to vector<128x32xf32>
    %7 = vector.shape_cast %4 : vector<128x32xf32> to vector<1x128x32xf32>
    tpu.vector_store %arg4[%c0_5, %c0_6, %c0_7], %7 {strides = array<i32>} : memref<1x128x32xf32, #tpu.memory_space<vmem>>, vector<1x128x32xf32>,
    %cst_8 = arith.constant dense<0.000000e+00> : vector<32xf32>
    %8 = vector.multi_reduction <add>, %4, %cst_8 [0] : vector<128x32xf32> to vector<32xf32>
    %9 = vector.shape_cast %8 : vector<32xf32> to vector<1x32xf32>
    %c0_9 = arith.constant 0 : index
    %c0_10 = arith.constant 0 : index
    %c0_11 = arith.constant 0 : index
    %c0_12 = arith.constant 0 : index
    %10 = vector.load %arg5[%c0_9, %c0_10, %c0_11, %c0_12] : memref<1x1x1x32xf32, #tpu.memory_space<vmem>>, vector<1x1x1x32xf32>
    %11 = vector.shape_cast %10 : vector<1x1x1x32xf32> to vector<1x32xf32>
    %12 = vector.shape_cast %9 : vector<1x32xf32> to vector<1x1x1x32xf32>
    tpu.vector_store %arg5[%c0_9, %c0_10, %c0_11, %c0_12], %12 {strides = array<i32>} : memref<1x1x1x32xf32, #tpu.memory_space<vmem>>, vector<1x1x1x32xf32>,
    %13 = arith.mulf %4, %4 : vector<128x32xf32>
    %cst_13 = arith.constant dense<0.000000e+00> : vector<32xf32>
    %14 = vector.multi_reduction <add>, %13, %cst_13 [0] : vector<128x32xf32> to vector<32xf32>
    %15 = vector.shape_cast %14 : vector<32xf32> to vector<1x32xf32>
    %c0_14 = arith.constant 0 : index
    %c0_15 = arith.constant 0 : index
    %c0_16 = arith.constant 0 : index
    %c0_17 = arith.constant 0 : index
    %16 = vector.load %arg6[%c0_14, %c0_15, %c0_16, %c0_17] : memref<1x1x1x32xf32, #tpu.memory_space<vmem>>, vector<1x1x1x32xf32>
    %17 = vector.shape_cast %16 : vector<1x1x1x32xf32> to vector<1x32xf32>
    %18 = vector.shape_cast %15 : vector<1x32xf32> to vector<1x1x1x32xf32>
    tpu.vector_store %arg6[%c0_14, %c0_15, %c0_16, %c0_17], %18 {strides = array<i32>} : memref<1x1x1x32xf32, #tpu.memory_space<vmem>>, vector<1x1x1x32xf32>,
    return
  }
  func.func @transform_0(%arg0: i32, %arg1: i32) -> (i32, i32, i32) {
    %c0_i32 = arith.constant 0 : i32
    %c0_i32_0 = arith.constant 0 : i32
    return %arg0, %arg1, %c0_i32 : i32, i32, i32
  }
  func.func @transform_1(%arg0: i32, %arg1: i32) -> (i32, i32, i32) {
    %c0_i32 = arith.constant 0 : i32
    %c0_i32_0 = arith.constant 0 : i32
    %c0_i32_1 = arith.constant 0 : i32
    return %arg0, %c0_i32, %c0_i32_0 : i32, i32, i32
  }
  func.func @transform_2(%arg0: i32, %arg1: i32) -> (i32, i32, i32) {
    %c0_i32 = arith.constant 0 : i32
    %c0_i32_0 = arith.constant 0 : i32
    return %arg0, %arg1, %c0_i32 : i32, i32, i32
  }
  func.func @transform_3(%arg0: i32, %arg1: i32) -> (i32, i32, i32, i32) {
    %c0_i32 = arith.constant 0 : i32
    %c0_i32_0 = arith.constant 0 : i32
    %c0_i32_1 = arith.constant 0 : i32
    return %arg0, %arg1, %c0_i32, %c0_i32_0 : i32, i32, i32, i32
  }
  func.func @transform_4(%arg0: i32, %arg1: i32) -> (i32, i32, i32, i32) {
    %c0_i32 = arith.constant 0 : i32
    %c0_i32_0 = arith.constant 0 : i32
    %c0_i32_1 = arith.constant 0 : i32
    return %arg0, %arg1, %c0_i32, %c0_i32_0 : i32, i32, i32, i32
  }
}

module attributes {stable_mosaic.version = 11 : i64} {
  func.func @_scale_shift_lrelu_kernel(%arg0: i32, %arg1: memref<128x128xf32, #tpu.memory_space<vmem>>, %arg2: memref<1x128xf32, #tpu.memory_space<vmem>>, %arg3: memref<1x128xf32, #tpu.memory_space<vmem>>, %arg4: memref<128x128xbf16, #tpu.memory_space<vmem>>) attributes {dimension_semantics = [#tpu.dimension_semantics<parallel>], iteration_bounds = array<i64: 1>, scalar_prefetch = 0 : i64, scratch_operands = 0 : i64, tpu.core_type = #tpu.core_type<tc>, window_params = [{transform_indices = @transform_0, window_bounds = array<i64: 128, 128>}, {pipeline_mode = #tpu.pipeline_mode<synchronous>, transform_indices = @transform_1, window_bounds = array<i64: 1, 128>}, {pipeline_mode = #tpu.pipeline_mode<synchronous>, transform_indices = @transform_2, window_bounds = array<i64: 1, 128>}, {transform_indices = @transform_3, window_bounds = array<i64: 128, 128>}]} {
    %c0 = arith.constant 0 : index
    %c0_0 = arith.constant 0 : index
    %0 = vector.load %arg1[%c0, %c0_0] : memref<128x128xf32, #tpu.memory_space<vmem>>, vector<128x128xf32>
    %c0_1 = arith.constant 0 : index
    %c0_2 = arith.constant 0 : index
    %1 = vector.load %arg2[%c0_1, %c0_2] : memref<1x128xf32, #tpu.memory_space<vmem>>, vector<1x128xf32>
    %2 = vector.broadcast %1 : vector<1x128xf32> to vector<128x128xf32>
    %3 = arith.mulf %0, %2 : vector<128x128xf32>
    %c0_3 = arith.constant 0 : index
    %c0_4 = arith.constant 0 : index
    %4 = vector.load %arg3[%c0_3, %c0_4] : memref<1x128xf32, #tpu.memory_space<vmem>>, vector<1x128xf32>
    %5 = vector.broadcast %4 : vector<1x128xf32> to vector<128x128xf32>
    %6 = arith.addf %3, %5 : vector<128x128xf32>
    %cst = arith.constant 0.000000e+00 : f32
    %7 = vector.broadcast %cst : f32 to vector<128x128xf32>
    %8 = arith.cmpf ogt, %6, %7 : vector<128x128xf32>
    %cst_5 = arith.constant 2.000000e-01 : f32
    %9 = vector.broadcast %cst_5 : f32 to vector<128x128xf32>
    %10 = arith.mulf %9, %6 : vector<128x128xf32>
    %11 = arith.select %8, %6, %10 : vector<128x128xi1>, vector<128x128xf32>
    %12 = arith.truncf %11 : vector<128x128xf32> to vector<128x128xbf16>
    %c0_6 = arith.constant 0 : index
    %c0_7 = arith.constant 0 : index
    %13 = vector.load %arg4[%c0_6, %c0_7] : memref<128x128xbf16, #tpu.memory_space<vmem>>, vector<128x128xbf16>
    tpu.vector_store %arg4[%c0_6, %c0_7], %12 {strides = array<i32>} : memref<128x128xbf16, #tpu.memory_space<vmem>>, vector<128x128xbf16>,
    return
  }
  func.func @transform_0(%arg0: i32) -> (i32, i32) {
    %c0_i32 = arith.constant 0 : i32
    %c0_i32_0 = arith.constant 0 : i32
    return %arg0, %c0_i32 : i32, i32
  }
  func.func @transform_1(%arg0: i32) -> (i32, i32) {
    %c0_i32 = arith.constant 0 : i32
    %c0_i32_0 = arith.constant 0 : i32
    %c0_i32_1 = arith.constant 0 : i32
    return %c0_i32, %c0_i32_0 : i32, i32
  }
  func.func @transform_2(%arg0: i32) -> (i32, i32) {
    %c0_i32 = arith.constant 0 : i32
    %c0_i32_0 = arith.constant 0 : i32
    %c0_i32_1 = arith.constant 0 : i32
    return %c0_i32, %c0_i32_0 : i32, i32
  }
  func.func @transform_3(%arg0: i32) -> (i32, i32) {
    %c0_i32 = arith.constant 0 : i32
    %c0_i32_0 = arith.constant 0 : i32
    return %arg0, %c0_i32 : i32, i32
  }
}

module attributes {stable_mosaic.version = 11 : i64} {
  func.func @_phase_mm_stats_kernel(%arg0: i32, %arg1: i32, %arg2: memref<1x512x128xbf16, #tpu.memory_space<vmem>>, %arg3: memref<1x128x16xbf16, #tpu.memory_space<vmem>>, %arg4: memref<1x512x16xf32, #tpu.memory_space<vmem>>, %arg5: memref<1x1x1x16xf32, #tpu.memory_space<vmem>>, %arg6: memref<1x1x1x16xf32, #tpu.memory_space<vmem>>) attributes {dimension_semantics = [#tpu.dimension_semantics<parallel>, #tpu.dimension_semantics<parallel>], iteration_bounds = array<i64: 4, 1>, scalar_prefetch = 0 : i64, scratch_operands = 0 : i64, tpu.core_type = #tpu.core_type<tc>, window_params = [{transform_indices = @transform_0, window_bounds = array<i64: 1, 512, 128>}, {transform_indices = @transform_1, window_bounds = array<i64: 1, 128, 16>}, {transform_indices = @transform_2, window_bounds = array<i64: 1, 512, 16>}, {transform_indices = @transform_3, window_bounds = array<i64: 1, 1, 1, 16>}, {transform_indices = @transform_4, window_bounds = array<i64: 1, 1, 1, 16>}]} {
    %c0 = arith.constant 0 : index
    %c0_0 = arith.constant 0 : index
    %c0_1 = arith.constant 0 : index
    %0 = vector.load %arg2[%c0, %c0_0, %c0_1] : memref<1x512x128xbf16, #tpu.memory_space<vmem>>, vector<1x512x128xbf16>
    %1 = vector.shape_cast %0 : vector<1x512x128xbf16> to vector<512x128xbf16>
    %c0_2 = arith.constant 0 : index
    %c0_3 = arith.constant 0 : index
    %c0_4 = arith.constant 0 : index
    %2 = vector.load %arg3[%c0_2, %c0_3, %c0_4] : memref<1x128x16xbf16, #tpu.memory_space<vmem>>, vector<1x128x16xbf16>
    %3 = vector.shape_cast %2 : vector<1x128x16xbf16> to vector<128x16xbf16>
    %cst = arith.constant dense<0.000000e+00> : vector<512x16xf32>
    %4 = tpu.matmul %1, %3, %cst {dimension_numbers = #tpu.dot_dimension_numbers<[1], [0], [0], [1], [0, 0, 1, 1], [], []>} : vector<512x128xbf16>, vector<128x16xbf16>, vector<512x16xf32> -> vector<512x16xf32>
    %c0_5 = arith.constant 0 : index
    %c0_6 = arith.constant 0 : index
    %c0_7 = arith.constant 0 : index
    %5 = vector.load %arg4[%c0_5, %c0_6, %c0_7] : memref<1x512x16xf32, #tpu.memory_space<vmem>>, vector<1x512x16xf32>
    %6 = vector.shape_cast %5 : vector<1x512x16xf32> to vector<512x16xf32>
    %7 = vector.shape_cast %4 : vector<512x16xf32> to vector<1x512x16xf32>
    tpu.vector_store %arg4[%c0_5, %c0_6, %c0_7], %7 {strides = array<i32>} : memref<1x512x16xf32, #tpu.memory_space<vmem>>, vector<1x512x16xf32>,
    %cst_8 = arith.constant dense<0.000000e+00> : vector<16xf32>
    %8 = vector.multi_reduction <add>, %4, %cst_8 [0] : vector<512x16xf32> to vector<16xf32>
    %9 = vector.shape_cast %8 : vector<16xf32> to vector<1x16xf32>
    %c0_9 = arith.constant 0 : index
    %c0_10 = arith.constant 0 : index
    %c0_11 = arith.constant 0 : index
    %c0_12 = arith.constant 0 : index
    %10 = vector.load %arg5[%c0_9, %c0_10, %c0_11, %c0_12] : memref<1x1x1x16xf32, #tpu.memory_space<vmem>>, vector<1x1x1x16xf32>
    %11 = vector.shape_cast %10 : vector<1x1x1x16xf32> to vector<1x16xf32>
    %12 = vector.shape_cast %9 : vector<1x16xf32> to vector<1x1x1x16xf32>
    tpu.vector_store %arg5[%c0_9, %c0_10, %c0_11, %c0_12], %12 {strides = array<i32>} : memref<1x1x1x16xf32, #tpu.memory_space<vmem>>, vector<1x1x1x16xf32>,
    %13 = arith.mulf %4, %4 : vector<512x16xf32>
    %cst_13 = arith.constant dense<0.000000e+00> : vector<16xf32>
    %14 = vector.multi_reduction <add>, %13, %cst_13 [0] : vector<512x16xf32> to vector<16xf32>
    %15 = vector.shape_cast %14 : vector<16xf32> to vector<1x16xf32>
    %c0_14 = arith.constant 0 : index
    %c0_15 = arith.constant 0 : index
    %c0_16 = arith.constant 0 : index
    %c0_17 = arith.constant 0 : index
    %16 = vector.load %arg6[%c0_14, %c0_15, %c0_16, %c0_17] : memref<1x1x1x16xf32, #tpu.memory_space<vmem>>, vector<1x1x1x16xf32>
    %17 = vector.shape_cast %16 : vector<1x1x1x16xf32> to vector<1x16xf32>
    %18 = vector.shape_cast %15 : vector<1x16xf32> to vector<1x1x1x16xf32>
    tpu.vector_store %arg6[%c0_14, %c0_15, %c0_16, %c0_17], %18 {strides = array<i32>} : memref<1x1x1x16xf32, #tpu.memory_space<vmem>>, vector<1x1x1x16xf32>,
    return
  }
  func.func @transform_0(%arg0: i32, %arg1: i32) -> (i32, i32, i32) {
    %c0_i32 = arith.constant 0 : i32
    %c0_i32_0 = arith.constant 0 : i32
    return %arg0, %arg1, %c0_i32 : i32, i32, i32
  }
  func.func @transform_1(%arg0: i32, %arg1: i32) -> (i32, i32, i32) {
    %c0_i32 = arith.constant 0 : i32
    %c0_i32_0 = arith.constant 0 : i32
    %c0_i32_1 = arith.constant 0 : i32
    return %arg0, %c0_i32, %c0_i32_0 : i32, i32, i32
  }
  func.func @transform_2(%arg0: i32, %arg1: i32) -> (i32, i32, i32) {
    %c0_i32 = arith.constant 0 : i32
    %c0_i32_0 = arith.constant 0 : i32
    return %arg0, %arg1, %c0_i32 : i32, i32, i32
  }
  func.func @transform_3(%arg0: i32, %arg1: i32) -> (i32, i32, i32, i32) {
    %c0_i32 = arith.constant 0 : i32
    %c0_i32_0 = arith.constant 0 : i32
    %c0_i32_1 = arith.constant 0 : i32
    return %arg0, %arg1, %c0_i32, %c0_i32_0 : i32, i32, i32, i32
  }
  func.func @transform_4(%arg0: i32, %arg1: i32) -> (i32, i32, i32, i32) {
    %c0_i32 = arith.constant 0 : i32
    %c0_i32_0 = arith.constant 0 : i32
    %c0_i32_1 = arith.constant 0 : i32
    return %arg0, %arg1, %c0_i32, %c0_i32_0 : i32, i32, i32, i32
  }
}

module attributes {stable_mosaic.version = 11 : i64} {
  func.func @_scale_shift_lrelu_kernel(%arg0: i32, %arg1: memref<256x128xf32, #tpu.memory_space<vmem>>, %arg2: memref<1x128xf32, #tpu.memory_space<vmem>>, %arg3: memref<1x128xf32, #tpu.memory_space<vmem>>, %arg4: memref<256x128xbf16, #tpu.memory_space<vmem>>) attributes {dimension_semantics = [#tpu.dimension_semantics<parallel>], iteration_bounds = array<i64: 1>, scalar_prefetch = 0 : i64, scratch_operands = 0 : i64, tpu.core_type = #tpu.core_type<tc>, window_params = [{transform_indices = @transform_0, window_bounds = array<i64: 256, 128>}, {pipeline_mode = #tpu.pipeline_mode<synchronous>, transform_indices = @transform_1, window_bounds = array<i64: 1, 128>}, {pipeline_mode = #tpu.pipeline_mode<synchronous>, transform_indices = @transform_2, window_bounds = array<i64: 1, 128>}, {transform_indices = @transform_3, window_bounds = array<i64: 256, 128>}]} {
    %c0 = arith.constant 0 : index
    %c0_0 = arith.constant 0 : index
    %0 = vector.load %arg1[%c0, %c0_0] : memref<256x128xf32, #tpu.memory_space<vmem>>, vector<256x128xf32>
    %c0_1 = arith.constant 0 : index
    %c0_2 = arith.constant 0 : index
    %1 = vector.load %arg2[%c0_1, %c0_2] : memref<1x128xf32, #tpu.memory_space<vmem>>, vector<1x128xf32>
    %2 = vector.broadcast %1 : vector<1x128xf32> to vector<256x128xf32>
    %3 = arith.mulf %0, %2 : vector<256x128xf32>
    %c0_3 = arith.constant 0 : index
    %c0_4 = arith.constant 0 : index
    %4 = vector.load %arg3[%c0_3, %c0_4] : memref<1x128xf32, #tpu.memory_space<vmem>>, vector<1x128xf32>
    %5 = vector.broadcast %4 : vector<1x128xf32> to vector<256x128xf32>
    %6 = arith.addf %3, %5 : vector<256x128xf32>
    %cst = arith.constant 0.000000e+00 : f32
    %7 = vector.broadcast %cst : f32 to vector<256x128xf32>
    %8 = arith.cmpf ogt, %6, %7 : vector<256x128xf32>
    %cst_5 = arith.constant 2.000000e-01 : f32
    %9 = vector.broadcast %cst_5 : f32 to vector<256x128xf32>
    %10 = arith.mulf %9, %6 : vector<256x128xf32>
    %11 = arith.select %8, %6, %10 : vector<256x128xi1>, vector<256x128xf32>
    %12 = arith.truncf %11 : vector<256x128xf32> to vector<256x128xbf16>
    %c0_6 = arith.constant 0 : index
    %c0_7 = arith.constant 0 : index
    %13 = vector.load %arg4[%c0_6, %c0_7] : memref<256x128xbf16, #tpu.memory_space<vmem>>, vector<256x128xbf16>
    tpu.vector_store %arg4[%c0_6, %c0_7], %12 {strides = array<i32>} : memref<256x128xbf16, #tpu.memory_space<vmem>>, vector<256x128xbf16>,
    return
  }
  func.func @transform_0(%arg0: i32) -> (i32, i32) {
    %c0_i32 = arith.constant 0 : i32
    %c0_i32_0 = arith.constant 0 : i32
    return %arg0, %c0_i32 : i32, i32
  }
  func.func @transform_1(%arg0: i32) -> (i32, i32) {
    %c0_i32 = arith.constant 0 : i32
    %c0_i32_0 = arith.constant 0 : i32
    %c0_i32_1 = arith.constant 0 : i32
    return %c0_i32, %c0_i32_0 : i32, i32
  }
  func.func @transform_2(%arg0: i32) -> (i32, i32) {
    %c0_i32 = arith.constant 0 : i32
    %c0_i32_0 = arith.constant 0 : i32
    %c0_i32_1 = arith.constant 0 : i32
    return %c0_i32, %c0_i32_0 : i32, i32
  }
  func.func @transform_3(%arg0: i32) -> (i32, i32) {
    %c0_i32 = arith.constant 0 : i32
    %c0_i32_0 = arith.constant 0 : i32
    return %arg0, %c0_i32 : i32, i32
  }
}

module attributes {stable_mosaic.version = 11 : i64} {
  func.func @_matvec_sigmoid_kernel(%arg0: i32, %arg1: i32, %arg2: memref<1x1x64xbf16, #tpu.memory_space<vmem>>, %arg3: memref<1x64x1024xbf16, #tpu.memory_space<vmem>>, %arg4: memref<1x1x1024xf32, #tpu.memory_space<vmem>>) attributes {dimension_semantics = [#tpu.dimension_semantics<parallel>, #tpu.dimension_semantics<parallel>], iteration_bounds = array<i64: 4, 2>, scalar_prefetch = 0 : i64, scratch_operands = 0 : i64, tpu.core_type = #tpu.core_type<tc>, window_params = [{transform_indices = @transform_0, window_bounds = array<i64: 1, 1, 64>}, {transform_indices = @transform_1, window_bounds = array<i64: 1, 64, 1024>}, {transform_indices = @transform_2, window_bounds = array<i64: 1, 1, 1024>}]} {
    %c0 = arith.constant 0 : index
    %c0_0 = arith.constant 0 : index
    %c0_1 = arith.constant 0 : index
    %0 = vector.load %arg2[%c0, %c0_0, %c0_1] : memref<1x1x64xbf16, #tpu.memory_space<vmem>>, vector<1x1x64xbf16>
    %1 = vector.shape_cast %0 : vector<1x1x64xbf16> to vector<1x64xbf16>
    %c0_2 = arith.constant 0 : index
    %c0_3 = arith.constant 0 : index
    %c0_4 = arith.constant 0 : index
    %2 = vector.load %arg3[%c0_2, %c0_3, %c0_4] : memref<1x64x1024xbf16, #tpu.memory_space<vmem>>, vector<1x64x1024xbf16>
    %3 = vector.shape_cast %2 : vector<1x64x1024xbf16> to vector<64x1024xbf16>
    %cst = arith.constant dense<0.000000e+00> : vector<1x1024xf32>
    %4 = tpu.matmul %1, %3, %cst {dimension_numbers = #tpu.dot_dimension_numbers<[1], [0], [0], [1], [0, 0, 1, 1], [], []>} : vector<1x64xbf16>, vector<64x1024xbf16>, vector<1x1024xf32> -> vector<1x1024xf32>
    %cst_5 = arith.constant 0.000000e+00 : f32
    %5 = vector.broadcast %cst_5 : f32 to vector<1x1024xf32>
    %6 = arith.subf %5, %4 : vector<1x1024xf32>
    %7 = math.exp %6 : vector<1x1024xf32>
    %cst_6 = arith.constant 1.000000e+00 : f32
    %8 = vector.broadcast %cst_6 : f32 to vector<1x1024xf32>
    %9 = arith.addf %8, %7 : vector<1x1024xf32>
    %cst_7 = arith.constant 1.000000e+00 : f32
    %10 = vector.broadcast %cst_7 : f32 to vector<1x1024xf32>
    %11 = arith.divf %10, %9 : vector<1x1024xf32>
    %c0_8 = arith.constant 0 : index
    %c0_9 = arith.constant 0 : index
    %c0_10 = arith.constant 0 : index
    %12 = vector.load %arg4[%c0_8, %c0_9, %c0_10] : memref<1x1x1024xf32, #tpu.memory_space<vmem>>, vector<1x1x1024xf32>
    %13 = vector.shape_cast %12 : vector<1x1x1024xf32> to vector<1x1024xf32>
    %14 = vector.shape_cast %11 : vector<1x1024xf32> to vector<1x1x1024xf32>
    tpu.vector_store %arg4[%c0_8, %c0_9, %c0_10], %14 {strides = array<i32>} : memref<1x1x1024xf32, #tpu.memory_space<vmem>>, vector<1x1x1024xf32>,
    return
  }
  func.func @transform_0(%arg0: i32, %arg1: i32) -> (i32, i32, i32) {
    %c0_i32 = arith.constant 0 : i32
    %c0_i32_0 = arith.constant 0 : i32
    %c0_i32_1 = arith.constant 0 : i32
    return %arg0, %c0_i32, %c0_i32_0 : i32, i32, i32
  }
  func.func @transform_1(%arg0: i32, %arg1: i32) -> (i32, i32, i32) {
    %c0_i32 = arith.constant 0 : i32
    %c0_i32_0 = arith.constant 0 : i32
    return %arg0, %c0_i32, %arg1 : i32, i32, i32
  }
  func.func @transform_2(%arg0: i32, %arg1: i32) -> (i32, i32, i32) {
    %c0_i32 = arith.constant 0 : i32
    %c0_i32_0 = arith.constant 0 : i32
    return %arg0, %c0_i32, %arg1 : i32, i32, i32
  }
}

</mosaic_0001>

<bundles_post_ra>
// kernel: tile.33
= control target key start
LH: loop header
LB: loop body
LE: loop exit
PB: predicated region body
PF: predicated region fallthrough
CT: control target
= control target key end

     0   :  { %s22_s0 = inlined_call_operand.vmem [shape: f32[64], index: 0, kind: input, shape index: {}]   ;;  %s23_s1 = inlined_call_operand.vmem [shape: f32[2,64], index: 1, kind: output, shape index: {}]  }
   0x1   :  { %v4_v0 = vld [vmem:[%s22_s0] ss:$0 sm:$0xff] }
   0x2   :  { %5 = vst [vmem:[%s23_s1] sm:$0x3] %v4_v0 }

// kernel: decoder_forward_pallas.10
= control target key start
LH: loop header
LB: loop body
LE: loop exit
PB: predicated region body
PF: predicated region fallthrough
CT: control target
= control target key end

     0   :  { %s141_s0 = inlined_call_operand.vmem [shape: f32[32,128], index: 0, kind: input, shape index: {}]   ;;  %s142_s1 = inlined_call_operand.vmem [shape: f32[1,128], index: 1, kind: input, shape index: {}]   ;;  %s143_s2 = inlined_call_operand.vmem [shape: f32[1,128], index: 2, kind: input, shape index: {}]   ;;  %s144_s3 = inlined_call_operand.vmem [shape: bf16[32,128], index: 3, kind: output, shape index: {}]  }
   0x1   :  { %v14_v0 = vld [vmem:[%s141_s0] sm:$0xff]  ;;  %v15_v1 = vld [vmem:[%s141_s0 + $0x8] sm:$0xff]  ;;  %v16_v6 = vld [vmem:[%s141_s0 + $0x10] sm:$0xff] }
   0x2   :  { %v76_v2 = vld [vmem:[%s142_s1] ss:$0 sm:$0xff]  ;;  %v17_v7 = vld [vmem:[%s141_s0 + $0x18] sm:$0xff] }
   0x3   :  { %v25_v3 = vmul.f32 %v76_v2, %v14_v0  ;;  %v26_v4 = vmul.f32 %v76_v2, %v15_v1  ;;  %v77_v5 = vld [vmem:[%s143_s2] ss:$0 sm:$0xff]  ;;  %v27_v8 = vmul.f32 %v76_v2, %v16_v6  ;;  %v28_v9 = vmul.f32 %v76_v2, %v17_v7 }
   0x5   :  { %v36_v10 = vadd.f32 %v77_v5, %v25_v3  ;;  %v37_v11 = vadd.f32 %v77_v5, %v26_v4  ;;  %v38_v12 = vadd.f32 %v77_v5, %v27_v8  ;;  %v39_v13 = vadd.f32 %v77_v5, %v28_v9 }
   0x7   :  { %vm40_vm0 = vcmp.gt.f32.partialorder %v36_v10, 0.0  ;;  %vm41_vm1 = vcmp.gt.f32.partialorder %v37_v11, 0.0  ;;  %v44_v14 = vmul.f32 0.2, %v36_v10  ;;  %v45_v15 = vmul.f32 0.2, %v37_v11 }
   0x8   :  { %vm42_vm2 = vcmp.gt.f32.partialorder %v38_v12, 0.0  ;;  %vm43_vm3 = vcmp.gt.f32.partialorder %v39_v13, 0.0  ;;  %v46_v16 = vmul.f32 0.2, %v38_v12  ;;  %v47_v17 = vmul.f32 0.2, %v39_v13 }
   0x9   :  { %v48_v18 = vsel %vm40_vm0, %v36_v10, %v44_v14  ;;  %v49_v19 = vsel %vm41_vm1, %v37_v11, %v45_v15 }
   0xa   :  { %v89_v20 = vpack.c.bf16 %v49_v19, %v48_v18  ;;  %v50_v21 = vsel %vm42_vm2, %v38_v12, %v46_v16  ;;  %v51_v22 = vsel %vm43_vm3, %v39_v13, %v47_v17 }
   0xb   :  { %v94_v23 = vpack.c.bf16 %v51_v22, %v50_v21 }
   0xc   :  { %90 = vst [vmem:[%s144_s3] sm:$0xff] %v89_v20  }
   0xd   :  { %96 = vst [vmem:[%s144_s3 + $0x8] sm:$0xff] %v94_v23  }

// kernel: tile.34
= control target key start
LH: loop header
LB: loop body
LE: loop exit
PB: predicated region body
PF: predicated region fallthrough
CT: control target
= control target key end

     0   :  { %vm8_vm0 = vcmask 523264   ;;  %vm14_vm1 = vcmask 1048064   ;;  %s42_s0 = inlined_call_operand.vmem [shape: f32[2,64], index: 0, kind: input, shape index: {}]   ;;  %s43_s1 = inlined_call_operand.vmem [shape: f32[1,128], index: 1, kind: output, shape index: {}]  }
   0x1   :  { %v5_v0 = vld [vmem:[%s42_s0] sm:$0x3]  ;;  %s25_s0 = smov 64  }
   0x2   :  { %6 = vst [vmem:[#allocation1] sm:$0x3] %v5_v0 }
   0x9   :  { %v11_v1 = vld [vmem:[#allocation1 + $0x1] sm:$0x1]   ;;  %v7_v2 = vld [vmem:[#allocation1] sm:$0x1]  }
   0xa   :  { %12 = vrot.lane.b32.xlu0 %v11_v1, %s25_s0  ;;  %9 = vst.msk [vmem:[#allocation0] sm:$0x1] %vm8_vm0, %v7_v2  }
  0x7c   :  { %v13_v3 = vpop.permute.xlu0 %12  }
  0x7d   :  { %15 = vst.msk [vmem:[#allocation0] sm:$0x1] %vm14_vm1, %v13_v3  }
  0x84   :  { %v20_v4 = vld [vmem:[#allocation0] sm:$0x1] }
  0x85   :  { %23 = vst [vmem:[%s43_s1] sm:$0x1] %v20_v4 }

// kernel: decoder_forward_pallas.9
= control target key start
LH: loop header
LB: loop body
LE: loop exit
PB: predicated region body
PF: predicated region fallthrough
CT: control target
= control target key end

     0   :  { %v992_v0 = vmov 0.0   ;;  %vm993_vm0 = vmmov 0   ;;  %vm42_vm1 = vcmask 261120   ;;  %v994_v44 = vmov 0   ;;  %s1263_s1 = inlined_call_operand.vmem [shape: bf16[32,64], index: 1, kind: input, shape index: {}]   ;;  %s1264_s3 = inlined_call_operand.vmem [shape: bf16[64,2048], index: 3, kind: input, shape index: {}]   ;;  %s1265_s0 = inlined_call_operand.vmem [shape: bf16[2,32], index: 0, kind: input, shape index: {}]   ;;  %s1266_s2 = inlined_call_operand.vmem [shape: f32[1,64], index: 2, kind: input, shape index: {}]   ;;  %s1267_s4 = inlined_call_operand.vmem [shape: f32[2,2048], index: 4, kind: output, shape index: {}]  }
   0x1   :  { %978 = vmatprep.subr.bf16.mxu0 %v992_v0  ;;  %v990_v1 = vld [vmem:[%s1263_s1 + $0x8] sm:$0xff]   ;;  %982 = vmatprep.mubr.msk.bf16.mxu0 %vm993_vm0, %v992_v0  ;;  %v991_v2 = vld [vmem:[%s1263_s1] sm:$0xff]   ;;  %v137_v36 = vld [vmem:[%s1264_s3 + $0x190] sm:$0xff]  ;;  %vm471_vm2 = vcmask 523264  }
   0x2   :  { %979 = vmatpush3.bf16.msra.mxu0 %v990_v1  ;;  %v135_v3 = vld [vmem:[%s1264_s3 + $0x180] sm:$0xff]  ;;  %v136_v6 = vld [vmem:[%s1264_s3 + $0x188] sm:$0xff]  ;;  %v145_v37 = vld [vmem:[%s1264_s3 + $0x1d0] sm:$0xff]  ;;  %507 = vmatprep.mubr.bf16.mxu1 %v994_v44 }
   0x3   :  { %v143_v4 = vld [vmem:[%s1264_s3 + $0x1c0] sm:$0xff]  ;;  %980 = vmatprep.subr.bf16.mxu0 %v992_v0  ;;  %v144_v7 = vld [vmem:[%s1264_s3 + $0x1c8] sm:$0xff]  ;;  %v138_v38 = vld [vmem:[%s1264_s3 + $0x198] sm:$0xff]  ;;  %v956_v39 = vcombine.high %v137_v36, %v145_v37  ;;  %v955_v41 = vcombine.low %v137_v36, %v145_v37 }
   0x4   :  { %v952_v5 = vcombine.high %v135_v3, %v143_v4  ;;  %v951_v8 = vcombine.low %v135_v3, %v143_v4  ;;  %v119_v9 = vld [vmem:[%s1264_s3 + $0x100] sm:$0xff]  ;;  %v954_v10 = vcombine.high %v136_v6, %v144_v7  ;;  %v120_v12 = vld [vmem:[%s1264_s3 + $0x108] sm:$0xff]  ;;  %v953_v18 = vcombine.low %v136_v6, %v144_v7  ;;  %v146_v40 = vld [vmem:[%s1264_s3 + $0x1d8] sm:$0xff] }
   0x5   :  { %v127_v11 = vld [vmem:[%s1264_s3 + $0x140] sm:$0xff]  ;;  %v128_v13 = vld [vmem:[%s1264_s3 + $0x148] sm:$0xff]  ;;  %v957_v42 = vcombine.low %v138_v38, %v146_v40  ;;  %v958_v43 = vcombine.high %v138_v38, %v146_v40  ;;  %v121_v46 = vld [vmem:[%s1264_s3 + $0x110] sm:$0xff] }
   0x6   :  { %483 = vmatprep.subr.bf16.mxu1 %v952_v5  ;;  %v936_v14 = vcombine.high %v119_v9, %v127_v11  ;;  %v103_v15 = vld [vmem:[%s1264_s3 + $0x80] sm:$0xff]  ;;  %981 = vmatpush3.bf16.msra.mxu0 %v991_v2  ;;  %v935_v19 = vcombine.low %v119_v9, %v127_v11  ;;  %v938_v20 = vcombine.high %v120_v12, %v128_v13  ;;  %v104_v22 = vld [vmem:[%s1264_s3 + $0x88] sm:$0xff]  ;;  %v129_v48 = vld [vmem:[%s1264_s3 + $0x150] sm:$0xff] }
   0x7   :  { %v111_v16 = vld [vmem:[%s1264_s3 + $0xc0] sm:$0xff]  ;;  %484 = vmatpush1.bf16.msra.mxu1 %v951_v8  ;;  %524 = vmatprep.subr.bf16.mxu0 %v954_v10  ;;  %v112_v23 = vld [vmem:[%s1264_s3 + $0xc8] sm:$0xff]  ;;  %v937_v24 = vcombine.low %v120_v12, %v128_v13  ;;  %v122_v49 = vld [vmem:[%s1264_s3 + $0x118] sm:$0xff]  ;;  %v940_v54 = vcombine.high %v121_v46, %v129_v48  ;;  %v939_v62 = vcombine.low %v121_v46, %v129_v48 }
   0x8   :  { %v18_v17 = vld [vmem:[%s1265_s0] sm:$0x1]  ;;  %485 = vmatprep.subr.bf16.mxu1 %v936_v14  ;;  %v920_v21 = vcombine.high %v103_v15, %v111_v16  ;;  %v919_v25 = vcombine.low %v103_v15, %v111_v16  ;;  %v922_v26 = vcombine.high %v104_v22, %v112_v23  ;;  %v921_v27 = vcombine.low %v104_v22, %v112_v23  ;;  %v88_v30 = vld [vmem:[%s1264_s3 + $0x8] sm:$0xff]  ;;  %v130_v50 = vld [vmem:[%s1264_s3 + $0x158] sm:$0xff] }
   0x9   :  { %983 = vmatmul.mubr.msk.bf16.vlgmr.msra.gmra.mxu0 %vm42_vm1, %v18_v17  ;;  %v87_v28 = vld [vmem:[%s1264_s3] sm:$0xff]  ;;  %v96_v32 = vld [vmem:[%s1264_s3 + $0x48] sm:$0xff]  ;;  %v942_v55 = vcombine.high %v122_v49, %v130_v50  ;;  %v105_v56 = vld [vmem:[%s1264_s3 + $0x90] sm:$0xff]  ;;  %v941_v63 = vcombine.low %v122_v49, %v130_v50 }
   0xa   :  { %525 = vmatpush1.bf16.msra.mxu0 %v953_v18  ;;  %v95_v29 = vld [vmem:[%s1264_s3 + $0x40] sm:$0xff]  ;;  %v905_v33 = vcombine.low %v88_v30, %v96_v32  ;;  %v906_v34 = vcombine.high %v88_v30, %v96_v32  ;;  %548 = vmatprep.mubr.bf16.mxu0 %v994_v44  ;;  %v113_v58 = vld [vmem:[%s1264_s3 + $0xd0] sm:$0xff]  ;;  %v106_v59 = vld [vmem:[%s1264_s3 + $0x98] sm:$0xff] }
   0xb   :  { %486 = vmatpush1.bf16.msra.mxu1 %v935_v19  ;;  %526 = vmatprep.subr.bf16.mxu0 %v938_v20  ;;  %v904_v31 = vcombine.high %v87_v28, %v95_v29  ;;  %v903_v35 = vcombine.low %v87_v28, %v95_v29  ;;  %v899_v45 = vld [vmem:[%s1266_s2] ss:$0 sm:$0xff]  ;;  %v114_v60 = vld [vmem:[%s1264_s3 + $0xd8] sm:$0xff]  ;;  %v924_v0 = vcombine.high %v105_v56, %v113_v58  ;;  %v89_v2 = vld [vmem:[%s1264_s3 + $0x10] sm:$0xff] }
   0xc   :  { %487 = vmatprep.subr.bf16.mxu1 %v920_v21  ;;  %v926_v1 = vcombine.high %v106_v59, %v114_v60  ;;  %v97_v3 = vld [vmem:[%s1264_s3 + $0x50] sm:$0xff]  ;;  %v90_v4 = vld [vmem:[%s1264_s3 + $0x18] sm:$0xff]  ;;  %v923_v6 = vcombine.low %v105_v56, %v113_v58  ;;  %v925_v7 = vcombine.low %v106_v59, %v114_v60  ;;  %v139_v10 = vld [vmem:[%s1264_s3 + $0x1a0] sm:$0xff] }
   0xd   :  { %v98_v5 = vld [vmem:[%s1264_s3 + $0x58] sm:$0xff]  ;;  %v908_v8 = vcombine.high %v89_v2, %v97_v3  ;;  %v147_v11 = vld [vmem:[%s1264_s3 + $0x1e0] sm:$0xff]  ;;  %v140_v12 = vld [vmem:[%s1264_s3 + $0x1a8] sm:$0xff]  ;;  %v907_v14 = vcombine.low %v89_v2, %v97_v3 }
   0xe   :  { %527 = vmatpush1.bf16.msra.mxu0 %v937_v24  ;;  %v910_v9 = vcombine.high %v90_v4, %v98_v5  ;;  %v148_v13 = vld [vmem:[%s1264_s3 + $0x1e8] sm:$0xff]  ;;  %v909_v15 = vcombine.low %v90_v4, %v98_v5  ;;  %v960_v16 = vcombine.high %v139_v10, %v147_v11  ;;  %v123_v18 = vld [vmem:[%s1264_s3 + $0x120] sm:$0xff]  ;;  %v959_v22 = vcombine.low %v139_v10, %v147_v11  ;;  %v150_v46 = vld [vmem:[%s1264_s3 + $0x1f8] sm:$0xff] }
   0xf   :  { %488 = vmatpush1.bf16.msra.mxu1 %v919_v25  ;;  %528 = vmatprep.subr.bf16.mxu0 %v922_v26  ;;  %v962_v17 = vcombine.high %v140_v12, %v148_v13  ;;  %v131_v19 = vld [vmem:[%s1264_s3 + $0x160] sm:$0xff]  ;;  %v124_v20 = vld [vmem:[%s1264_s3 + $0x128] sm:$0xff]  ;;  %v961_v23 = vcombine.low %v140_v12, %v148_v13  ;;  %v109_v60 = vld [vmem:[%s1264_s3 + $0xb0] sm:$0xff] }
  0x10   :  { %489 = vmatprep.subr.bf16.mxu1 %v904_v31  ;;  %v132_v21 = vld [vmem:[%s1264_s3 + $0x168] sm:$0xff]  ;;  %v944_v24 = vcombine.high %v123_v18, %v131_v19  ;;  %v107_v26 = vld [vmem:[%s1264_s3 + $0xa0] sm:$0xff]  ;;  %v943_v30 = vcombine.low %v123_v18, %v131_v19  ;;  %v93_v4 = vld [vmem:[%s1264_s3 + $0x30] sm:$0xff] }
  0x11   :  { %v946_v25 = vcombine.high %v124_v20, %v132_v21  ;;  %v108_v28 = vld [vmem:[%s1264_s3 + $0xa8] sm:$0xff]  ;;  %v945_v31 = vcombine.low %v124_v20, %v132_v21  ;;  %v101_v5 = vld [vmem:[%s1264_s3 + $0x70] sm:$0xff] }
  0x12   :  { %529 = vmatpush1.bf16.msra.mxu0 %v921_v27  ;;  %v115_v27 = vld [vmem:[%s1264_s3 + $0xe0] sm:$0xff]  ;;  %v116_v29 = vld [vmem:[%s1264_s3 + $0xe8] sm:$0xff]  ;;  %v916_v10 = vcombine.high %v93_v4, %v101_v5  ;;  %v915_v12 = vcombine.low %v93_v4, %v101_v5 }
  0x13   :  { %530 = vmatprep.subr.bf16.mxu0 %v906_v34  ;;  %490 = vmatpush1.bf16.msra.mxu1 %v903_v35  ;;  %v928_v32 = vcombine.high %v107_v26, %v115_v27  ;;  %v91_v34 = vld [vmem:[%s1264_s3 + $0x20] sm:$0xff]  ;;  %v92_v36 = vld [vmem:[%s1264_s3 + $0x28] sm:$0xff]  ;;  %v927_v38 = vcombine.low %v107_v26, %v115_v27 }
  0x14   :  { %565 = vmatprep.subr.bf16.mxu1 %v956_v39  ;;  %v99_v35 = vld [vmem:[%s1264_s3 + $0x60] sm:$0xff]  ;;  %v100_v37 = vld [vmem:[%s1264_s3 + $0x68] sm:$0xff]  ;;  %v929_v39 = vcombine.low %v108_v28, %v116_v29 }
  0x15   :  { %v912_v40 = vcombine.high %v91_v34, %v99_v35  ;;  %v913_v48 = vcombine.low %v92_v36, %v100_v37 }
  0x16   :  { %531 = vmatpush1.bf16.msra.mxu0 %v905_v33  ;;  %v930_v33 = vcombine.high %v108_v28, %v116_v29 }
  0x17   :  { %606 = vmatprep.subr.bf16.mxu0 %v958_v43  ;;  %v149_v43 = vld [vmem:[%s1264_s3 + $0x1f0] sm:$0xff] }
  0xc9   :  { %v80_v47 = vpop.f32.mrf.mxu0 }
  0xca   :  { %v81_v51 = vadd.f32 %v899_v45, %v80_v47  ;;  %v142_v45 = vld [vmem:[%s1264_s3 + $0x1b8] sm:$0xff]  ;;  %v911_v47 = vcombine.low %v91_v34, %v99_v35 }
  0xcb   :  { %v984_v52 = vpop.f32.mrf.mxu0  ;;  %v966_v50 = vcombine.high %v142_v45, %v150_v46 }
  0xcc   :  { %v1107_v53 = vpack.c.bf16 %v81_v51, %v81_v51  ;;  %v125_v51 = vld [vmem:[%s1264_s3 + $0x130] sm:$0xff] }
  0xcd   :  { %v83_v57 = vpop.f32.mrf.mxu0  ;;  %v133_v52 = vld [vmem:[%s1264_s3 + $0x170] sm:$0xff] }
  0xce   :  { %967 = vmatmul.mubr.msk.bf16.vlgmr.msra.gmra.mxu1 %vm471_vm2, %v1107_v53  ;;  %968 = vmatmul.mubr.msk.bf16.vlgmr.msra.gmra.mxu0 %vm471_vm2, %v1107_v53  ;;  %v965_v57 = vcombine.low %v142_v45, %v150_v46  ;;  %v948_v58 = vcombine.high %v125_v51, %v133_v52 }
  0xcf   :  { %566 = vmatpush1.bf16.msra.mxu1 %v955_v41  ;;  %607 = vmatpush1.bf16.msra.mxu0 %v957_v42  ;;  %v985_v61 = vpop.f32.mrf.mxu0  ;;  %v914_v41 = vcombine.high %v92_v36, %v100_v37  ;;  %v141_v42 = vld [vmem:[%s1264_s3 + $0x1b0] sm:$0xff] }
  0xd0   :  { %567 = vmatprep.subr.bf16.mxu1 %v940_v54  ;;  %608 = vmatprep.subr.bf16.mxu0 %v942_v55  ;;  %v964_v49 = vcombine.high %v141_v42, %v149_v43  ;;  %v126_v54 = vld [vmem:[%s1264_s3 + $0x138] sm:$0xff]  ;;  %v963_v56 = vcombine.low %v141_v42, %v149_v43  ;;  %v117_v61 = vld [vmem:[%s1264_s3 + $0xf0] sm:$0xff] }
  0xd1   :  { %589 = vmatprep.mubr.bf16.mxu1 %v994_v44  ;;  %630 = vmatprep.mubr.bf16.mxu0 %v994_v44  ;;  %v134_v55 = vld [vmem:[%s1264_s3 + $0x178] sm:$0xff]  ;;  %v932_v2 = vcombine.high %v109_v60, %v117_v61 }
  0xd2   :  { %v950_v59 = vcombine.high %v126_v54, %v134_v55 }
  0xd3   :  { %568 = vmatpush1.bf16.msra.mxu1 %v939_v62  ;;  %609 = vmatpush1.bf16.msra.mxu0 %v941_v63  ;;  %v110_v62 = vld [vmem:[%s1264_s3 + $0xb8] sm:$0xff] }
  0xd4   :  { %569 = vmatprep.subr.bf16.mxu1 %v924_v0  ;;  %610 = vmatprep.subr.bf16.mxu0 %v926_v1  ;;  %v118_v63 = vld [vmem:[%s1264_s3 + $0xf8] sm:$0xff]  ;;  %v947_v0 = vcombine.low %v125_v51, %v133_v52  ;;  %v949_v1 = vcombine.low %v126_v54, %v134_v55 }
  0xd5   :  { %v934_v3 = vcombine.high %v110_v62, %v118_v63 }
  0xd7   :  { %570 = vmatpush1.bf16.msra.mxu1 %v923_v6  ;;  %611 = vmatpush1.bf16.msra.mxu0 %v925_v7  ;;  %v94_v6 = vld [vmem:[%s1264_s3 + $0x38] sm:$0xff] }
  0xd8   :  { %571 = vmatprep.subr.bf16.mxu1 %v908_v8  ;;  %612 = vmatprep.subr.bf16.mxu0 %v910_v9  ;;  %v102_v7 = vld [vmem:[%s1264_s3 + $0x78] sm:$0xff]  ;;  %v931_v8 = vcombine.low %v109_v60, %v117_v61  ;;  %v933_v9 = vcombine.low %v110_v62, %v118_v63 }
  0xd9   :  { %v918_v11 = vcombine.high %v94_v6, %v102_v7  ;;  %v917_v13 = vcombine.low %v94_v6, %v102_v7 }
  0xdb   :  { %572 = vmatpush1.bf16.msra.mxu1 %v907_v14  ;;  %613 = vmatpush1.bf16.msra.mxu0 %v909_v15  ;;  %v824_v15 = vlaneseq }
  0xdc   :  { %647 = vmatprep.subr.bf16.mxu1 %v960_v16  ;;  %688 = vmatprep.subr.bf16.mxu0 %v962_v17 }
  0xdd   :  { %v825_v17 = vshrl.u32 %v824_v15, 7 }
  0xde   :  { %969 = vmatmul.mubr.msk.bf16.vlgmr.msra.gmra.mxu1 %vm471_vm2, %v1107_v53  ;;  %970 = vmatmul.mubr.msk.bf16.vlgmr.msra.gmra.mxu0 %vm471_vm2, %v1107_v53 }
  0xdf   :  { %648 = vmatpush1.bf16.msra.mxu1 %v959_v22  ;;  %689 = vmatpush1.bf16.msra.mxu0 %v961_v23 }
  0xe0   :  { %649 = vmatprep.subr.bf16.mxu1 %v944_v24  ;;  %690 = vmatprep.subr.bf16.mxu0 %v946_v25 }
  0xe1   :  { %671 = vmatprep.mubr.bf16.mxu1 %v994_v44  ;;  %712 = vmatprep.mubr.bf16.mxu0 %v994_v44 }
  0xe3   :  { %650 = vmatpush1.bf16.msra.mxu1 %v943_v30  ;;  %691 = vmatpush1.bf16.msra.mxu0 %v945_v31 }
  0xe4   :  { %651 = vmatprep.subr.bf16.mxu1 %v928_v32  ;;  %692 = vmatprep.subr.bf16.mxu0 %v930_v33 }
  0xe7   :  { %652 = vmatpush1.bf16.msra.mxu1 %v927_v38  ;;  %693 = vmatpush1.bf16.msra.mxu0 %v929_v39 }
  0xe8   :  { %653 = vmatprep.subr.bf16.mxu1 %v912_v40  ;;  %694 = vmatprep.subr.bf16.mxu0 %v914_v41 }
  0xeb   :  { %654 = vmatpush1.bf16.msra.mxu1 %v911_v47  ;;  %695 = vmatpush1.bf16.msra.mxu0 %v913_v48 }
  0xec   :  { %729 = vmatprep.subr.bf16.mxu1 %v964_v49  ;;  %770 = vmatprep.subr.bf16.mxu0 %v966_v50 }
  0xee   :  { %971 = vmatmul.mubr.msk.bf16.vlgmr.msra.gmra.mxu1 %vm471_vm2, %v1107_v53  ;;  %972 = vmatmul.mubr.msk.bf16.vlgmr.msra.gmra.mxu0 %vm471_vm2, %v1107_v53 }
  0xef   :  { %730 = vmatpush1.bf16.msra.mxu1 %v963_v56  ;;  %771 = vmatpush1.bf16.msra.mxu0 %v965_v57 }
  0xf0   :  { %731 = vmatprep.subr.bf16.mxu1 %v948_v58  ;;  %772 = vmatprep.subr.bf16.mxu0 %v950_v59 }
  0xf1   :  { %753 = vmatprep.mubr.bf16.mxu1 %v994_v44  ;;  %794 = vmatprep.mubr.bf16.mxu0 %v994_v44  ;;  %v995_v44 = vmov 1983009808  }
  0xf2   :  { %v822_v14 = vunpack.c.l.s4 %v995_v44 }
  0xf3   :  { %732 = vmatpush1.bf16.msra.mxu1 %v947_v0  ;;  %773 = vmatpush1.bf16.msra.mxu0 %v949_v1 }
  0xf4   :  { %733 = vmatprep.subr.bf16.mxu1 %v932_v2  ;;  %774 = vmatprep.subr.bf16.mxu0 %v934_v3  ;;  %v823_v16 = vunpack.c.0.s8 %v822_v14 }
  0xf6   :  { %v826_v20 = vsub.s32 %v823_v16, %v825_v17 }
  0xf7   :  { %734 = vmatpush1.bf16.msra.mxu1 %v931_v8  ;;  %775 = vmatpush1.bf16.msra.mxu0 %v933_v9 }
  0xf8   :  { %735 = vmatprep.subr.bf16.mxu1 %v916_v10  ;;  %776 = vmatprep.subr.bf16.mxu0 %v918_v11 }
  0xfb   :  { %736 = vmatpush1.bf16.msra.mxu1 %v915_v12  ;;  %777 = vmatpush1.bf16.msra.mxu0 %v917_v13 }
  0xfe   :  { %973 = vmatmul.mubr.msk.bf16.vlgmr.msra.gmra.mxu1 %vm471_vm2, %v1107_v53  ;;  %974 = vmatmul.mubr.msk.bf16.vlgmr.msra.gmra.mxu0 %vm471_vm2, %v1107_v53 }
 0x18e   :  { %v509_v18 = vpop.f32.mrf.mxu1  ;;  %v550_v19 = vpop.f32.mrf.mxu0 }
 0x190   :  { %v511_v21 = vpop.f32.mrf.mxu1  ;;  %v552_v22 = vpop.f32.mrf.mxu0 }
 0x191   :  { %v819_v23 = vcombine.low %v509_v18, %v511_v21  ;;  %v820_v24 = vcombine.low %v550_v19, %v552_v22 }
 0x192   :  { %v513_v25 = vpop.f32.mrf.mxu1  ;;  %v554_v26 = vpop.f32.mrf.mxu0 }
 0x193   :  { %v827_v27 = vrot.slane %v819_v23, %v826_v20  ;;  %v834_v28 = vrot.slane %v820_v24, %v826_v20 }
 0x194   :  { %v514_v29 = vpop.f32.mrf.mxu1  ;;  %v555_v30 = vpop.f32.mrf.mxu0 }
 0x195   :  { %v835_v31 = vcombine.low %v827_v27, %v834_v28 }
 0x197   :  { %891 = vst [vmem:[%s1267_s4] sm:$0xff] %v835_v31 }
 0x19e   :  { %v591_v53 = vpop.f32.mrf.mxu1  ;;  %v632_v32 = vpop.f32.mrf.mxu0 }
 0x1a0   :  { %v593_v33 = vpop.f32.mrf.mxu1  ;;  %v634_v34 = vpop.f32.mrf.mxu0 }
 0x1a1   :  { %v836_v35 = vcombine.low %v591_v53, %v593_v33  ;;  %v837_v36 = vcombine.low %v632_v32, %v634_v34 }
 0x1a2   :  { %v595_v37 = vpop.f32.mrf.mxu1  ;;  %v636_v38 = vpop.f32.mrf.mxu0 }
 0x1a3   :  { %v844_v39 = vrot.slane %v836_v35, %v826_v20  ;;  %v851_v40 = vrot.slane %v837_v36, %v826_v20 }
 0x1a4   :  { %v596_v41 = vpop.f32.mrf.mxu1  ;;  %v637_v42 = vpop.f32.mrf.mxu0 }
 0x1a5   :  { %v852_v43 = vcombine.low %v844_v39, %v851_v40 }
 0x1a7   :  { %892 = vst [vmem:[%s1267_s4 + $0x8] sm:$0xff] %v852_v43 }
 0x1ae   :  { %v673_v45 = vpop.f32.mrf.mxu1  ;;  %v714_v46 = vpop.f32.mrf.mxu0 }
 0x1b0   :  { %v675_v47 = vpop.f32.mrf.mxu1  ;;  %v716_v48 = vpop.f32.mrf.mxu0 }
 0x1b1   :  { %v853_v49 = vcombine.low %v673_v45, %v675_v47  ;;  %v854_v50 = vcombine.low %v714_v46, %v716_v48 }
 0x1b2   :  { %v677_v51 = vpop.f32.mrf.mxu1  ;;  %v718_v52 = vpop.f32.mrf.mxu0 }
 0x1b3   :  { %v861_v54 = vrot.slane %v853_v49, %v826_v20  ;;  %v868_v55 = vrot.slane %v854_v50, %v826_v20 }
 0x1b4   :  { %v678_v56 = vpop.f32.mrf.mxu1  ;;  %v719_v57 = vpop.f32.mrf.mxu0 }
 0x1b5   :  { %v869_v58 = vcombine.low %v861_v54, %v868_v55 }
 0x1b7   :  { %893 = vst [vmem:[%s1267_s4 + $0x10] sm:$0xff] %v869_v58 }
 0x1be   :  { %v755_v59 = vpop.f32.mrf.mxu1  ;;  %v796_v60 = vpop.f32.mrf.mxu0 }
 0x1c0   :  { %v757_v61 = vpop.f32.mrf.mxu1  ;;  %v798_v62 = vpop.f32.mrf.mxu0 }
 0x1c1   :  { %v870_v63 = vcombine.low %v755_v59, %v757_v61  ;;  %v871_v0 = vcombine.low %v796_v60, %v798_v62 }
 0x1c2   :  { %v759_v1 = vpop.f32.mrf.mxu1  ;;  %v800_v2 = vpop.f32.mrf.mxu0 }
 0x1c3   :  { %v878_v3 = vrot.slane %v870_v63, %v826_v20  ;;  %v885_v4 = vrot.slane %v871_v0, %v826_v20 }
 0x1c4   :  { %v760_v5 = vpop.f32.mrf.mxu1  ;;  %v801_v6 = vpop.f32.mrf.mxu0 }
 0x1c5   :  { %v886_v7 = vcombine.low %v878_v3, %v885_v4 }
 0x1c7   :  { %894 = vst [vmem:[%s1267_s4 + $0x18] sm:$0xff] %v886_v7 }

// kernel: decoder_forward_pallas.11
= control target key start
LH: loop header
LB: loop body
LE: loop exit
PB: predicated region body
PF: predicated region fallthrough
CT: control target
= control target key end

     0   :  { %s1135_s15 = smov 0   ;;  %s1137_s16 = smov 0   ;;  %s1236_s0 = inlined_call_operand.vmem [shape: bf16[4,32,512], index: 0, kind: input, shape index: {}]   ;;  %s1237_s1 = inlined_call_operand.vmem [shape: bf16[4,512,64], index: 1, kind: input, shape index: {}]   ;;  %s1238_s2 = inlined_call_operand.vmem [shape: f32[4,32,64], index: 2, kind: output, shape index: {0}]   ;;  %s1239_s3 = inlined_call_operand.vmem [shape: f32[4,1,1,64], index: 3, kind: output, shape index: {1}]   ;;  %s1240_s4 = inlined_call_operand.vmem [shape: f32[4,1,1,64], index: 4, kind: output, shape index: {2}]  }
   0x1   :  { %s1139_s17 = smov 0  }
   0x2 LB: > { %s27_s18 = sadd.s32 1, %s1104_s16  ;;  %p910_p0 = scmp.ge.s32.totalorder %s1108_s17, 1  ;;  %s1108_s17 = sphi %s1139_s17, %s15_s17   ;;  %s1104_s16 = sphi %s1137_s16, %s1242_s16   ;;  %s1100_s15 = sphi %s1135_s15, %s1241_s15  }
   0x3   : > { %p29_p1 = scmp.ge.s32.totalorder %s27_s18, 4  ;;  %p203_p2 = scmp.lt.s32.totalorder %s1108_s17, 5 }
   0x5   : > { %s1244_s18 = smov (%p29_p1, %s27_s18), 0  ;;  %p204_p3 = pnand %p910_p0, %p203_p2 }
   0x6   : > { %p256_p4 = scmp.lt.s32.totalorder (!%p204_p3), %s1100_s15, 3 }
   0x7   : > { %207 = sbr.rel (%p204_p3) target bundleno = 279 (0x117), region = 28 }
   0xc   : > { %s1246_s15 = smov (!%p256_p4, %s1100_s15), 3  ;;  %vm696_vm0 = vcmask 523264   ;;  %vm714_vm1 = vcmask 516096  }
   0xd   : > { %s960_s19 = sshll.u32 %s1246_s15, 8  ;;  %s959_s23 = sshll.u32 %s1246_s15, 6 }
   0xe   : > { %s1159_s22 = scalar_lea.vmem %s1237_s1, %s960_s19  ;;  %s264_s26 = scalar_lea.vmem %s1236_s0, %s959_s23 }
   0xf   : > { %v1042_v0 = vld [vmem:[%s1159_s22 + $0x78] sm:$0xff]   ;;  %v1046_v4 = vld [vmem:[%s1159_s22 + $0x70] sm:$0xff]   ;;  %v1050_v8 = vld [vmem:[%s1159_s22 + $0x68] sm:$0xff]   ;;  %s961_s27 = sshll.u32 %s1246_s15, 5  ;;  %s286_s7 = scalar_lea.vmem %s1239_s3, %s1246_s15 }
  0x10   : > { %v1043_v1 = vld [vmem:[%s1159_s22 + $0xf8] sm:$0xff]   ;;  %962 = vmatprep.subr.bf16.mxu0 %v1042_v0  ;;  %v1047_v5 = vld [vmem:[%s1159_s22 + $0xf0] sm:$0xff]   ;;  %v1051_v9 = vld [vmem:[%s1159_s22 + $0xe8] sm:$0xff]   ;;  %s1201_s30 = scalar_lea.vmem %s1238_s2, %s961_s27  ;;  %s292_s10 = scalar_lea.vmem %s1240_s4, %s1246_s15 }
  0x11   : > { %v1044_v2 = vld [vmem:[%s1159_s22 + $0x38] sm:$0xff]   ;;  %990 = vmatprep.subr.bf16.mxu1 %v1043_v1  ;;  %v1048_v6 = vld [vmem:[%s1159_s22 + $0x30] sm:$0xff]   ;;  %v1052_v10 = vld [vmem:[%s1159_s22 + $0x28] sm:$0xff]  }
  0x12   : > { %v1045_v3 = vld [vmem:[%s1159_s22 + $0xb8] sm:$0xff]   ;;  %963 = vmatpush3.bf16.msra.mxu0 %v1044_v2  ;;  %v1049_v7 = vld [vmem:[%s1159_s22 + $0xb0] sm:$0xff]   ;;  %v1053_v11 = vld [vmem:[%s1159_s22 + $0xa8] sm:$0xff]  }
  0x13   : > { %991 = vmatpush3.bf16.msra.mxu1 %v1045_v3  ;;  %964 = vmatprep.subr.bf16.mxu0 %v1046_v4  ;;  %v1054_v12 = vld [vmem:[%s1159_s22 + $0x60] sm:$0xff]   ;;  %v1058_v16 = vld [vmem:[%s1159_s22 + $0x58] sm:$0xff]   ;;  %v1062_v20 = vld [vmem:[%s1159_s22 + $0x50] sm:$0xff]  }
  0x14   : > { %992 = vmatprep.subr.bf16.mxu1 %v1047_v5  ;;  %v1055_v13 = vld [vmem:[%s1159_s22 + $0xe0] sm:$0xff]   ;;  %v1059_v17 = vld [vmem:[%s1159_s22 + $0xd8] sm:$0xff]   ;;  %v1063_v21 = vld [vmem:[%s1159_s22 + $0xd0] sm:$0xff]  }
  0x15   : > { %v1056_v14 = vld [vmem:[%s1159_s22 + $0x20] sm:$0xff]   ;;  %v1060_v18 = vld [vmem:[%s1159_s22 + $0x18] sm:$0xff]   ;;  %v1064_v22 = vld [vmem:[%s1159_s22 + $0x10] sm:$0xff]  }
  0x16   : > { %965 = vmatpush3.bf16.msra.mxu0 %v1048_v6  ;;  %v1057_v15 = vld [vmem:[%s1159_s22 + $0xa0] sm:$0xff]   ;;  %v1061_v19 = vld [vmem:[%s1159_s22 + $0x98] sm:$0xff]   ;;  %v1065_v23 = vld [vmem:[%s1159_s22 + $0x90] sm:$0xff]  }
  0x17   : > { %993 = vmatpush3.bf16.msra.mxu1 %v1049_v7  ;;  %966 = vmatprep.subr.bf16.mxu0 %v1050_v8  ;;  %v1066_v24 = vld [vmem:[%s1159_s22 + $0x48] sm:$0xff]   ;;  %v1070_v28 = vld [vmem:[%s1159_s22 + $0x40] sm:$0xff]  }
  0x18   : > { %994 = vmatprep.subr.bf16.mxu1 %v1051_v9  ;;  %v1067_v25 = vld [vmem:[%s1159_s22 + $0xc8] sm:$0xff]   ;;  %v1071_v29 = vld [vmem:[%s1159_s22 + $0xc0] sm:$0xff]  }
  0x19   : > { %v1068_v26 = vld [vmem:[%s1159_s22 + $0x8] sm:$0xff]   ;;  %v1072_v30 = vld [vmem:[%s1159_s22] sm:$0xff]  }
  0x1a   : > { %967 = vmatpush3.bf16.msra.mxu0 %v1052_v10  ;;  %v1069_v27 = vld [vmem:[%s1159_s22 + $0x88] sm:$0xff]   ;;  %v1073_v31 = vld [vmem:[%s1159_s22 + $0x80] sm:$0xff]  }
  0x1b   : > { %995 = vmatpush3.bf16.msra.mxu1 %v1053_v11  ;;  %968 = vmatprep.subr.bf16.mxu0 %v1054_v12  ;;  %v1074_v32 = vld [vmem:[%s264_s26] ss:$16 sps:$4 sm:$0xff]   ;;  %v1076_v33 = vld [vmem:[%s264_s26 + $0x4] ss:$16 sps:$4 sm:$0xff]   ;;  %v1077_v34 = vld [vmem:[%s264_s26 + $0x8] ss:$16 sps:$4 sm:$0xff]  }
  0x1c   : > { %996 = vmatprep.subr.bf16.mxu1 %v1055_v13  ;;  %v1079_v35 = vld [vmem:[%s264_s26 + $0xc] ss:$16 sps:$4 sm:$0xff]   ;;  %630 = vmatprep.mubr.bf16.mxu0 %v1076_v33  ;;  %v1080_v36 = vld [vmem:[%s264_s26 + $0x24] ss:$16 sps:$4 sm:$0xff]   ;;  %v1084_v38 = vld [vmem:[%s264_s26 + $0x20] ss:$16 sps:$4 sm:$0xff]  }
  0x1d   : > { %679 = vmatprep.mubr.bf16.mxu1 %v1079_v35  ;;  %v1082_v37 = vld [vmem:[%s264_s26 + $0x2c] ss:$16 sps:$4 sm:$0xff]   ;;  %v1085_v39 = vld [vmem:[%s264_s26 + $0x28] ss:$16 sps:$4 sm:$0xff]  }
  0x1e   : > { %969 = vmatpush3.bf16.msra.mxu0 %v1056_v14 }
  0x1f   : > { %997 = vmatpush3.bf16.msra.mxu1 %v1057_v15  ;;  %970 = vmatprep.subr.bf16.mxu0 %v1058_v16 }
  0x20   : > { %998 = vmatprep.subr.bf16.mxu1 %v1059_v17 }
  0x22   : > { %971 = vmatpush3.bf16.msra.mxu0 %v1060_v18 }
  0x23   : > { %999 = vmatpush3.bf16.msra.mxu1 %v1061_v19  ;;  %972 = vmatprep.subr.bf16.mxu0 %v1062_v20 }
  0x24   : > { %1000 = vmatprep.subr.bf16.mxu1 %v1063_v21 }
  0x26   : > { %973 = vmatpush3.bf16.msra.mxu0 %v1064_v22 }
  0x27   : > { %1001 = vmatpush3.bf16.msra.mxu1 %v1065_v23  ;;  %974 = vmatprep.subr.bf16.mxu0 %v1066_v24 }
  0x28   : > { %1002 = vmatprep.subr.bf16.mxu1 %v1067_v25 }
  0x2a   : > { %975 = vmatpush3.bf16.msra.mxu0 %v1068_v26 }
  0x2b   : > { %1003 = vmatpush3.bf16.msra.mxu1 %v1069_v27  ;;  %976 = vmatprep.subr.bf16.mxu0 %v1070_v28 }
  0x2c   : > { %1004 = vmatprep.subr.bf16.mxu1 %v1071_v29 }
  0x2e   : > { %977 = vmatpush3.bf16.msra.mxu0 %v1072_v30 }
  0x2f   : > { %1005 = vmatpush3.bf16.msra.mxu1 %v1073_v31 }
  0x31   : > { %631 = vmatmul.mubr.bf16.vlgmr.msra.gmra.mxu0 %v1074_v32 }
  0x32   : > { %680 = vmatmul.mubr.bf16.vlgmr.msra.gmra.mxu1 %v1077_v34  ;;  %638 = vmatprep.mubr.bf16.mxu0 %v1080_v36 }
  0x33   : > { %687 = vmatprep.mubr.bf16.mxu1 %v1082_v37 }
  0x39   : > { %639 = vmatmul.mubr.bf16.gmra.mxu0 %v1084_v38 }
  0x3a   : > { %688 = vmatmul.mubr.bf16.gmra.mxu1 %v1085_v39 }
  0xf1   : > { %v978_v40 = vpop.f32.mrf.mxu0 }
  0xf2   : > { %v1006_v41 = vpop.f32.mrf.mxu1 }
  0xf3   : > { %v979_v42 = vpop.f32.mrf.mxu0 }
  0xf4   : > { %v980_v43 = vadd.f32 %v979_v42, %v978_v40  ;;  %v1007_v44 = vpop.f32.mrf.mxu1 }
  0xf5   : > { %v1008_v45 = vadd.f32 %v1007_v44, %v1006_v41  ;;  %v981_v46 = vpop.f32.mrf.mxu0 }
  0xf6   : > { %v1009_v47 = vpop.f32.mrf.mxu1 }
  0xf7   : > { %v682_v48 = vadd.f32 %v1008_v45, %v980_v43  ;;  %v982_v49 = vpop.f32.mrf.mxu0 }
  0xf8   : > { %v983_v50 = vadd.f32 %v982_v49, %v981_v46  ;;  %v1010_v51 = vpop.f32.mrf.mxu1 }
  0xf9   : > { %697 = vst.msk [vmem:[%s1201_s30] sm:$0xff] %vm696_vm0, %v682_v48  ;;  %v1011_v52 = vadd.f32 %v1010_v51, %v1009_v47  ;;  %v984_v53 = vpop.f32.mrf.mxu0  ;;  %v716_v63 = vmul.f32 %v682_v48, %v682_v48  ;;  %v701_v3 = vsel %vm696_vm0, %v682_v48, 0.0 }
  0xfa   : > { %v1012_v54 = vpop.f32.mrf.mxu1 }
  0xfb   : > { %v685_v55 = vadd.f32 %v1011_v52, %v983_v50  ;;  %v985_v56 = vpop.f32.mrf.mxu0  ;;  %v720_v11 = vsel %vm696_vm0, %v716_v63, 0.0 }
  0xfc   : > { %v986_v57 = vadd.f32 %v985_v56, %v984_v53  ;;  %v1013_v58 = vpop.f32.mrf.mxu1 }
  0xfd   : > { %698 = vst.msk [vmem:[%s1201_s30 + $0x8] sm:$0xff] %vm696_vm0, %v685_v55  ;;  %v717_v59 = vmul.f32 %v685_v55, %v685_v55  ;;  %v1014_v60 = vadd.f32 %v1013_v58, %v1012_v54  ;;  %v987_v61 = vpop.f32.mrf.mxu0  ;;  %v702_v0 = vsel %vm696_vm0, %v685_v55, 0.0 }
  0xfe   : > { %v1015_v62 = vpop.f32.mrf.mxu1  ;;  %v703_v10 = vadd.f32 %v702_v0, %v701_v3 }
  0xff   : > { %v690_v1 = vadd.f32 %v1014_v60, %v986_v57  ;;  %v988_v2 = vpop.f32.mrf.mxu0  ;;  %v721_v6 = vsel %vm696_vm0, %v717_v59, 0.0 }
 0x100   : > { %v989_v4 = vadd.f32 %v988_v2, %v987_v61  ;;  %v1016_v5 = vpop.f32.mrf.mxu1  ;;  %v722_v14 = vadd.f32 %v721_v6, %v720_v11 }
 0x101   : > { %699 = vst.msk [vmem:[%s1201_s30 + $0x10] sm:$0xff] %vm696_vm0, %v690_v1  ;;  %v704_v7 = vsel %vm696_vm0, %v690_v1, 0.0  ;;  %v718_v8 = vmul.f32 %v690_v1, %v690_v1  ;;  %v1017_v9 = vadd.f32 %v1016_v5, %v1015_v62 }
 0x102   : > { %v705_v15 = vadd.f32 %v704_v7, %v703_v10 }
 0x103   : > { %v723_v12 = vsel %vm696_vm0, %v718_v8, 0.0  ;;  %v693_v13 = vadd.f32 %v1017_v9, %v989_v4 }
 0x104   : > { %v724_v18 = vadd.f32 %v723_v12, %v722_v14 }
 0x105   : > { %700 = vst.msk [vmem:[%s1201_s30 + $0x18] sm:$0xff] %vm696_vm0, %v693_v13  ;;  %v706_v16 = vsel %vm696_vm0, %v693_v13, 0.0  ;;  %v719_v17 = vmul.f32 %v693_v13, %v693_v13 }
 0x106   : > { %v707_v19 = vadd.f32 %v706_v16, %v705_v15 }
 0x107   : > { %v725_v20 = vsel %vm696_vm0, %v719_v17, 0.0 }
 0x108   : > { %v708_v21 = vrot.slane %v707_v19, 4  ;;  %v726_v22 = vadd.f32 %v725_v20, %v724_v18 }
 0x10a   : > { %v709_v23 = vadd.f32 %v708_v21, %v707_v19  ;;  %v727_v24 = vrot.slane %v726_v22, 4 }
 0x10c   : > { %v710_v25 = vrot.slane %v709_v23, 2  ;;  %v728_v26 = vadd.f32 %v727_v24, %v726_v22 }
 0x10e   : > { %v711_v27 = vadd.f32 %v710_v25, %v709_v23  ;;  %v729_v28 = vrot.slane %v728_v26, 2 }
 0x110   : > { %v712_v29 = vrot.slane %v711_v27, 1  ;;  %v730_v30 = vadd.f32 %v729_v28, %v728_v26 }
 0x112   : > { %v713_v31 = vadd.f32 %v712_v29, %v711_v27  ;;  %v731_v32 = vrot.slane %v730_v30, 1 }
 0x114   : > { %715 = vst.msk [vmem:[%s286_s7] sm:$0x1] %vm714_vm1, %v713_v31  ;;  %v732_v33 = vadd.f32 %v731_v32, %v730_v30 }
 0x116   : > { %733 = vst.msk [vmem:[%s292_s10] sm:$0x1] %vm714_vm1, %v732_v33 }
 0x117 PF: > { %s15_s17 = sadd.s32 1, %s1108_s17   ;;  %s1241_s15 = smov %s1104_s16 }
 0x118   : > { %p12_p5 = scmp.ge.s32.totalorder %s15_s17, 6   ;;  %s1242_s16 = smov %s1244_s18 }
 0x11a   :  { %14 = sbr.rel (!%p12_p5) target bundleno = 2 (0x2), region = 85 }

// kernel: tile.43
= control target key start
LH: loop header
LB: loop body
LE: loop exit
PB: predicated region body
PF: predicated region fallthrough
CT: control target
= control target key end

     0   :  { %s22_s0 = inlined_call_operand.vmem [shape: f32[32], index: 0, kind: input, shape index: {}]   ;;  %s23_s1 = inlined_call_operand.vmem [shape: f32[4,32], index: 1, kind: output, shape index: {}]  }
   0x1   :  { %v4_v0 = vld [vmem:[%s22_s0] ss:$0 sm:$0xff] }
   0x2   :  { %5 = vst [vmem:[%s23_s1] sm:$0xf] %v4_v0 }

// kernel: tile.44
= control target key start
LH: loop header
LB: loop body
LE: loop exit
PB: predicated region body
PF: predicated region fallthrough
CT: control target
= control target key end

     0   :  { %vm8_vm0 = vcmask 261120   ;;  %s40_s8 = smov 32   ;;  %s41_s9 = smov 64   ;;  %vm14_vm1 = vcmask 1048320   ;;  %vm20_vm2 = vcmask 785920   ;;  %vm26_vm3 = vcmask 523520   ;;  %s58_s0 = inlined_call_operand.vmem [shape: f32[4,32], index: 0, kind: input, shape index: {}]   ;;  %s59_s1 = inlined_call_operand.vmem [shape: f32[1,128], index: 1, kind: output, shape index: {}]  }
   0x1   :  { %v5_v0 = vld [vmem:[%s58_s0] sm:$0xf]  ;;  %s39_s0 = smov 96  }
   0x2   :  { %6 = vst [vmem:[#allocation1] sm:$0xf] %v5_v0 }
   0x9   :  { %v11_v1 = vld [vmem:[#allocation1 + $0x3] sm:$0x1]   ;;  %v23_v2 = vld [vmem:[#allocation1 + $0x1] sm:$0x1]   ;;  %v7_v3 = vld [vmem:[#allocation1] sm:$0x1]  }
   0xa   :  { %12 = vrot.lane.b32.xlu0 %v11_v1, %s39_s0  ;;  %24 = vrot.lane.b32.xlu1 %v23_v2, %s40_s8  ;;  %v17_v4 = vld [vmem:[#allocation1 + $0x2] sm:$0x1]   ;;  %9 = vst.msk [vmem:[#allocation0] sm:$0x1] %vm8_vm0, %v7_v3  }
   0xe   :  { %18 = vrot.lane.b32.xlu0 %v17_v4, %s41_s9 }
  0x7c   :  { %v13_v5 = vpop.permute.xlu0 %12   ;;  %v25_v6 = vpop.permute.xlu1 %24  }
  0x7d   :  { %15 = vst.msk [vmem:[#allocation0] sm:$0x1] %vm14_vm1, %v13_v5  }
  0x80   :  { %v19_v7 = vpop.permute.xlu0 %18  }
  0x81   :  { %21 = vst.msk [vmem:[#allocation0] sm:$0x1] %vm20_vm2, %v19_v7  }
  0x82   :  { %27 = vst.msk [vmem:[#allocation0] sm:$0x1] %vm26_vm3, %v25_v6  }
  0x89   :  { %v32_v8 = vld [vmem:[#allocation0] sm:$0x1] }
  0x8a   :  { %35 = vst [vmem:[%s59_s1] sm:$0x1] %v32_v8 }

// kernel: decoder_forward_pallas.12
= control target key start
LH: loop header
LB: loop body
LE: loop exit
PB: predicated region body
PF: predicated region fallthrough
CT: control target
= control target key end

     0   :  { %s223_s0 = inlined_call_operand.vmem [shape: f32[64,128], index: 0, kind: input, shape index: {}]   ;;  %s224_s1 = inlined_call_operand.vmem [shape: f32[1,128], index: 1, kind: input, shape index: {}]   ;;  %s225_s2 = inlined_call_operand.vmem [shape: f32[1,128], index: 2, kind: input, shape index: {}]   ;;  %s226_s3 = inlined_call_operand.vmem [shape: bf16[64,128], index: 3, kind: output, shape index: {}]  }
   0x1   :  { %v14_v0 = vld [vmem:[%s223_s0] sm:$0xff]  ;;  %v15_v1 = vld [vmem:[%s223_s0 + $0x8] sm:$0xff]  ;;  %v16_v6 = vld [vmem:[%s223_s0 + $0x10] sm:$0xff] }
   0x2   :  { %v120_v2 = vld [vmem:[%s224_s1] ss:$0 sm:$0xff]  ;;  %v17_v7 = vld [vmem:[%s223_s0 + $0x18] sm:$0xff]  ;;  %v19_v11 = vld [vmem:[%s223_s0 + $0x28] sm:$0xff] }
   0x3   :  { %v29_v3 = vmul.f32 %v120_v2, %v14_v0  ;;  %v30_v4 = vmul.f32 %v120_v2, %v15_v1  ;;  %v121_v5 = vld [vmem:[%s225_s2] ss:$0 sm:$0xff]  ;;  %v31_v8 = vmul.f32 %v120_v2, %v16_v6  ;;  %v32_v9 = vmul.f32 %v120_v2, %v17_v7  ;;  %v20_v12 = vld [vmem:[%s223_s0 + $0x30] sm:$0xff]  ;;  %v21_v17 = vld [vmem:[%s223_s0 + $0x38] sm:$0xff] }
   0x4   :  { %v18_v10 = vld [vmem:[%s223_s0 + $0x20] sm:$0xff]  ;;  %v34_v16 = vmul.f32 %v120_v2, %v19_v11  ;;  %v35_v20 = vmul.f32 %v120_v2, %v20_v12  ;;  %v36_v21 = vmul.f32 %v120_v2, %v21_v17 }
   0x5   :  { %v44_v13 = vadd.f32 %v121_v5, %v29_v3  ;;  %v45_v14 = vadd.f32 %v121_v5, %v30_v4  ;;  %v33_v15 = vmul.f32 %v120_v2, %v18_v10  ;;  %v46_v18 = vadd.f32 %v121_v5, %v31_v8 }
   0x6   :  { %v47_v19 = vadd.f32 %v121_v5, %v32_v9  ;;  %v49_v29 = vadd.f32 %v121_v5, %v34_v16  ;;  %v50_v33 = vadd.f32 %v121_v5, %v35_v20  ;;  %v51_v37 = vadd.f32 %v121_v5, %v36_v21 }
   0x7   :  { %vm52_vm0 = vcmp.gt.f32.partialorder %v44_v13, 0.0  ;;  %vm53_vm1 = vcmp.gt.f32.partialorder %v45_v14, 0.0  ;;  %v60_v22 = vmul.f32 0.2, %v44_v13  ;;  %v61_v23 = vmul.f32 0.2, %v45_v14 }
   0x8   :  { %vm54_vm2 = vcmp.gt.f32.partialorder %v46_v18, 0.0  ;;  %vm55_vm3 = vcmp.gt.f32.partialorder %v47_v19, 0.0  ;;  %v62_v24 = vmul.f32 0.2, %v46_v18  ;;  %v63_v25 = vmul.f32 0.2, %v47_v19 }
   0x9   :  { %v68_v26 = vsel %vm52_vm0, %v44_v13, %v60_v22  ;;  %v69_v27 = vsel %vm53_vm1, %v45_v14, %v61_v23  ;;  %v48_v28 = vadd.f32 %v121_v5, %v33_v15  ;;  %vm57_vm5 = vcmp.gt.f32.partialorder %v49_v29, 0.0 }
   0xa   :  { %v141_v30 = vpack.c.bf16 %v69_v27, %v68_v26  ;;  %v70_v31 = vsel %vm54_vm2, %v46_v18, %v62_v24  ;;  %v71_v32 = vsel %vm55_vm3, %v47_v19, %v63_v25  ;;  %v65_v36 = vmul.f32 0.2, %v49_v29 }
   0xb   :  { %v146_v34 = vpack.c.bf16 %v71_v32, %v70_v31  ;;  %vm56_vm4 = vcmp.gt.f32.partialorder %v48_v28, 0.0  ;;  %v64_v35 = vmul.f32 0.2, %v48_v28  ;;  %vm58_vm6 = vcmp.gt.f32.partialorder %v50_v33, 0.0 }
   0xc   :  { %142 = vst [vmem:[%s226_s3] sm:$0xff] %v141_v30   ;;  %v66_v38 = vmul.f32 0.2, %v50_v33  ;;  %v73_v40 = vsel %vm57_vm5, %v49_v29, %v65_v36  ;;  %vm59_vm7 = vcmp.gt.f32.partialorder %v51_v37, 0.0  ;;  %v67_v41 = vmul.f32 0.2, %v51_v37 }
   0xd   :  { %158 = vst [vmem:[%s226_s3 + $0x8] sm:$0xff] %v146_v34   ;;  %v72_v39 = vsel %vm56_vm4, %v48_v28, %v64_v35 }
   0xe   :  { %v74_v42 = vsel %vm58_vm6, %v50_v33, %v66_v38  ;;  %v151_v43 = vpack.c.bf16 %v73_v40, %v72_v39  ;;  %v75_v44 = vsel %vm59_vm7, %v51_v37, %v67_v41 }
   0xf   :  { %v156_v45 = vpack.c.bf16 %v75_v44, %v74_v42 }
  0x10   :  { %159 = vst [vmem:[%s226_s3 + $0x10] sm:$0xff] %v151_v43  }
  0x11   :  { %160 = vst [vmem:[%s226_s3 + $0x18] sm:$0xff] %v156_v45  }

// kernel: decoder_forward_pallas.13
= control target key start
LH: loop header
LB: loop body
LE: loop exit
PB: predicated region body
PF: predicated region fallthrough
CT: control target
= control target key end

     0   :  { %s1138_s15 = smov 0   ;;  %s1140_s16 = smov 0   ;;  %s1328_s0 = inlined_call_operand.vmem [shape: bf16[4,128,256], index: 0, kind: input, shape index: {}]   ;;  %s1329_s1 = inlined_call_operand.vmem [shape: bf16[4,256,32], index: 1, kind: input, shape index: {}]   ;;  %s1330_s2 = inlined_call_operand.vmem [shape: f32[4,128,32], index: 2, kind: output, shape index: {0}]   ;;  %s1331_s3 = inlined_call_operand.vmem [shape: f32[4,1,1,32], index: 3, kind: output, shape index: {1}]   ;;  %s1332_s4 = inlined_call_operand.vmem [shape: f32[4,1,1,32], index: 4, kind: output, shape index: {2}]  }
   0x1   :  { %s1142_s17 = smov 0  }
   0x2 LB: > { %s27_s18 = sadd.s32 1, %s1107_s16  ;;  %p901_p0 = scmp.ge.s32.totalorder %s1111_s17, 1  ;;  %s1111_s17 = sphi %s1142_s17, %s15_s17   ;;  %s1107_s16 = sphi %s1140_s16, %s1334_s16   ;;  %s1103_s15 = sphi %s1138_s15, %s1333_s15  }
   0x3   : > { %p29_p1 = scmp.ge.s32.totalorder %s27_s18, 4  ;;  %p203_p2 = scmp.lt.s32.totalorder %s1111_s17, 5 }
   0x5   : > { %s1336_s18 = smov (%p29_p1, %s27_s18), 0  ;;  %p204_p3 = pnand %p901_p0, %p203_p2 }
   0x6   : > { %p256_p4 = scmp.lt.s32.totalorder (!%p204_p3), %s1103_s15, 3 }
   0x7   : > { %207 = sbr.rel (%p204_p3) target bundleno = 307 (0x133), region = 28 }
   0xc   : > { %s1338_s15 = smov (!%p256_p4, %s1103_s15), 3  ;;  %vm615_vm0 = vcmask 261120   ;;  %vm669_vm1 = vcmask 253952  }
   0xd   : > { %s1159_s19 = sshll.u32 %s1338_s15, 7  ;;  %s286_s5 = scalar_lea.vmem %s1331_s3, %s1338_s15 }
   0xe   : > { %s1165_s22 = scalar_lea.vmem %s1329_s1, %s1159_s19  ;;  %s1180_s25 = scalar_lea.vmem %s1328_s0, %s1159_s19 }
   0xf   : > { %v1049_v0 = vld [vmem:[%s1165_s22 + $0x78] sm:$0xff]   ;;  %v1051_v2 = vld [vmem:[%s1165_s22 + $0x70] sm:$0xff]   ;;  %v1053_v4 = vld [vmem:[%s1165_s22 + $0x68] sm:$0xff]   ;;  %s1209_s28 = scalar_lea.vmem %s1330_s2, %s1159_s19  ;;  %s292_s8 = scalar_lea.vmem %s1332_s4, %s1338_s15 }
  0x10   : > { %v1050_v1 = vld [vmem:[%s1165_s22 + $0x38] sm:$0xff]   ;;  %945 = vmatprep.subr.bf16.mxu0 %v1049_v0  ;;  %1009 = vmatprep.subr.bf16.mxu1 %v1049_v0  ;;  %v1052_v3 = vld [vmem:[%s1165_s22 + $0x30] sm:$0xff]   ;;  %v1054_v5 = vld [vmem:[%s1165_s22 + $0x28] sm:$0xff]  }
  0x11   : > { %946 = vmatpush3.bf16.msra.mxu0 %v1050_v1  ;;  %1017 = vmatpush3.bf16.msra.mxu1 %v1050_v1  ;;  %v1055_v6 = vld [vmem:[%s1165_s22 + $0x60] sm:$0xff]   ;;  %v1057_v8 = vld [vmem:[%s1165_s22 + $0x58] sm:$0xff]   ;;  %v1059_v10 = vld [vmem:[%s1165_s22 + $0x50] sm:$0xff]  }
  0x12   : > { %947 = vmatprep.subr.bf16.mxu0 %v1051_v2  ;;  %1010 = vmatprep.subr.bf16.mxu1 %v1051_v2  ;;  %v1056_v7 = vld [vmem:[%s1165_s22 + $0x20] sm:$0xff]   ;;  %v1058_v9 = vld [vmem:[%s1165_s22 + $0x18] sm:$0xff]   ;;  %v1060_v12 = vld [vmem:[%s1165_s22 + $0x10] sm:$0xff]  }
  0x13   : > { %v1067_v11 = vld [vmem:[%s1180_s25 + $0x4] ss:$8 sps:$4 sm:$0xff]   ;;  %v1065_v18 = vld [vmem:[%s1180_s25] ss:$8 sps:$4 sm:$0xff]   ;;  %v1068_v20 = vld [vmem:[%s1180_s25 + $0x14] ss:$8 sps:$4 sm:$0xff]  }
  0x14   : > { %v1073_v13 = vld [vmem:[%s1180_s25 + $0x44] ss:$8 sps:$4 sm:$0xff]   ;;  %550 = vmatprep.mubr.bf16.mxu0 %v1067_v11  ;;  %v1071_v19 = vld [vmem:[%s1180_s25 + $0x40] ss:$8 sps:$4 sm:$0xff]   ;;  %v1077_v21 = vld [vmem:[%s1180_s25 + $0x54] ss:$8 sps:$4 sm:$0xff]  }
  0x15   : > { %948 = vmatpush3.bf16.msra.mxu0 %v1052_v3  ;;  %1018 = vmatpush3.bf16.msra.mxu1 %v1052_v3  ;;  %v1061_v14 = vld [vmem:[%s1165_s22 + $0x48] sm:$0xff]   ;;  %v1063_v16 = vld [vmem:[%s1165_s22 + $0x40] sm:$0xff]   ;;  %v1070_v22 = vld [vmem:[%s1180_s25 + $0x10] ss:$8 sps:$4 sm:$0xff]  }
  0x16   : > { %949 = vmatprep.subr.bf16.mxu0 %v1053_v4  ;;  %1011 = vmatprep.subr.bf16.mxu1 %v1053_v4  ;;  %v1062_v15 = vld [vmem:[%s1165_s22 + $0x8] sm:$0xff]   ;;  %v1064_v17 = vld [vmem:[%s1165_s22] sm:$0xff]   ;;  %v1079_v23 = vld [vmem:[%s1180_s25 + $0x50] ss:$8 sps:$4 sm:$0xff]  }
  0x17   : > { %582 = vmatprep.mubr.bf16.mxu1 %v1073_v13  ;;  %v1074_v24 = vld [vmem:[%s1180_s25 + $0x24] ss:$8 sps:$4 sm:$0xff]   ;;  %v1076_v26 = vld [vmem:[%s1180_s25 + $0x20] ss:$8 sps:$4 sm:$0xff]   ;;  %v1080_v28 = vld [vmem:[%s1180_s25 + $0x34] ss:$8 sps:$4 sm:$0xff]  }
  0x18   : > { %v1083_v25 = vld [vmem:[%s1180_s25 + $0x64] ss:$8 sps:$4 sm:$0xff]   ;;  %v1085_v27 = vld [vmem:[%s1180_s25 + $0x60] ss:$8 sps:$4 sm:$0xff]   ;;  %v1086_v29 = vld [vmem:[%s1180_s25 + $0x74] ss:$8 sps:$4 sm:$0xff]  }
  0x19   : > { %950 = vmatpush3.bf16.msra.mxu0 %v1054_v5  ;;  %1019 = vmatpush3.bf16.msra.mxu1 %v1054_v5  ;;  %v1082_v30 = vld [vmem:[%s1180_s25 + $0x30] ss:$8 sps:$4 sm:$0xff]  }
  0x1a   : > { %951 = vmatprep.subr.bf16.mxu0 %v1055_v6  ;;  %1012 = vmatprep.subr.bf16.mxu1 %v1055_v6  ;;  %v1088_v31 = vld [vmem:[%s1180_s25 + $0x70] ss:$8 sps:$4 sm:$0xff]  }
  0x1d   : > { %952 = vmatpush3.bf16.msra.mxu0 %v1056_v7  ;;  %1020 = vmatpush3.bf16.msra.mxu1 %v1056_v7 }
  0x1e   : > { %953 = vmatprep.subr.bf16.mxu0 %v1057_v8  ;;  %1013 = vmatprep.subr.bf16.mxu1 %v1057_v8 }
  0x21   : > { %954 = vmatpush3.bf16.msra.mxu0 %v1058_v9  ;;  %1021 = vmatpush3.bf16.msra.mxu1 %v1058_v9 }
  0x22   : > { %955 = vmatprep.subr.bf16.mxu0 %v1059_v10  ;;  %1014 = vmatprep.subr.bf16.mxu1 %v1059_v10 }
  0x25   : > { %956 = vmatpush3.bf16.msra.mxu0 %v1060_v12  ;;  %1022 = vmatpush3.bf16.msra.mxu1 %v1060_v12 }
  0x26   : > { %957 = vmatprep.subr.bf16.mxu0 %v1061_v14  ;;  %1015 = vmatprep.subr.bf16.mxu1 %v1061_v14 }
  0x29   : > { %958 = vmatpush3.bf16.msra.mxu0 %v1062_v15  ;;  %1023 = vmatpush3.bf16.msra.mxu1 %v1062_v15 }
  0x2a   : > { %959 = vmatprep.subr.bf16.mxu0 %v1063_v16  ;;  %1016 = vmatprep.subr.bf16.mxu1 %v1063_v16 }
  0x2d   : > { %960 = vmatpush3.bf16.msra.mxu0 %v1064_v17  ;;  %1024 = vmatpush3.bf16.msra.mxu1 %v1064_v17 }
  0x30   : > { %551 = vmatmul.mubr.bf16.vlgmr.msra.gmra.mxu0 %v1065_v18  ;;  %583 = vmatmul.mubr.bf16.vlgmr.msra.gmra.mxu1 %v1071_v19 }
  0x31   : > { %558 = vmatprep.mubr.bf16.mxu0 %v1068_v20  ;;  %590 = vmatprep.mubr.bf16.mxu1 %v1077_v21 }
  0x38   : > { %559 = vmatmul.mubr.bf16.gmra.mxu0 %v1070_v22  ;;  %591 = vmatmul.mubr.bf16.gmra.mxu1 %v1079_v23 }
  0x39   : > { %566 = vmatprep.mubr.bf16.mxu0 %v1074_v24  ;;  %598 = vmatprep.mubr.bf16.mxu1 %v1083_v25 }
  0x40   : > { %567 = vmatmul.mubr.bf16.gmra.mxu0 %v1076_v26  ;;  %599 = vmatmul.mubr.bf16.gmra.mxu1 %v1085_v27 }
  0x41   : > { %574 = vmatprep.mubr.bf16.mxu0 %v1080_v28  ;;  %606 = vmatprep.mubr.bf16.mxu1 %v1086_v29 }
  0x48   : > { %575 = vmatmul.mubr.bf16.gmra.mxu0 %v1082_v30  ;;  %607 = vmatmul.mubr.bf16.gmra.mxu1 %v1088_v31 }
  0xf0   : > { %v961_v32 = vpop.f32.mrf.mxu0  ;;  %v985_v33 = vpop.f32.mrf.mxu1 }
  0xf2   : > { %v962_v34 = vpop.f32.mrf.mxu0  ;;  %v986_v35 = vpop.f32.mrf.mxu1 }
  0xf3   : > { %v963_v36 = vadd.f32 %v962_v34, %v961_v32  ;;  %v1211_v37 = vadd.f32 %v986_v35, %v985_v33 }
  0xf4   : > { %v964_v38 = vpop.f32.mrf.mxu0  ;;  %v988_v39 = vpop.f32.mrf.mxu1 }
  0xf5   : > { %616 = vst.msk [vmem:[%s1209_s28] sm:$0xff] %vm615_vm0, %v963_v36  ;;  %624 = vst.msk [vmem:[%s1209_s28 + $0x40] sm:$0xff] %vm615_vm0, %v1211_v37  ;;  %v671_v59 = vmul.f32 %v963_v36, %v963_v36  ;;  %v632_v4 = vsel %vm615_vm0, %v963_v36, 0.0 }
  0xf6   : > { %v965_v40 = vpop.f32.mrf.mxu0  ;;  %v989_v41 = vpop.f32.mrf.mxu1 }
  0xf7   : > { %v966_v42 = vadd.f32 %v965_v40, %v964_v38  ;;  %v1218_v43 = vadd.f32 %v989_v41, %v988_v39  ;;  %v687_v8 = vsel %vm615_vm0, %v671_v59, 0.0 }
  0xf8   : > { %v967_v44 = vpop.f32.mrf.mxu0  ;;  %v991_v45 = vpop.f32.mrf.mxu1 }
  0xf9   : > { %617 = vst.msk [vmem:[%s1209_s28 + $0x8] sm:$0xff] %vm615_vm0, %v966_v42  ;;  %625 = vst.msk [vmem:[%s1209_s28 + $0x48] sm:$0xff] %vm615_vm0, %v1218_v43  ;;  %v672_v58 = vmul.f32 %v966_v42, %v966_v42  ;;  %v633_v63 = vsel %vm615_vm0, %v966_v42, 0.0 }
  0xfa   : > { %v968_v46 = vpop.f32.mrf.mxu0  ;;  %v992_v47 = vpop.f32.mrf.mxu1  ;;  %v634_v9 = vadd.f32 %v633_v63, %v632_v4  ;;  %v649_v63 = vsel %vm615_vm0, %v1218_v43, 0.0 }
  0xfb   : > { %v969_v48 = vadd.f32 %v968_v46, %v967_v44  ;;  %v1225_v49 = vadd.f32 %v992_v47, %v991_v45  ;;  %v688_v5 = vsel %vm615_vm0, %v672_v58, 0.0  ;;  %v680_v58 = vmul.f32 %v1218_v43, %v1218_v43 }
  0xfc   : > { %v970_v50 = vpop.f32.mrf.mxu0  ;;  %v994_v51 = vpop.f32.mrf.mxu1  ;;  %v689_v17 = vadd.f32 %v688_v5, %v687_v8 }
  0xfd   : > { %618 = vst.msk [vmem:[%s1209_s28 + $0x10] sm:$0xff] %vm615_vm0, %v969_v48  ;;  %626 = vst.msk [vmem:[%s1209_s28 + $0x50] sm:$0xff] %vm615_vm0, %v1225_v49  ;;  %v673_v60 = vmul.f32 %v969_v48, %v969_v48  ;;  %v635_v6 = vsel %vm615_vm0, %v969_v48, 0.0  ;;  %v704_v4 = vsel %vm615_vm0, %v680_v58, 0.0 }
  0xfe   : > { %v971_v52 = vpop.f32.mrf.mxu0  ;;  %v995_v53 = vpop.f32.mrf.mxu1  ;;  %v636_v18 = vadd.f32 %v635_v6, %v634_v9 }
  0xff   : > { %v972_v54 = vadd.f32 %v971_v52, %v970_v50  ;;  %v1232_v55 = vadd.f32 %v995_v53, %v994_v51  ;;  %v690_v10 = vsel %vm615_vm0, %v673_v60, 0.0  ;;  %v679_v51 = vmul.f32 %v1211_v37, %v1211_v37 }
 0x100   : > { %v973_v56 = vpop.f32.mrf.mxu0  ;;  %v997_v57 = vpop.f32.mrf.mxu1  ;;  %v691_v24 = vadd.f32 %v690_v10, %v689_v17 }
 0x101   : > { %619 = vst.msk [vmem:[%s1209_s28 + $0x18] sm:$0xff] %vm615_vm0, %v972_v54  ;;  %627 = vst.msk [vmem:[%s1209_s28 + $0x58] sm:$0xff] %vm615_vm0, %v1232_v55  ;;  %v674_v7 = vmul.f32 %v972_v54, %v972_v54  ;;  %v637_v13 = vsel %vm615_vm0, %v972_v54, 0.0  ;;  %v682_v5 = vmul.f32 %v1232_v55, %v1232_v55  ;;  %v653_v43 = vsel %vm615_vm0, %v1232_v55, 0.0 }
 0x102   : > { %v974_v61 = vpop.f32.mrf.mxu0  ;;  %v998_v62 = vpop.f32.mrf.mxu1  ;;  %v638_v25 = vadd.f32 %v637_v13, %v636_v18 }
 0x103   : > { %v975_v0 = vadd.f32 %v974_v61, %v973_v56  ;;  %v1240_v1 = vadd.f32 %v998_v62, %v997_v57  ;;  %v692_v21 = vsel %vm615_vm0, %v674_v7, 0.0  ;;  %v647_v57 = vsel %vm615_vm0, %v1211_v37, 0.0 }
 0x104   : > { %v976_v2 = vpop.f32.mrf.mxu0  ;;  %v1000_v3 = vpop.f32.mrf.mxu1  ;;  %v693_v32 = vadd.f32 %v692_v21, %v691_v24  ;;  %v702_v62 = vsel %vm615_vm0, %v679_v51, 0.0  ;;  %v651_v37 = vsel %vm615_vm0, %v1225_v49, 0.0 }
 0x105   : > { %620 = vst.msk [vmem:[%s1209_s28 + $0x20] sm:$0xff] %vm615_vm0, %v975_v0  ;;  %628 = vst.msk [vmem:[%s1209_s28 + $0x60] sm:$0xff] %vm615_vm0, %v1240_v1  ;;  %v675_v14 = vmul.f32 %v975_v0, %v975_v0  ;;  %v639_v22 = vsel %vm615_vm0, %v975_v0, 0.0  ;;  %v681_v0 = vmul.f32 %v1225_v49, %v1225_v49  ;;  %v683_v9 = vmul.f32 %v1240_v1, %v1240_v1 }
 0x106   : > { %v977_v11 = vpop.f32.mrf.mxu0  ;;  %v1001_v12 = vpop.f32.mrf.mxu1  ;;  %v640_v33 = vadd.f32 %v639_v22, %v638_v25  ;;  %v655_v49 = vsel %vm615_vm0, %v1240_v1, 0.0 }
 0x107   : > { %v978_v15 = vadd.f32 %v977_v11, %v976_v2  ;;  %v1253_v16 = vadd.f32 %v1001_v12, %v1000_v3  ;;  %v694_v28 = vsel %vm615_vm0, %v675_v14, 0.0  ;;  %v706_v8 = vsel %vm615_vm0, %v681_v0, 0.0 }
 0x108   : > { %v979_v19 = vpop.f32.mrf.mxu0  ;;  %v1003_v20 = vpop.f32.mrf.mxu1  ;;  %v695_v40 = vadd.f32 %v694_v28, %v693_v32  ;;  %v708_v12 = vsel %vm615_vm0, %v682_v5, 0.0  ;;  %v710_v17 = vsel %vm615_vm0, %v683_v9, 0.0 }
 0x109   : > { %621 = vst.msk [vmem:[%s1209_s28 + $0x28] sm:$0xff] %vm615_vm0, %v978_v15  ;;  %v676_v23 = vmul.f32 %v978_v15, %v978_v15  ;;  %629 = vst.msk [vmem:[%s1209_s28 + $0x68] sm:$0xff] %vm615_vm0, %v1253_v16  ;;  %v641_v29 = vsel %vm615_vm0, %v978_v15, 0.0  ;;  %v684_v13 = vmul.f32 %v1253_v16, %v1253_v16  ;;  %v657_v55 = vsel %vm615_vm0, %v1253_v16, 0.0 }
 0x10a   : > { %v980_v26 = vpop.f32.mrf.mxu0  ;;  %v1004_v27 = vpop.f32.mrf.mxu1  ;;  %v642_v41 = vadd.f32 %v641_v29, %v640_v33 }
 0x10b   : > { %v981_v30 = vadd.f32 %v980_v26, %v979_v19  ;;  %v1005_v31 = vadd.f32 %v1004_v27, %v1003_v20  ;;  %v696_v36 = vsel %vm615_vm0, %v676_v23, 0.0  ;;  %v712_v21 = vsel %vm615_vm0, %v684_v13, 0.0 }
 0x10c   : > { %v982_v34 = vpop.f32.mrf.mxu0  ;;  %v1006_v35 = vpop.f32.mrf.mxu1  ;;  %v697_v48 = vadd.f32 %v696_v36, %v695_v40 }
 0x10d   : > { %622 = vst.msk [vmem:[%s1209_s28 + $0x30] sm:$0xff] %vm615_vm0, %v981_v30  ;;  %v643_v38 = vsel %vm615_vm0, %v981_v30, 0.0  ;;  %v677_v39 = vmul.f32 %v981_v30, %v981_v30  ;;  %630 = vst.msk [vmem:[%s1209_s28 + $0x70] sm:$0xff] %vm615_vm0, %v1005_v31  ;;  %v685_v18 = vmul.f32 %v1005_v31, %v1005_v31  ;;  %v659_v22 = vsel %vm615_vm0, %v1005_v31, 0.0 }
 0x10e   : > { %v983_v42 = vpop.f32.mrf.mxu0  ;;  %v1007_v44 = vpop.f32.mrf.mxu1  ;;  %v644_v50 = vadd.f32 %v643_v38, %v642_v41 }
 0x10f   : > { %v698_v45 = vsel %vm615_vm0, %v677_v39, 0.0  ;;  %v984_v46 = vadd.f32 %v983_v42, %v982_v34  ;;  %v1008_v47 = vadd.f32 %v1007_v44, %v1006_v35  ;;  %v714_v25 = vsel %vm615_vm0, %v685_v18, 0.0 }
 0x110   : > { %v699_v54 = vadd.f32 %v698_v45, %v697_v48 }
 0x111   : > { %623 = vst.msk [vmem:[%s1209_s28 + $0x38] sm:$0xff] %vm615_vm0, %v984_v46  ;;  %v645_v52 = vsel %vm615_vm0, %v984_v46, 0.0  ;;  %v678_v53 = vmul.f32 %v984_v46, %v984_v46  ;;  %631 = vst.msk [vmem:[%s1209_s28 + $0x78] sm:$0xff] %vm615_vm0, %v1008_v47  ;;  %v686_v23 = vmul.f32 %v1008_v47, %v1008_v47  ;;  %v661_v26 = vsel %vm615_vm0, %v1008_v47, 0.0 }
 0x112   : > { %v646_v56 = vadd.f32 %v645_v52, %v644_v50 }
 0x113   : > { %v700_v59 = vsel %vm615_vm0, %v678_v53, 0.0  ;;  %v716_v16 = vsel %vm615_vm0, %v686_v23, 0.0 }
 0x114   : > { %v648_v60 = vadd.f32 %v647_v57, %v646_v56  ;;  %v701_v61 = vadd.f32 %v700_v59, %v699_v54 }
 0x116   : > { %v650_v2 = vadd.f32 %v649_v63, %v648_v60  ;;  %v703_v3 = vadd.f32 %v702_v62, %v701_v61 }
 0x118   : > { %v705_v6 = vadd.f32 %v704_v4, %v703_v3  ;;  %v652_v7 = vadd.f32 %v651_v37, %v650_v2 }
 0x11a   : > { %v654_v10 = vadd.f32 %v653_v43, %v652_v7  ;;  %v707_v11 = vadd.f32 %v706_v8, %v705_v6 }
 0x11c   : > { %v656_v14 = vadd.f32 %v655_v49, %v654_v10  ;;  %v709_v15 = vadd.f32 %v708_v12, %v707_v11 }
 0x11e   : > { %v658_v19 = vadd.f32 %v657_v55, %v656_v14  ;;  %v711_v20 = vadd.f32 %v710_v17, %v709_v15 }
 0x120   : > { %v713_v24 = vadd.f32 %v712_v21, %v711_v20  ;;  %v660_v1 = vadd.f32 %v659_v22, %v658_v19 }
 0x122   : > { %v715_v27 = vadd.f32 %v714_v25, %v713_v24  ;;  %v662_v28 = vadd.f32 %v661_v26, %v660_v1 }
 0x124   : > { %v663_v29 = vrot.slane %v662_v28, 4  ;;  %v717_v30 = vadd.f32 %v716_v16, %v715_v27 }
 0x126   : > { %v664_v32 = vadd.f32 %v663_v29, %v662_v28  ;;  %v718_v33 = vrot.slane %v717_v30, 4 }
 0x128   : > { %v665_v34 = vrot.slane %v664_v32, 2  ;;  %v719_v35 = vadd.f32 %v718_v33, %v717_v30 }
 0x12a   : > { %v666_v31 = vadd.f32 %v665_v34, %v664_v32  ;;  %v720_v36 = vrot.slane %v719_v35, 2 }
 0x12c   : > { %v667_v38 = vrot.slane %v666_v31, 1  ;;  %v721_v39 = vadd.f32 %v720_v36, %v719_v35 }
 0x12e   : > { %v668_v40 = vadd.f32 %v667_v38, %v666_v31  ;;  %v722_v41 = vrot.slane %v721_v39, 1 }
 0x130   : > { %670 = vst.msk [vmem:[%s286_s5] sm:$0x1] %vm669_vm1, %v668_v40  ;;  %v723_v42 = vadd.f32 %v722_v41, %v721_v39 }
 0x132   : > { %724 = vst.msk [vmem:[%s292_s8] sm:$0x1] %vm669_vm1, %v723_v42 }
 0x133 PF: > { %s15_s17 = sadd.s32 1, %s1111_s17   ;;  %s1333_s15 = smov %s1107_s16 }
 0x134   : > { %p12_p5 = scmp.ge.s32.totalorder %s15_s17, 6   ;;  %s1334_s16 = smov %s1336_s18 }
 0x136   :  { %14 = sbr.rel (!%p12_p5) target bundleno = 2 (0x2), region = 85 }

// kernel: decoder_forward_pallas.14
= control target key start
LH: loop header
LB: loop body
LE: loop exit
PB: predicated region body
PF: predicated region fallthrough
CT: control target
= control target key end

     0   :  { %s423_s0 = inlined_call_operand.vmem [shape: f32[128,128], index: 0, kind: input, shape index: {}]   ;;  %s424_s1 = inlined_call_operand.vmem [shape: f32[1,128], index: 1, kind: input, shape index: {}]   ;;  %s425_s2 = inlined_call_operand.vmem [shape: f32[1,128], index: 2, kind: input, shape index: {}]   ;;  %s426_s3 = inlined_call_operand.vmem [shape: bf16[128,128], index: 3, kind: output, shape index: {}]  }
   0x1   :  { %v14_v0 = vld [vmem:[%s423_s0] sm:$0xff]  ;;  %v15_v1 = vld [vmem:[%s423_s0 + $0x8] sm:$0xff]  ;;  %v16_v6 = vld [vmem:[%s423_s0 + $0x10] sm:$0xff] }
   0x2   :  { %v318_v2 = vld [vmem:[%s424_s1] ss:$0 sm:$0xff]  ;;  %v17_v7 = vld [vmem:[%s423_s0 + $0x18] sm:$0xff]  ;;  %v19_v11 = vld [vmem:[%s423_s0 + $0x28] sm:$0xff] }
   0x3   :  { %v37_v3 = vmul.f32 %v318_v2, %v14_v0  ;;  %v38_v4 = vmul.f32 %v318_v2, %v15_v1  ;;  %v325_v5 = vld [vmem:[%s425_s2] ss:$0 sm:$0xff]  ;;  %v39_v8 = vmul.f32 %v318_v2, %v16_v6  ;;  %v40_v9 = vmul.f32 %v318_v2, %v17_v7  ;;  %v20_v12 = vld [vmem:[%s423_s0 + $0x30] sm:$0xff]  ;;  %v21_v17 = vld [vmem:[%s423_s0 + $0x38] sm:$0xff] }
   0x4   :  { %v18_v10 = vld [vmem:[%s423_s0 + $0x20] sm:$0xff]  ;;  %v42_v16 = vmul.f32 %v318_v2, %v19_v11  ;;  %v43_v20 = vmul.f32 %v318_v2, %v20_v12  ;;  %v44_v21 = vmul.f32 %v318_v2, %v21_v17  ;;  %v23_v35 = vld [vmem:[%s423_s0 + $0x48] sm:$0xff]  ;;  %v24_v36 = vld [vmem:[%s423_s0 + $0x50] sm:$0xff] }
   0x5   :  { %v60_v13 = vadd.f32 %v325_v5, %v37_v3  ;;  %v61_v14 = vadd.f32 %v325_v5, %v38_v4  ;;  %v41_v15 = vmul.f32 %v318_v2, %v18_v10  ;;  %v62_v18 = vadd.f32 %v325_v5, %v39_v8  ;;  %v22_v34 = vld [vmem:[%s423_s0 + $0x40] sm:$0xff]  ;;  %v25_v42 = vld [vmem:[%s423_s0 + $0x58] sm:$0xff]  ;;  %v27_v48 = vld [vmem:[%s423_s0 + $0x68] sm:$0xff] }
   0x6   :  { %v63_v19 = vadd.f32 %v325_v5, %v40_v9  ;;  %v65_v29 = vadd.f32 %v325_v5, %v42_v16  ;;  %v66_v33 = vadd.f32 %v325_v5, %v43_v20  ;;  %v67_v40 = vadd.f32 %v325_v5, %v44_v21  ;;  %v26_v47 = vld [vmem:[%s423_s0 + $0x60] sm:$0xff]  ;;  %v28_v60 = vld [vmem:[%s423_s0 + $0x70] sm:$0xff]  ;;  %v29_v7 = vld [vmem:[%s423_s0 + $0x78] sm:$0xff] }
   0x7   :  { %vm76_vm0 = vcmp.gt.f32.partialorder %v60_v13, 0.0  ;;  %vm77_vm1 = vcmp.gt.f32.partialorder %v61_v14, 0.0  ;;  %v92_v22 = vmul.f32 0.2, %v60_v13  ;;  %v93_v23 = vmul.f32 0.2, %v61_v14 }
   0x8   :  { %vm78_vm2 = vcmp.gt.f32.partialorder %v62_v18, 0.0  ;;  %vm79_vm3 = vcmp.gt.f32.partialorder %v63_v19, 0.0  ;;  %v94_v24 = vmul.f32 0.2, %v62_v18  ;;  %v95_v25 = vmul.f32 0.2, %v63_v19 }
   0x9   :  { %v108_v26 = vsel %vm76_vm0, %v60_v13, %v92_v22  ;;  %v109_v27 = vsel %vm77_vm1, %v61_v14, %v93_v23  ;;  %v64_v28 = vadd.f32 %v325_v5, %v41_v15  ;;  %vm81_vm5 = vcmp.gt.f32.partialorder %v65_v29, 0.0 }
   0xa   :  { %v245_v30 = vpack.c.bf16 %v109_v27, %v108_v26  ;;  %v110_v31 = vsel %vm78_vm2, %v62_v18, %v94_v24  ;;  %v111_v32 = vsel %vm79_vm3, %v63_v19, %v95_v25  ;;  %v97_v39 = vmul.f32 0.2, %v65_v29 }
   0xb   :  { %v250_v37 = vpack.c.bf16 %v111_v32, %v110_v31  ;;  %vm80_vm4 = vcmp.gt.f32.partialorder %v64_v28, 0.0  ;;  %v96_v38 = vmul.f32 0.2, %v64_v28  ;;  %vm82_vm6 = vcmp.gt.f32.partialorder %v66_v33, 0.0 }
   0xc   :  { %246 = vst [vmem:[%s426_s3] sm:$0xff] %v245_v30   ;;  %v98_v41 = vmul.f32 0.2, %v66_v33  ;;  %v45_v44 = vmul.f32 %v318_v2, %v22_v34  ;;  %v46_v45 = vmul.f32 %v318_v2, %v23_v35  ;;  %v47_v46 = vmul.f32 %v318_v2, %v24_v36 }
   0xd   :  { %282 = vst [vmem:[%s426_s3 + $0x8] sm:$0xff] %v250_v37   ;;  %v112_v43 = vsel %vm80_vm4, %v64_v28, %v96_v38  ;;  %v113_v49 = vsel %vm81_vm5, %v65_v29, %v97_v39  ;;  %vm83_vm7 = vcmp.gt.f32.partialorder %v67_v40, 0.0  ;;  %v99_v50 = vmul.f32 0.2, %v67_v40 }
   0xe   :  { %v114_v51 = vsel %vm82_vm6, %v66_v33, %v98_v41  ;;  %v255_v52 = vpack.c.bf16 %v113_v49, %v112_v43  ;;  %v68_v53 = vadd.f32 %v325_v5, %v45_v44  ;;  %v69_v54 = vadd.f32 %v325_v5, %v46_v45 }
   0xf   :  { %v48_v55 = vmul.f32 %v318_v2, %v25_v42  ;;  %v115_v56 = vsel %vm83_vm7, %v67_v40, %v99_v50  ;;  %v70_v57 = vadd.f32 %v325_v5, %v47_v46  ;;  %v49_v58 = vmul.f32 %v318_v2, %v26_v47 }
  0x10   :  { %v50_v59 = vmul.f32 %v318_v2, %v27_v48  ;;  %283 = vst [vmem:[%s426_s3 + $0x10] sm:$0xff] %v255_v52   ;;  %v260_v61 = vpack.c.bf16 %v115_v56, %v114_v51  ;;  %vm84_vm8 = vcmp.gt.f32.partialorder %v68_v53, 0.0  ;;  %vm85_vm9 = vcmp.gt.f32.partialorder %v69_v54, 0.0 }
  0x11   :  { %v100_v62 = vmul.f32 0.2, %v68_v53  ;;  %v101_v63 = vmul.f32 0.2, %v69_v54  ;;  %v71_v0 = vadd.f32 %v325_v5, %v48_v55  ;;  %vm86_vm10 = vcmp.gt.f32.partialorder %v70_v57, 0.0 }
  0x12   :  { %v102_v1 = vmul.f32 0.2, %v70_v57  ;;  %284 = vst [vmem:[%s426_s3 + $0x18] sm:$0xff] %v260_v61   ;;  %v72_v4 = vadd.f32 %v325_v5, %v49_v58  ;;  %v73_v6 = vadd.f32 %v325_v5, %v50_v59  ;;  %v51_v8 = vmul.f32 %v318_v2, %v28_v60 }
  0x13   :  { %v116_v3 = vsel %vm84_vm8, %v68_v53, %v100_v62  ;;  %v117_v9 = vsel %vm85_vm9, %v69_v54, %v101_v63  ;;  %vm87_vm11 = vcmp.gt.f32.partialorder %v71_v0, 0.0  ;;  %v103_v10 = vmul.f32 0.2, %v71_v0 }
  0x14   :  { %v118_v11 = vsel %vm86_vm10, %v70_v57, %v102_v1  ;;  %v265_v12 = vpack.c.bf16 %v117_v9, %v116_v3  ;;  %vm88_vm12 = vcmp.gt.f32.partialorder %v72_v4, 0.0  ;;  %vm89_vm13 = vcmp.gt.f32.partialorder %v73_v6, 0.0 }
  0x15   :  { %v104_v13 = vmul.f32 0.2, %v72_v4  ;;  %v119_v14 = vsel %vm87_vm11, %v71_v0, %v103_v10  ;;  %v105_v15 = vmul.f32 0.2, %v73_v6  ;;  %v52_v16 = vmul.f32 %v318_v2, %v29_v7 }
  0x16   :  { %v74_v17 = vadd.f32 %v325_v5, %v51_v8  ;;  %285 = vst [vmem:[%s426_s3 + $0x20] sm:$0xff] %v265_v12   ;;  %v270_v18 = vpack.c.bf16 %v119_v14, %v118_v11 }
  0x17   :  { %v120_v19 = vsel %vm88_vm12, %v72_v4, %v104_v13  ;;  %v121_v20 = vsel %vm89_vm13, %v73_v6, %v105_v15  ;;  %v75_v21 = vadd.f32 %v325_v5, %v52_v16 }
  0x18   :  { %vm90_vm14 = vcmp.gt.f32.partialorder %v74_v17, 0.0  ;;  %v106_v22 = vmul.f32 0.2, %v74_v17  ;;  %286 = vst [vmem:[%s426_s3 + $0x28] sm:$0xff] %v270_v18   ;;  %v275_v23 = vpack.c.bf16 %v121_v20, %v120_v19 }
  0x19   :  { %vm91_vm15 = vcmp.gt.f32.partialorder %v75_v21, 0.0  ;;  %v107_v2 = vmul.f32 0.2, %v75_v21 }
  0x1a   :  { %v122_v24 = vsel %vm90_vm14, %v74_v17, %v106_v22  ;;  %287 = vst [vmem:[%s426_s3 + $0x30] sm:$0xff] %v275_v23  }
  0x1b   :  { %v123_v25 = vsel %vm91_vm15, %v75_v21, %v107_v2 }
  0x1c   :  { %v280_v26 = vpack.c.bf16 %v123_v25, %v122_v24 }
  0x1e   :  { %288 = vst [vmem:[%s426_s3 + $0x38] sm:$0xff] %v280_v26  }

// kernel: tile.53
= control target key start
LH: loop header
LB: loop body
LE: loop exit
PB: predicated region body
PF: predicated region fallthrough
CT: control target
= control target key end

     0   :  { %s22_s0 = inlined_call_operand.vmem [shape: f32[16], index: 0, kind: input, shape index: {}]   ;;  %s23_s1 = inlined_call_operand.vmem [shape: f32[8,16], index: 1, kind: output, shape index: {}]  }
   0x1   :  { %v4_v0 = vld [vmem:[%s22_s0] ss:$0 sm:$0xff] }
   0x2   :  { %5 = vst [vmem:[%s23_s1] sm:$0xff] %v4_v0 }

// kernel: tile.54
= control target key start
LH: loop header
LB: loop body
LE: loop exit
PB: predicated region body
PF: predicated region fallthrough
CT: control target
= control target key end

     0   :  { %s69_s10 = smov 112   ;;  %s70_s11 = smov 80   ;;  %vm3_vm0 = vcmask 130048   ;;  %vm9_vm1 = vcmask 1048448   ;;  %vm15_vm2 = vcmask 917248   ;;  %vm21_vm3 = vcmask 786048   ;;  %s113_s0 = inlined_call_operand.vmem [shape: f32[8,16], index: 0, kind: input, shape index: {}]   ;;  %s114_s1 = inlined_call_operand.vmem [shape: f32[1,128], index: 1, kind: output, shape index: {}]  }
   0x1   :  { %v55_v0 = vld [vmem:[%s113_s0 + $0x7] sm:$0x1]   ;;  %v57_v1 = vld [vmem:[%s113_s0 + $0x5] sm:$0x1]   ;;  %v56_v2 = vld [vmem:[%s113_s0 + $0x6] sm:$0x1]  }
   0x2   :  { %7 = vrot.lane.b32.xlu0 %v55_v0, %s69_s10  ;;  %19 = vrot.lane.b32.xlu1 %v57_v1, %s70_s11  ;;  %v58_v3 = vld [vmem:[%s113_s0 + $0x4] sm:$0x1]   ;;  %v2_v4 = vld [vmem:[%s113_s0] sm:$0x1]   ;;  %s71_s18 = smov 96   ;;  %s72_s19 = smov 64  }
   0x3   :  { %4 = vst.msk [vmem:[#allocation0] sm:$0x1] %vm3_vm0, %v2_v4   ;;  %v59_v5 = vld [vmem:[%s113_s0 + $0x3] sm:$0x1]   ;;  %v60_v6 = vld [vmem:[%s113_s0 + $0x2] sm:$0x1]  }
   0x4   :  { %s73_s24 = smov 48   ;;  %s74_s25 = smov 32   ;;  %v61_v7 = vld [vmem:[%s113_s0 + $0x1] sm:$0x1]   ;;  %vm27_vm4 = vcmask 654848   ;;  %vm33_vm5 = vcmask 523648  }
   0x5   :  { %s75_s0 = smov 16   ;;  %vm39_vm6 = vcmask 392448   ;;  %vm45_vm7 = vcmask 261248  }
   0x6   :  { %13 = vrot.lane.b32.xlu0 %v56_v2, %s71_s18  ;;  %25 = vrot.lane.b32.xlu1 %v58_v3, %s72_s19 }
   0xa   :  { %31 = vrot.lane.b32.xlu0 %v59_v5, %s73_s24  ;;  %37 = vrot.lane.b32.xlu1 %v60_v6, %s74_s25 }
   0xe   :  { %43 = vrot.lane.b32.xlu0 %v61_v7, %s75_s0 }
  0x74   :  { %v8_v8 = vpop.permute.xlu0 %7   ;;  %v20_v9 = vpop.permute.xlu1 %19  }
  0x75   :  { %10 = vst.msk [vmem:[#allocation0] sm:$0x1] %vm9_vm1, %v8_v8  }
  0x78   :  { %v14_v10 = vpop.permute.xlu0 %13   ;;  %v26_v11 = vpop.permute.xlu1 %25  }
  0x79   :  { %16 = vst.msk [vmem:[#allocation0] sm:$0x1] %vm15_vm2, %v14_v10  }
  0x7a   :  { %22 = vst.msk [vmem:[#allocation0] sm:$0x1] %vm21_vm3, %v20_v9  }
  0x7b   :  { %28 = vst.msk [vmem:[#allocation0] sm:$0x1] %vm27_vm4, %v26_v11  }
  0x7c   :  { %v32_v12 = vpop.permute.xlu0 %31   ;;  %v38_v13 = vpop.permute.xlu1 %37  }
  0x7d   :  { %34 = vst.msk [vmem:[#allocation0] sm:$0x1] %vm33_vm5, %v32_v12  }
  0x7e   :  { %40 = vst.msk [vmem:[#allocation0] sm:$0x1] %vm39_vm6, %v38_v13  }
  0x80   :  { %v44_v14 = vpop.permute.xlu0 %43  }
  0x81   :  { %46 = vst.msk [vmem:[#allocation0] sm:$0x1] %vm45_vm7, %v44_v14  }
  0x88   :  { %v51_v15 = vld [vmem:[#allocation0] sm:$0x1] }
  0x89   :  { %54 = vst [vmem:[%s114_s1] sm:$0x1] %v51_v15 }

// kernel: decoder_forward_pallas.15
= control target key start
LH: loop header
LB: loop body
LE: loop exit
PB: predicated region body
PF: predicated region fallthrough
CT: control target
= control target key end

     0   :  { %s1772_s15 = smov 0   ;;  %s1774_s16 = smov 0   ;;  %s2315_s0 = inlined_call_operand.vmem [shape: bf16[4,512,128], index: 0, kind: input, shape index: {}]   ;;  %s2316_s1 = inlined_call_operand.vmem [shape: bf16[4,128,16], index: 1, kind: input, shape index: {}]   ;;  %s2317_s2 = inlined_call_operand.vmem [shape: f32[4,512,16], index: 2, kind: output, shape index: {0}]   ;;  %s2318_s3 = inlined_call_operand.vmem [shape: f32[4,1,1,16], index: 3, kind: output, shape index: {1}]   ;;  %s2319_s4 = inlined_call_operand.vmem [shape: f32[4,1,1,16], index: 4, kind: output, shape index: {2}]  }
   0x1   :  { %s1776_s17 = smov 0  }
   0x2 LB: > { %s27_s18 = sadd.s32 1, %s1741_s16  ;;  %p1471_p0 = scmp.ge.s32.totalorder %s1745_s17, 1  ;;  %s1745_s17 = sphi %s1776_s17, %s15_s17   ;;  %s1741_s16 = sphi %s1774_s16, %s2321_s16   ;;  %s1737_s15 = sphi %s1772_s15, %s2320_s15  }
   0x3   : > { %p29_p1 = scmp.ge.s32.totalorder %s27_s18, 4  ;;  %p202_p2 = scmp.lt.s32.totalorder %s1745_s17, 5 }
   0x5   : > { %s2323_s18 = smov (%p29_p1, %s27_s18), 0  ;;  %p203_p3 = pnand %p1471_p0, %p202_p2 }
   0x6   : > { %p254_p4 = scmp.lt.s32.totalorder (!%p203_p3), %s1737_s15, 3 }
   0x7   : > { %206 = sbr.rel (%p203_p3) target bundleno = 389 (0x185), region = 28 }
   0xc   : > { %s2325_s15 = smov (!%p254_p4, %s1737_s15), 3  ;;  %vm900_vm0 = vcmask 130048   ;;  %vm1098_vm1 = vcmask 122880  }
   0xd   : > { %s1521_s19 = sshll.u32 %s2325_s15, 6  ;;  %s1520_s23 = sshll.u32 %s2325_s15, 8 }
   0xe   : > { %s1796_s22 = scalar_lea.vmem %s2316_s1, %s1521_s19  ;;  %s1805_s26 = scalar_lea.vmem %s2315_s0, %s1520_s23 }
   0xf   : > { %v1683_v0 = vld [vmem:[%s1796_s22 + $0x38] sm:$0xff]   ;;  %v1684_v1 = vld [vmem:[%s1796_s22 + $0x30] sm:$0xff]   ;;  %v1685_v2 = vld [vmem:[%s1796_s22 + $0x28] sm:$0xff]   ;;  %s1522_s27 = sshll.u32 %s2325_s15, 9  ;;  %s283_s7 = scalar_lea.vmem %s2318_s3, %s2325_s15 }
  0x10   : > { %1563 = vmatprep.subr.bf16.mxu0 %v1683_v0  ;;  %1643 = vmatprep.subr.bf16.mxu1 %v1683_v0  ;;  %v1686_v3 = vld [vmem:[%s1796_s22 + $0x20] sm:$0xff]   ;;  %v1687_v5 = vld [vmem:[%s1796_s22 + $0x18] sm:$0xff]   ;;  %v1688_v6 = vld [vmem:[%s1796_s22 + $0x10] sm:$0xff]   ;;  %s1848_s30 = scalar_lea.vmem %s2317_s2, %s1522_s27  ;;  %s289_s10 = scalar_lea.vmem %s2319_s4, %s2325_s15 }
  0x11   : > { %1564 = vmatpush3.bf16.msra.mxu0 %v1683_v0  ;;  %1651 = vmatpush3.bf16.msra.mxu1 %v1683_v0  ;;  %v1691_v4 = vld [vmem:[%s1805_s26] sm:$0xff]   ;;  %v1689_v7 = vld [vmem:[%s1796_s22 + $0x8] sm:$0xff]   ;;  %v1693_v11 = vld [vmem:[%s1805_s26 + $0x10] sm:$0xff]  }
  0x12   : > { %1565 = vmatprep.subr.bf16.mxu0 %v1684_v1  ;;  %1644 = vmatprep.subr.bf16.mxu1 %v1684_v1  ;;  %v1690_v8 = vld [vmem:[%s1796_s22] sm:$0xff]   ;;  %v1692_v10 = vld [vmem:[%s1805_s26 + $0x8] sm:$0xff]   ;;  %v1709_v13 = vld [vmem:[%s1805_s26 + $0x90] sm:$0xff]  }
  0x13   : > { %1579 = vmatprep.mubr.bf16.mxu0 %v1691_v4  ;;  %v1707_v9 = vld [vmem:[%s1805_s26 + $0x80] sm:$0xff]   ;;  %v1708_v12 = vld [vmem:[%s1805_s26 + $0x88] sm:$0xff]   ;;  %v1694_v14 = vld [vmem:[%s1805_s26 + $0x18] sm:$0xff]  }
  0x14   : > { %1611 = vmatprep.mubr.bf16.mxu1 %v1707_v9  ;;  %v1695_v15 = vld [vmem:[%s1805_s26 + $0x20] sm:$0xff]   ;;  %v1710_v16 = vld [vmem:[%s1805_s26 + $0x98] sm:$0xff]   ;;  %v1696_v18 = vld [vmem:[%s1805_s26 + $0x28] sm:$0xff]  }
  0x15   : > { %1566 = vmatpush3.bf16.msra.mxu0 %v1684_v1  ;;  %1652 = vmatpush3.bf16.msra.mxu1 %v1684_v1  ;;  %v1711_v17 = vld [vmem:[%s1805_s26 + $0xa0] sm:$0xff]   ;;  %v1712_v19 = vld [vmem:[%s1805_s26 + $0xa8] sm:$0xff]   ;;  %v1697_v20 = vld [vmem:[%s1805_s26 + $0x30] sm:$0xff]  }
  0x16   : > { %1567 = vmatprep.subr.bf16.mxu0 %v1685_v2  ;;  %1645 = vmatprep.subr.bf16.mxu1 %v1685_v2  ;;  %v1713_v21 = vld [vmem:[%s1805_s26 + $0xb0] sm:$0xff]   ;;  %v1698_v22 = vld [vmem:[%s1805_s26 + $0x38] sm:$0xff]   ;;  %v1699_v24 = vld [vmem:[%s1805_s26 + $0x40] sm:$0xff]  }
  0x17   : > { %v1714_v23 = vld [vmem:[%s1805_s26 + $0xb8] sm:$0xff]   ;;  %v1715_v25 = vld [vmem:[%s1805_s26 + $0xc0] sm:$0xff]   ;;  %v1700_v26 = vld [vmem:[%s1805_s26 + $0x48] sm:$0xff]  }
  0x18   : > { %v1716_v27 = vld [vmem:[%s1805_s26 + $0xc8] sm:$0xff]   ;;  %v1701_v28 = vld [vmem:[%s1805_s26 + $0x50] sm:$0xff]   ;;  %v1702_v30 = vld [vmem:[%s1805_s26 + $0x58] sm:$0xff]  }
  0x19   : > { %1568 = vmatpush3.bf16.msra.mxu0 %v1685_v2  ;;  %1653 = vmatpush3.bf16.msra.mxu1 %v1685_v2  ;;  %v1717_v29 = vld [vmem:[%s1805_s26 + $0xd0] sm:$0xff]   ;;  %v1718_v31 = vld [vmem:[%s1805_s26 + $0xd8] sm:$0xff]   ;;  %v1703_v32 = vld [vmem:[%s1805_s26 + $0x60] sm:$0xff]  }
  0x1a   : > { %1569 = vmatprep.subr.bf16.mxu0 %v1686_v3  ;;  %1646 = vmatprep.subr.bf16.mxu1 %v1686_v3  ;;  %v1719_v33 = vld [vmem:[%s1805_s26 + $0xe0] sm:$0xff]   ;;  %v1704_v34 = vld [vmem:[%s1805_s26 + $0x68] sm:$0xff]   ;;  %v1705_v36 = vld [vmem:[%s1805_s26 + $0x70] sm:$0xff]  }
  0x1b   : > { %v1720_v35 = vld [vmem:[%s1805_s26 + $0xe8] sm:$0xff]   ;;  %v1721_v37 = vld [vmem:[%s1805_s26 + $0xf0] sm:$0xff]   ;;  %v1706_v38 = vld [vmem:[%s1805_s26 + $0x78] sm:$0xff]  }
  0x1c   : > { %v1722_v39 = vld [vmem:[%s1805_s26 + $0xf8] sm:$0xff]  }
  0x1d   : > { %1570 = vmatpush3.bf16.msra.mxu0 %v1686_v3  ;;  %1654 = vmatpush3.bf16.msra.mxu1 %v1686_v3 }
  0x1e   : > { %1571 = vmatprep.subr.bf16.mxu0 %v1687_v5  ;;  %1647 = vmatprep.subr.bf16.mxu1 %v1687_v5 }
  0x21   : > { %1572 = vmatpush3.bf16.msra.mxu0 %v1687_v5  ;;  %1655 = vmatpush3.bf16.msra.mxu1 %v1687_v5 }
  0x22   : > { %1573 = vmatprep.subr.bf16.mxu0 %v1688_v6  ;;  %1648 = vmatprep.subr.bf16.mxu1 %v1688_v6 }
  0x25   : > { %1574 = vmatpush3.bf16.msra.mxu0 %v1688_v6  ;;  %1656 = vmatpush3.bf16.msra.mxu1 %v1688_v6 }
  0x26   : > { %1575 = vmatprep.subr.bf16.mxu0 %v1689_v7  ;;  %1649 = vmatprep.subr.bf16.mxu1 %v1689_v7 }
  0x29   : > { %1576 = vmatpush3.bf16.msra.mxu0 %v1689_v7  ;;  %1657 = vmatpush3.bf16.msra.mxu1 %v1689_v7 }
  0x2a   : > { %1577 = vmatprep.subr.bf16.mxu0 %v1690_v8  ;;  %1650 = vmatprep.subr.bf16.mxu1 %v1690_v8 }
  0x2d   : > { %1578 = vmatpush3.bf16.msra.mxu0 %v1690_v8  ;;  %1658 = vmatpush3.bf16.msra.mxu1 %v1690_v8 }
  0x30   : > { %1580 = vmatmul.mubr.bf16.vlgmr.msra.gmra.mxu0 %v1692_v10  ;;  %1612 = vmatmul.mubr.bf16.vlgmr.msra.gmra.mxu1 %v1708_v12 }
  0x31   : > { %1583 = vmatprep.mubr.bf16.mxu0 %v1693_v11  ;;  %1615 = vmatprep.mubr.bf16.mxu1 %v1709_v13 }
  0x38   : > { %1584 = vmatmul.mubr.bf16.gmra.mxu0 %v1694_v14  ;;  %1616 = vmatmul.mubr.bf16.gmra.mxu1 %v1710_v16 }
  0x39   : > { %1587 = vmatprep.mubr.bf16.mxu0 %v1695_v15  ;;  %1619 = vmatprep.mubr.bf16.mxu1 %v1711_v17 }
  0x40   : > { %1588 = vmatmul.mubr.bf16.gmra.mxu0 %v1696_v18  ;;  %1620 = vmatmul.mubr.bf16.gmra.mxu1 %v1712_v19 }
  0x41   : > { %1591 = vmatprep.mubr.bf16.mxu0 %v1697_v20  ;;  %1623 = vmatprep.mubr.bf16.mxu1 %v1713_v21 }
  0x48   : > { %1592 = vmatmul.mubr.bf16.gmra.mxu0 %v1698_v22  ;;  %1624 = vmatmul.mubr.bf16.gmra.mxu1 %v1714_v23 }
  0x49   : > { %1595 = vmatprep.mubr.bf16.mxu0 %v1699_v24  ;;  %1627 = vmatprep.mubr.bf16.mxu1 %v1715_v25 }
  0x50   : > { %1596 = vmatmul.mubr.bf16.gmra.mxu0 %v1700_v26  ;;  %1628 = vmatmul.mubr.bf16.gmra.mxu1 %v1716_v27 }
  0x51   : > { %1599 = vmatprep.mubr.bf16.mxu0 %v1701_v28  ;;  %1631 = vmatprep.mubr.bf16.mxu1 %v1717_v29 }
  0x58   : > { %1600 = vmatmul.mubr.bf16.gmra.mxu0 %v1702_v30  ;;  %1632 = vmatmul.mubr.bf16.gmra.mxu1 %v1718_v31 }
  0x59   : > { %1603 = vmatprep.mubr.bf16.mxu0 %v1703_v32  ;;  %1635 = vmatprep.mubr.bf16.mxu1 %v1719_v33 }
  0x60   : > { %1604 = vmatmul.mubr.bf16.gmra.mxu0 %v1704_v34  ;;  %1636 = vmatmul.mubr.bf16.gmra.mxu1 %v1720_v35 }
  0x61   : > { %1607 = vmatprep.mubr.bf16.mxu0 %v1705_v36  ;;  %1639 = vmatprep.mubr.bf16.mxu1 %v1721_v37 }
  0x68   : > { %1608 = vmatmul.mubr.bf16.gmra.mxu0 %v1706_v38  ;;  %1640 = vmatmul.mubr.bf16.gmra.mxu1 %v1722_v39 }
  0xf0   : > { %v1581_v40 = vpop.f32.mrf.mxu0  ;;  %v1850_v41 = vpop.f32.mrf.mxu1 }
  0xf1   : > { %903 = vst.msk [vmem:[%s1848_s30 + $0x10] sm:$0xff] %vm900_vm0, %v1581_v40  ;;  %935 = vst.msk [vmem:[%s1848_s30 + $0x110] sm:$0xff] %vm900_vm0, %v1850_v41  ;;  %v1102_v49 = vmul.f32 %v1581_v40, %v1581_v40  ;;  %v968_v56 = vsel %vm900_vm0, %v1581_v40, 0.0 }
  0xf2   : > { %v645_v42 = vpop.f32.mrf.mxu0  ;;  %v1857_v43 = vpop.f32.mrf.mxu1 }
  0xf3   : > { %901 = vst.msk [vmem:[%s1848_s30] sm:$0xff] %vm900_vm0, %v645_v42  ;;  %933 = vst.msk [vmem:[%s1848_s30 + $0x100] sm:$0xff] %vm900_vm0, %v1857_v43  ;;  %v1100_v46 = vmul.f32 %v645_v42, %v645_v42  ;;  %v965_v50 = vsel %vm900_vm0, %v645_v42, 0.0  ;;  %v1167_v0 = vsel %vm900_vm0, %v1102_v49, 0.0 }
  0xf4   : > { %v1582_v44 = vpop.f32.mrf.mxu0  ;;  %v1864_v45 = vpop.f32.mrf.mxu1 }
  0xf5   : > { %904 = vst.msk [vmem:[%s1848_s30 + $0x18] sm:$0xff] %vm900_vm0, %v1582_v44  ;;  %936 = vst.msk [vmem:[%s1848_s30 + $0x118] sm:$0xff] %vm900_vm0, %v1864_v45  ;;  %v1164_v57 = vsel %vm900_vm0, %v1100_v46, 0.0  ;;  %v1103_v58 = vmul.f32 %v1582_v44, %v1582_v44  ;;  %v970_v1 = vsel %vm900_vm0, %v1582_v44, 0.0 }
  0xf6   : > { %v648_v47 = vpop.f32.mrf.mxu0  ;;  %v1871_v48 = vpop.f32.mrf.mxu1 }
  0xf7   : > { %902 = vst.msk [vmem:[%s1848_s30 + $0x8] sm:$0xff] %vm900_vm0, %v648_v47  ;;  %v966_v51 = vsel %vm900_vm0, %v648_v47, 0.0  ;;  %v1101_v52 = vmul.f32 %v648_v47, %v648_v47  ;;  %934 = vst.msk [vmem:[%s1848_s30 + $0x108] sm:$0xff] %vm900_vm0, %v1871_v48  ;;  %v1169_v7 = vsel %vm900_vm0, %v1103_v58, 0.0 }
  0xf8   : > { %v967_v53 = vadd.f32 %v966_v51, %v965_v50  ;;  %v1585_v54 = vpop.f32.mrf.mxu0  ;;  %v1880_v55 = vpop.f32.mrf.mxu1 }
  0xf9   : > { %v1165_v59 = vsel %vm900_vm0, %v1101_v52, 0.0  ;;  %907 = vst.msk [vmem:[%s1848_s30 + $0x30] sm:$0xff] %vm900_vm0, %v1585_v54  ;;  %939 = vst.msk [vmem:[%s1848_s30 + $0x130] sm:$0xff] %vm900_vm0, %v1880_v55  ;;  %v1106_v13 = vmul.f32 %v1585_v54, %v1585_v54  ;;  %v976_v21 = vsel %vm900_vm0, %v1585_v54, 0.0 }
  0xfa   : > { %v969_v60 = vadd.f32 %v968_v56, %v967_v53  ;;  %v1166_v61 = vadd.f32 %v1165_v59, %v1164_v57  ;;  %v661_v62 = vpop.f32.mrf.mxu0  ;;  %v1890_v63 = vpop.f32.mrf.mxu1 }
  0xfb   : > { %905 = vst.msk [vmem:[%s1848_s30 + $0x20] sm:$0xff] %vm900_vm0, %v661_v62  ;;  %v1104_v2 = vmul.f32 %v661_v62, %v661_v62  ;;  %937 = vst.msk [vmem:[%s1848_s30 + $0x120] sm:$0xff] %vm900_vm0, %v1890_v63  ;;  %v972_v8 = vsel %vm900_vm0, %v661_v62, 0.0  ;;  %v1175_v28 = vsel %vm900_vm0, %v1106_v13, 0.0 }
  0xfc   : > { %v1168_v3 = vadd.f32 %v1167_v0, %v1166_v61  ;;  %v971_v4 = vadd.f32 %v970_v1, %v969_v60  ;;  %v1586_v5 = vpop.f32.mrf.mxu0  ;;  %v1899_v6 = vpop.f32.mrf.mxu1 }
  0xfd   : > { %908 = vst.msk [vmem:[%s1848_s30 + $0x38] sm:$0xff] %vm900_vm0, %v1586_v5  ;;  %940 = vst.msk [vmem:[%s1848_s30 + $0x138] sm:$0xff] %vm900_vm0, %v1899_v6  ;;  %v1171_v14 = vsel %vm900_vm0, %v1104_v2, 0.0  ;;  %v1107_v22 = vmul.f32 %v1586_v5, %v1586_v5  ;;  %v978_v29 = vsel %vm900_vm0, %v1586_v5, 0.0 }
  0xfe   : > { %v973_v9 = vadd.f32 %v972_v8, %v971_v4  ;;  %v1170_v10 = vadd.f32 %v1169_v7, %v1168_v3  ;;  %v664_v11 = vpop.f32.mrf.mxu0  ;;  %v1908_v12 = vpop.f32.mrf.mxu1 }
  0xff   : > { %906 = vst.msk [vmem:[%s1848_s30 + $0x28] sm:$0xff] %vm900_vm0, %v664_v11  ;;  %v974_v15 = vsel %vm900_vm0, %v664_v11, 0.0  ;;  %v1105_v16 = vmul.f32 %v664_v11, %v664_v11  ;;  %938 = vst.msk [vmem:[%s1848_s30 + $0x128] sm:$0xff] %vm900_vm0, %v1908_v12  ;;  %v1177_v35 = vsel %vm900_vm0, %v1107_v22, 0.0 }
 0x100   : > { %v1172_v17 = vadd.f32 %v1171_v14, %v1170_v10  ;;  %v975_v18 = vadd.f32 %v974_v15, %v973_v9  ;;  %v1589_v19 = vpop.f32.mrf.mxu0  ;;  %v1917_v20 = vpop.f32.mrf.mxu1 }
 0x101   : > { %v1173_v23 = vsel %vm900_vm0, %v1105_v16, 0.0  ;;  %911 = vst.msk [vmem:[%s1848_s30 + $0x50] sm:$0xff] %vm900_vm0, %v1589_v19  ;;  %943 = vst.msk [vmem:[%s1848_s30 + $0x150] sm:$0xff] %vm900_vm0, %v1917_v20  ;;  %v1110_v42 = vmul.f32 %v1589_v19, %v1589_v19  ;;  %v984_v53 = vsel %vm900_vm0, %v1589_v19, 0.0 }
 0x102   : > { %v977_v24 = vadd.f32 %v976_v21, %v975_v18  ;;  %v1174_v25 = vadd.f32 %v1173_v23, %v1172_v17  ;;  %v677_v26 = vpop.f32.mrf.mxu0  ;;  %v1926_v27 = vpop.f32.mrf.mxu1 }
 0x103   : > { %909 = vst.msk [vmem:[%s1848_s30 + $0x40] sm:$0xff] %vm900_vm0, %v677_v26  ;;  %v1108_v30 = vmul.f32 %v677_v26, %v677_v26  ;;  %941 = vst.msk [vmem:[%s1848_s30 + $0x140] sm:$0xff] %vm900_vm0, %v1926_v27  ;;  %v980_v36 = vsel %vm900_vm0, %v677_v26, 0.0  ;;  %v1183_v61 = vsel %vm900_vm0, %v1110_v42, 0.0 }
 0x104   : > { %v1176_v31 = vadd.f32 %v1175_v28, %v1174_v25  ;;  %v979_v32 = vadd.f32 %v978_v29, %v977_v24  ;;  %v1590_v33 = vpop.f32.mrf.mxu0  ;;  %v1935_v34 = vpop.f32.mrf.mxu1 }
 0x105   : > { %912 = vst.msk [vmem:[%s1848_s30 + $0x58] sm:$0xff] %vm900_vm0, %v1590_v33  ;;  %944 = vst.msk [vmem:[%s1848_s30 + $0x158] sm:$0xff] %vm900_vm0, %v1935_v34  ;;  %v1179_v44 = vsel %vm900_vm0, %v1108_v30, 0.0  ;;  %v1111_v54 = vmul.f32 %v1590_v33, %v1590_v33  ;;  %v986_v62 = vsel %vm900_vm0, %v1590_v33, 0.0 }
 0x106   : > { %v981_v37 = vadd.f32 %v980_v36, %v979_v32  ;;  %v1178_v38 = vadd.f32 %v1177_v35, %v1176_v31  ;;  %v680_v39 = vpop.f32.mrf.mxu0  ;;  %v1944_v40 = vpop.f32.mrf.mxu1 }
 0x107   : > { %910 = vst.msk [vmem:[%s1848_s30 + $0x48] sm:$0xff] %vm900_vm0, %v680_v39  ;;  %v982_v46 = vsel %vm900_vm0, %v680_v39, 0.0  ;;  %v1109_v47 = vmul.f32 %v680_v39, %v680_v39  ;;  %942 = vst.msk [vmem:[%s1848_s30 + $0x148] sm:$0xff] %vm900_vm0, %v1944_v40  ;;  %v1185_v5 = vsel %vm900_vm0, %v1111_v54, 0.0 }
 0x108   : > { %v1180_v49 = vadd.f32 %v1179_v44, %v1178_v38  ;;  %v983_v50 = vadd.f32 %v982_v46, %v981_v37  ;;  %v1593_v51 = vpop.f32.mrf.mxu0  ;;  %v1953_v52 = vpop.f32.mrf.mxu1 }
 0x109   : > { %v1181_v56 = vsel %vm900_vm0, %v1109_v47, 0.0  ;;  %915 = vst.msk [vmem:[%s1848_s30 + $0x70] sm:$0xff] %vm900_vm0, %v1593_v51  ;;  %947 = vst.msk [vmem:[%s1848_s30 + $0x170] sm:$0xff] %vm900_vm0, %v1953_v52  ;;  %v1114_v13 = vmul.f32 %v1593_v51, %v1593_v51  ;;  %v992_v22 = vsel %vm900_vm0, %v1593_v51, 0.0 }
 0x10a   : > { %v985_v57 = vadd.f32 %v984_v53, %v983_v50  ;;  %v1182_v58 = vadd.f32 %v1181_v56, %v1180_v49  ;;  %v693_v59 = vpop.f32.mrf.mxu0  ;;  %v1962_v60 = vpop.f32.mrf.mxu1 }
 0x10b   : > { %913 = vst.msk [vmem:[%s1848_s30 + $0x60] sm:$0xff] %vm900_vm0, %v693_v59  ;;  %v1112_v0 = vmul.f32 %v693_v59, %v693_v59  ;;  %945 = vst.msk [vmem:[%s1848_s30 + $0x160] sm:$0xff] %vm900_vm0, %v1962_v60  ;;  %v988_v7 = vsel %vm900_vm0, %v693_v59, 0.0  ;;  %v1191_v30 = vsel %vm900_vm0, %v1114_v13, 0.0 }
 0x10c   : > { %v1184_v1 = vadd.f32 %v1183_v61, %v1182_v58  ;;  %v987_v2 = vadd.f32 %v986_v62, %v985_v57  ;;  %v1594_v3 = vpop.f32.mrf.mxu0  ;;  %v1971_v4 = vpop.f32.mrf.mxu1 }
 0x10d   : > { %916 = vst.msk [vmem:[%s1848_s30 + $0x78] sm:$0xff] %vm900_vm0, %v1594_v3  ;;  %948 = vst.msk [vmem:[%s1848_s30 + $0x178] sm:$0xff] %vm900_vm0, %v1971_v4  ;;  %v1187_v14 = vsel %vm900_vm0, %v1112_v0, 0.0  ;;  %v1115_v23 = vmul.f32 %v1594_v3, %v1594_v3  ;;  %v994_v31 = vsel %vm900_vm0, %v1594_v3, 0.0 }
 0x10e   : > { %v989_v8 = vadd.f32 %v988_v7, %v987_v2  ;;  %v1186_v9 = vadd.f32 %v1185_v5, %v1184_v1  ;;  %v696_v10 = vpop.f32.mrf.mxu0  ;;  %v1980_v11 = vpop.f32.mrf.mxu1 }
 0x10f   : > { %914 = vst.msk [vmem:[%s1848_s30 + $0x68] sm:$0xff] %vm900_vm0, %v696_v10  ;;  %v990_v15 = vsel %vm900_vm0, %v696_v10, 0.0  ;;  %v1113_v16 = vmul.f32 %v696_v10, %v696_v10  ;;  %946 = vst.msk [vmem:[%s1848_s30 + $0x168] sm:$0xff] %vm900_vm0, %v1980_v11  ;;  %v1193_v38 = vsel %vm900_vm0, %v1115_v23, 0.0 }
 0x110   : > { %v1188_v17 = vadd.f32 %v1187_v14, %v1186_v9  ;;  %v991_v18 = vadd.f32 %v990_v15, %v989_v8  ;;  %v1597_v19 = vpop.f32.mrf.mxu0  ;;  %v1989_v21 = vpop.f32.mrf.mxu1 }
 0x111   : > { %v1189_v24 = vsel %vm900_vm0, %v1113_v16, 0.0  ;;  %919 = vst.msk [vmem:[%s1848_s30 + $0x90] sm:$0xff] %vm900_vm0, %v1597_v19  ;;  %951 = vst.msk [vmem:[%s1848_s30 + $0x190] sm:$0xff] %vm900_vm0, %v1989_v21  ;;  %v1118_v49 = vmul.f32 %v1597_v19, %v1597_v19  ;;  %v1000_v59 = vsel %vm900_vm0, %v1597_v19, 0.0 }
 0x112   : > { %v993_v25 = vadd.f32 %v992_v22, %v991_v18  ;;  %v1190_v26 = vadd.f32 %v1189_v24, %v1188_v17  ;;  %v709_v28 = vpop.f32.mrf.mxu0  ;;  %v1998_v29 = vpop.f32.mrf.mxu1 }
 0x113   : > { %917 = vst.msk [vmem:[%s1848_s30 + $0x80] sm:$0xff] %vm900_vm0, %v709_v28  ;;  %v1116_v32 = vmul.f32 %v709_v28, %v709_v28  ;;  %949 = vst.msk [vmem:[%s1848_s30 + $0x180] sm:$0xff] %vm900_vm0, %v1998_v29  ;;  %v996_v39 = vsel %vm900_vm0, %v709_v28, 0.0  ;;  %v1199_v5 = vsel %vm900_vm0, %v1118_v49, 0.0 }
 0x114   : > { %v1192_v33 = vadd.f32 %v1191_v30, %v1190_v26  ;;  %v995_v35 = vadd.f32 %v994_v31, %v993_v25  ;;  %v1598_v36 = vpop.f32.mrf.mxu0  ;;  %v2007_v37 = vpop.f32.mrf.mxu1 }
 0x115   : > { %920 = vst.msk [vmem:[%s1848_s30 + $0x98] sm:$0xff] %vm900_vm0, %v1598_v36  ;;  %952 = vst.msk [vmem:[%s1848_s30 + $0x198] sm:$0xff] %vm900_vm0, %v2007_v37  ;;  %v1195_v50 = vsel %vm900_vm0, %v1116_v32, 0.0  ;;  %v1119_v61 = vmul.f32 %v1598_v36, %v1598_v36  ;;  %v1002_v7 = vsel %vm900_vm0, %v1598_v36, 0.0 }
 0x116   : > { %v997_v42 = vadd.f32 %v996_v39, %v995_v35  ;;  %v1194_v44 = vadd.f32 %v1193_v38, %v1192_v33  ;;  %v712_v46 = vpop.f32.mrf.mxu0  ;;  %v2016_v47 = vpop.f32.mrf.mxu1 }
 0x117   : > { %918 = vst.msk [vmem:[%s1848_s30 + $0x88] sm:$0xff] %vm900_vm0, %v712_v46  ;;  %v998_v51 = vsel %vm900_vm0, %v712_v46, 0.0  ;;  %v1117_v53 = vmul.f32 %v712_v46, %v712_v46  ;;  %950 = vst.msk [vmem:[%s1848_s30 + $0x188] sm:$0xff] %vm900_vm0, %v2016_v47  ;;  %v1201_v15 = vsel %vm900_vm0, %v1119_v61, 0.0 }
 0x118   : > { %v1196_v54 = vadd.f32 %v1195_v50, %v1194_v44  ;;  %v999_v56 = vadd.f32 %v998_v51, %v997_v42  ;;  %v1601_v57 = vpop.f32.mrf.mxu0  ;;  %v2025_v58 = vpop.f32.mrf.mxu1 }
 0x119   : > { %v1197_v62 = vsel %vm900_vm0, %v1117_v53, 0.0  ;;  %923 = vst.msk [vmem:[%s1848_s30 + $0xb0] sm:$0xff] %vm900_vm0, %v1601_v57  ;;  %955 = vst.msk [vmem:[%s1848_s30 + $0x1b0] sm:$0xff] %vm900_vm0, %v2025_v58  ;;  %v1122_v23 = vmul.f32 %v1601_v57, %v1601_v57  ;;  %v1008_v33 = vsel %vm900_vm0, %v1601_v57, 0.0 }
 0x11a   : > { %v1001_v0 = vadd.f32 %v1000_v59, %v999_v56  ;;  %v1198_v1 = vadd.f32 %v1197_v62, %v1196_v54  ;;  %v725_v2 = vpop.f32.mrf.mxu0  ;;  %v2034_v3 = vpop.f32.mrf.mxu1 }
 0x11b   : > { %921 = vst.msk [vmem:[%s1848_s30 + $0xa0] sm:$0xff] %vm900_vm0, %v725_v2  ;;  %v1120_v8 = vmul.f32 %v725_v2, %v725_v2  ;;  %953 = vst.msk [vmem:[%s1848_s30 + $0x1a0] sm:$0xff] %vm900_vm0, %v2034_v3  ;;  %v1004_v16 = vsel %vm900_vm0, %v725_v2, 0.0  ;;  %v1207_v46 = vsel %vm900_vm0, %v1122_v23, 0.0 }
 0x11c   : > { %v1200_v9 = vadd.f32 %v1199_v5, %v1198_v1  ;;  %v1003_v10 = vadd.f32 %v1002_v7, %v1001_v0  ;;  %v1602_v13 = vpop.f32.mrf.mxu0  ;;  %v2043_v14 = vpop.f32.mrf.mxu1 }
 0x11d   : > { %924 = vst.msk [vmem:[%s1848_s30 + $0xb8] sm:$0xff] %vm900_vm0, %v1602_v13  ;;  %956 = vst.msk [vmem:[%s1848_s30 + $0x1b8] sm:$0xff] %vm900_vm0, %v2043_v14  ;;  %v1203_v24 = vsel %vm900_vm0, %v1120_v8, 0.0  ;;  %v1123_v35 = vmul.f32 %v1602_v13, %v1602_v13  ;;  %v1010_v49 = vsel %vm900_vm0, %v1602_v13, 0.0 }
 0x11e   : > { %v1005_v17 = vadd.f32 %v1004_v16, %v1003_v10  ;;  %v1202_v18 = vadd.f32 %v1201_v15, %v1200_v9  ;;  %v728_v19 = vpop.f32.mrf.mxu0  ;;  %v2052_v22 = vpop.f32.mrf.mxu1 }
 0x11f   : > { %922 = vst.msk [vmem:[%s1848_s30 + $0xa8] sm:$0xff] %vm900_vm0, %v728_v19  ;;  %v1006_v25 = vsel %vm900_vm0, %v728_v19, 0.0  ;;  %v1121_v26 = vmul.f32 %v728_v19, %v728_v19  ;;  %954 = vst.msk [vmem:[%s1848_s30 + $0x1a8] sm:$0xff] %vm900_vm0, %v2052_v22  ;;  %v1209_v57 = vsel %vm900_vm0, %v1123_v35, 0.0 }
 0x120   : > { %v1204_v28 = vadd.f32 %v1203_v24, %v1202_v18  ;;  %v1007_v30 = vadd.f32 %v1006_v25, %v1005_v17  ;;  %v1605_v31 = vpop.f32.mrf.mxu0  ;;  %v2061_v32 = vpop.f32.mrf.mxu1 }
 0x121   : > { %v1205_v36 = vsel %vm900_vm0, %v1121_v26, 0.0  ;;  %927 = vst.msk [vmem:[%s1848_s30 + $0xd0] sm:$0xff] %vm900_vm0, %v1605_v31  ;;  %959 = vst.msk [vmem:[%s1848_s30 + $0x1d0] sm:$0xff] %vm900_vm0, %v2061_v32  ;;  %v1126_v2 = vmul.f32 %v1605_v31, %v1605_v31  ;;  %v1016_v16 = vsel %vm900_vm0, %v1605_v31, 0.0 }
 0x122   : > { %v1009_v38 = vadd.f32 %v1008_v33, %v1007_v30  ;;  %v1206_v39 = vadd.f32 %v1205_v36, %v1204_v28  ;;  %v741_v42 = vpop.f32.mrf.mxu0  ;;  %v2070_v44 = vpop.f32.mrf.mxu1 }
 0x123   : > { %925 = vst.msk [vmem:[%s1848_s30 + $0xc0] sm:$0xff] %vm900_vm0, %v741_v42  ;;  %v1124_v50 = vmul.f32 %v741_v42, %v741_v42  ;;  %957 = vst.msk [vmem:[%s1848_s30 + $0x1c0] sm:$0xff] %vm900_vm0, %v2070_v44  ;;  %v1012_v59 = vsel %vm900_vm0, %v741_v42, 0.0  ;;  %v1215_v26 = vsel %vm900_vm0, %v1126_v2, 0.0 }
 0x124   : > { %v1208_v51 = vadd.f32 %v1207_v46, %v1206_v39  ;;  %v1011_v53 = vadd.f32 %v1010_v49, %v1009_v38  ;;  %v1606_v54 = vpop.f32.mrf.mxu0  ;;  %v2079_v56 = vpop.f32.mrf.mxu1 }
 0x125   : > { %928 = vst.msk [vmem:[%s1848_s30 + $0xd8] sm:$0xff] %vm900_vm0, %v1606_v54  ;;  %960 = vst.msk [vmem:[%s1848_s30 + $0x1d8] sm:$0xff] %vm900_vm0, %v2079_v56  ;;  %v1211_v5 = vsel %vm900_vm0, %v1124_v50, 0.0  ;;  %v1127_v17 = vmul.f32 %v1606_v54, %v1606_v54  ;;  %v1018_v28 = vsel %vm900_vm0, %v1606_v54, 0.0 }
 0x126   : > { %v1013_v61 = vadd.f32 %v1012_v59, %v1011_v53  ;;  %v1210_v62 = vadd.f32 %v1209_v57, %v1208_v51  ;;  %v744_v0 = vpop.f32.mrf.mxu0  ;;  %v2088_v1 = vpop.f32.mrf.mxu1 }
 0x127   : > { %926 = vst.msk [vmem:[%s1848_s30 + $0xc8] sm:$0xff] %vm900_vm0, %v744_v0  ;;  %v1014_v7 = vsel %vm900_vm0, %v744_v0, 0.0  ;;  %v1125_v8 = vmul.f32 %v744_v0, %v744_v0  ;;  %958 = vst.msk [vmem:[%s1848_s30 + $0x1c8] sm:$0xff] %vm900_vm0, %v2088_v1  ;;  %v1217_v38 = vsel %vm900_vm0, %v1127_v17, 0.0 }
 0x128   : > { %v1212_v9 = vadd.f32 %v1211_v5, %v1210_v62  ;;  %v1015_v10 = vadd.f32 %v1014_v7, %v1013_v61  ;;  %v1609_v13 = vpop.f32.mrf.mxu0  ;;  %v2097_v15 = vpop.f32.mrf.mxu1 }
 0x129   : > { %v1213_v18 = vsel %vm900_vm0, %v1125_v8, 0.0  ;;  %931 = vst.msk [vmem:[%s1848_s30 + $0xf0] sm:$0xff] %vm900_vm0, %v1609_v13  ;;  %963 = vst.msk [vmem:[%s1848_s30 + $0x1f0] sm:$0xff] %vm900_vm0, %v2097_v15  ;;  %v1130_v51 = vmul.f32 %v1609_v13, %v1609_v13  ;;  %v1024_v62 = vsel %vm900_vm0, %v1609_v13, 0.0  ;;  %v1133_v13 = vmul.f32 %v1871_v48, %v1871_v48 }
 0x12a   : > { %v1017_v19 = vadd.f32 %v1016_v16, %v1015_v10  ;;  %v1214_v23 = vadd.f32 %v1213_v18, %v1212_v9  ;;  %v757_v24 = vpop.f32.mrf.mxu0  ;;  %v2106_v25 = vpop.f32.mrf.mxu1  ;;  %v1132_v10 = vmul.f32 %v1857_v43, %v1857_v43 }
 0x12b   : > { %929 = vst.msk [vmem:[%s1848_s30 + $0xe0] sm:$0xff] %vm900_vm0, %v757_v24  ;;  %v1128_v30 = vmul.f32 %v757_v24, %v757_v24  ;;  %961 = vst.msk [vmem:[%s1848_s30 + $0x1e0] sm:$0xff] %vm900_vm0, %v2106_v25  ;;  %v1020_v39 = vsel %vm900_vm0, %v757_v24, 0.0  ;;  %v1223_v8 = vsel %vm900_vm0, %v1130_v51, 0.0 }
 0x12c   : > { %v1216_v31 = vadd.f32 %v1215_v26, %v1214_v23  ;;  %v1019_v33 = vadd.f32 %v1018_v28, %v1017_v19  ;;  %v1610_v35 = vpop.f32.mrf.mxu0  ;;  %v2115_v36 = vpop.f32.mrf.mxu1  ;;  %v1028_v19 = vsel %vm900_vm0, %v1857_v43, 0.0  ;;  %v1134_v26 = vmul.f32 %v1850_v41, %v1850_v41 }
 0x12d   : > { %932 = vst.msk [vmem:[%s1848_s30 + $0xf8] sm:$0xff] %vm900_vm0, %v1610_v35  ;;  %964 = vst.msk [vmem:[%s1848_s30 + $0x1f8] sm:$0xff] %vm900_vm0, %v2115_v36  ;;  %v1219_v53 = vsel %vm900_vm0, %v1128_v30, 0.0  ;;  %v1131_v0 = vmul.f32 %v1610_v35, %v1610_v35  ;;  %v1026_v9 = vsel %vm900_vm0, %v1610_v35, 0.0  ;;  %v1227_v28 = vsel %vm900_vm0, %v1132_v10, 0.0 }
 0x12e   : > { %v1021_v42 = vadd.f32 %v1020_v39, %v1019_v33  ;;  %v1218_v46 = vadd.f32 %v1217_v38, %v1216_v31  ;;  %v760_v49 = vpop.f32.mrf.mxu0  ;;  %v2124_v50 = vpop.f32.mrf.mxu1  ;;  %v1030_v30 = vsel %vm900_vm0, %v1871_v48, 0.0  ;;  %v1032_v35 = vsel %vm900_vm0, %v1850_v41, 0.0 }
 0x12f   : > { %930 = vst.msk [vmem:[%s1848_s30 + $0xe8] sm:$0xff] %vm900_vm0, %v760_v49  ;;  %v1022_v54 = vsel %vm900_vm0, %v760_v49, 0.0  ;;  %v1129_v57 = vmul.f32 %v760_v49, %v760_v49  ;;  %962 = vst.msk [vmem:[%s1848_s30 + $0x1e8] sm:$0xff] %vm900_vm0, %v2124_v50  ;;  %v1225_v18 = vsel %vm900_vm0, %v1131_v0, 0.0  ;;  %v1135_v43 = vmul.f32 %v1864_v45, %v1864_v45 }
 0x130   : > { %v1220_v59 = vadd.f32 %v1219_v53, %v1218_v46  ;;  %v1023_v61 = vadd.f32 %v1022_v54, %v1021_v42  ;;  %v1229_v38 = vsel %vm900_vm0, %v1133_v13, 0.0  ;;  %v1231_v46 = vsel %vm900_vm0, %v1134_v26, 0.0 }
 0x131   : > { %v1221_v2 = vsel %vm900_vm0, %v1129_v57, 0.0  ;;  %v1034_v49 = vsel %vm900_vm0, %v1864_v45, 0.0  ;;  %v1136_v48 = vmul.f32 %v1890_v63, %v1890_v63  ;;  %v1233_v54 = vsel %vm900_vm0, %v1135_v43, 0.0 }
 0x132   : > { %v1025_v5 = vadd.f32 %v1024_v62, %v1023_v61  ;;  %v1222_v7 = vadd.f32 %v1221_v2, %v1220_v59  ;;  %v1036_v41 = vsel %vm900_vm0, %v1890_v63, 0.0  ;;  %v1137_v57 = vmul.f32 %v1908_v12, %v1908_v12 }
 0x133   : > { %v1138_v62 = vmul.f32 %v1880_v55, %v1880_v55  ;;  %v1235_v45 = vsel %vm900_vm0, %v1136_v48, 0.0  ;;  %v1038_v0 = vsel %vm900_vm0, %v1908_v12, 0.0  ;;  %v1139_v63 = vmul.f32 %v1899_v6, %v1899_v6 }
 0x134   : > { %v1027_v16 = vadd.f32 %v1026_v9, %v1025_v5  ;;  %v1224_v17 = vadd.f32 %v1223_v8, %v1222_v7  ;;  %v1040_v7 = vsel %vm900_vm0, %v1880_v55, 0.0  ;;  %v1237_v8 = vsel %vm900_vm0, %v1137_v57, 0.0 }
 0x135   : > { %v1140_v12 = vmul.f32 %v1926_v27, %v1926_v27  ;;  %v1241_v13 = vsel %vm900_vm0, %v1139_v63, 0.0  ;;  %v1044_v55 = vsel %vm900_vm0, %v1926_v27, 0.0  ;;  %v1143_v27 = vmul.f32 %v1935_v34, %v1935_v34 }
 0x136   : > { %v1226_v23 = vadd.f32 %v1225_v18, %v1224_v17  ;;  %v1029_v24 = vadd.f32 %v1028_v19, %v1027_v16  ;;  %v1239_v16 = vsel %vm900_vm0, %v1138_v62, 0.0  ;;  %v1042_v17 = vsel %vm900_vm0, %v1899_v6, 0.0 }
 0x137   : > { %v1243_v6 = vsel %vm900_vm0, %v1140_v12, 0.0  ;;  %v1146_v57 = vmul.f32 %v1953_v52, %v1953_v52  ;;  %v1058_v63 = vsel %vm900_vm0, %v1971_v4, 0.0 }
 0x138   : > { %v1031_v31 = vadd.f32 %v1030_v30, %v1029_v24  ;;  %v1228_v33 = vadd.f32 %v1227_v28, %v1226_v23  ;;  %v1141_v23 = vmul.f32 %v1944_v40, %v1944_v40  ;;  %v1142_v28 = vmul.f32 %v1917_v20, %v1917_v20 }
 0x139   : > { %v1046_v30 = vsel %vm900_vm0, %v1944_v40, 0.0  ;;  %v1144_v40 = vmul.f32 %v1962_v60, %v1962_v60 }
 0x13a   : > { %v1033_v39 = vadd.f32 %v1032_v35, %v1031_v31  ;;  %v1230_v42 = vadd.f32 %v1229_v38, %v1228_v33  ;;  %v1048_v35 = vsel %vm900_vm0, %v1917_v20, 0.0  ;;  %v1245_v43 = vsel %vm900_vm0, %v1141_v23, 0.0 }
 0x13b   : > { %v1052_v20 = vsel %vm900_vm0, %v1962_v60, 0.0  ;;  %v1147_v60 = vmul.f32 %v1971_v4, %v1971_v4  ;;  %v1064_v23 = vsel %vm900_vm0, %v1989_v21, 0.0 }
 0x13c   : > { %v1232_v51 = vadd.f32 %v1231_v46, %v1230_v42  ;;  %v1035_v53 = vadd.f32 %v1034_v49, %v1033_v39  ;;  %v1247_v42 = vsel %vm900_vm0, %v1142_v28, 0.0  ;;  %v1050_v46 = vsel %vm900_vm0, %v1935_v34, 0.0 }
 0x13d   : > { %v1251_v34 = vsel %vm900_vm0, %v1144_v40, 0.0 }
 0x13e   : > { %v1037_v59 = vadd.f32 %v1036_v41, %v1035_v53  ;;  %v1234_v61 = vadd.f32 %v1233_v54, %v1232_v51  ;;  %v1249_v51 = vsel %vm900_vm0, %v1143_v27, 0.0  ;;  %v1145_v53 = vmul.f32 %v1980_v11, %v1980_v11 }
 0x13f   : > { %v1153_v27 = vmul.f32 %v2052_v22, %v2052_v22 }
 0x140   : > { %v1236_v2 = vadd.f32 %v1235_v45, %v1234_v61  ;;  %v1039_v5 = vadd.f32 %v1038_v0, %v1037_v59  ;;  %v1054_v59 = vsel %vm900_vm0, %v1980_v11, 0.0  ;;  %v1056_v45 = vsel %vm900_vm0, %v1953_v52, 0.0 }
 0x141   : > { %v1253_v0 = vsel %vm900_vm0, %v1145_v53, 0.0  ;;  %v1148_v11 = vmul.f32 %v1998_v29, %v1998_v29  ;;  %v1060_v52 = vsel %vm900_vm0, %v1998_v29, 0.0  ;;  %v1151_v29 = vmul.f32 %v2007_v37, %v2007_v37 }
 0x142   : > { %v1041_v9 = vadd.f32 %v1040_v7, %v1039_v5  ;;  %v1238_v10 = vadd.f32 %v1237_v8, %v1236_v2  ;;  %v1255_v7 = vsel %vm900_vm0, %v1146_v57, 0.0 }
 0x143   : > { %v1259_v4 = vsel %vm900_vm0, %v1148_v11, 0.0 }
 0x144   : > { %v1240_v18 = vadd.f32 %v1239_v16, %v1238_v10  ;;  %v1043_v19 = vadd.f32 %v1042_v17, %v1041_v9  ;;  %v1257_v10 = vsel %vm900_vm0, %v1147_v60, 0.0  ;;  %v1149_v16 = vmul.f32 %v2016_v47, %v2016_v47 }
 0x145   : > { %v1078_v60 = vsel %vm900_vm0, %v2088_v1, 0.0 }
 0x146   : > { %v1045_v24 = vadd.f32 %v1044_v55, %v1043_v19  ;;  %v1242_v26 = vadd.f32 %v1241_v13, %v1240_v18  ;;  %v1150_v18 = vmul.f32 %v1989_v21, %v1989_v21  ;;  %v1062_v19 = vsel %vm900_vm0, %v2016_v47, 0.0 }
 0x147   : > { %v1152_v47 = vmul.f32 %v2034_v3, %v2034_v3  ;;  %v1068_v21 = vsel %vm900_vm0, %v2034_v3, 0.0  ;;  %v1155_v3 = vmul.f32 %v2043_v14, %v2043_v14 }
 0x148   : > { %v1244_v31 = vadd.f32 %v1243_v6, %v1242_v26  ;;  %v1047_v33 = vadd.f32 %v1046_v30, %v1045_v24  ;;  %v1261_v24 = vsel %vm900_vm0, %v1149_v16, 0.0  ;;  %v1263_v6 = vsel %vm900_vm0, %v1150_v18, 0.0 }
 0x149   : > { %v1066_v30 = vsel %vm900_vm0, %v2007_v37, 0.0  ;;  %v1267_v37 = vsel %vm900_vm0, %v1152_v47, 0.0 }
 0x14a   : > { %v1049_v38 = vadd.f32 %v1048_v35, %v1047_v33  ;;  %v1246_v39 = vadd.f32 %v1245_v43, %v1244_v31  ;;  %v1265_v35 = vsel %vm900_vm0, %v1151_v29, 0.0 }
 0x14c   : > { %v1248_v49 = vadd.f32 %v1247_v42, %v1246_v39  ;;  %v1051_v48 = vadd.f32 %v1050_v46, %v1049_v38  ;;  %v1154_v39 = vmul.f32 %v2025_v58, %v2025_v58  ;;  %v1070_v42 = vsel %vm900_vm0, %v2052_v22, 0.0 }
 0x14d   : > { %v1156_v22 = vmul.f32 %v2070_v44, %v2070_v44 }
 0x14e   : > { %v1053_v54 = vadd.f32 %v1052_v20, %v1051_v48  ;;  %v1250_v41 = vadd.f32 %v1249_v51, %v1248_v49  ;;  %v1072_v49 = vsel %vm900_vm0, %v2025_v58, 0.0  ;;  %v1269_v48 = vsel %vm900_vm0, %v1153_v27, 0.0 }
 0x14f   : > { %v1271_v53 = vsel %vm900_vm0, %v1154_v39, 0.0  ;;  %v1076_v58 = vsel %vm900_vm0, %v2070_v44, 0.0  ;;  %v1159_v44 = vmul.f32 %v2079_v56, %v2079_v56 }
 0x150   : > { %v1252_v61 = vadd.f32 %v1251_v34, %v1250_v41  ;;  %v1055_v62 = vadd.f32 %v1054_v59, %v1053_v54  ;;  %v1074_v54 = vsel %vm900_vm0, %v2043_v14, 0.0  ;;  %v1273_v34 = vsel %vm900_vm0, %v1155_v3, 0.0 }
 0x151   : > { %v1157_v59 = vmul.f32 %v2088_v1, %v2088_v1  ;;  %v1275_v14 = vsel %vm900_vm0, %v1156_v22, 0.0  ;;  %v1160_v1 = vmul.f32 %v2106_v25, %v2106_v25  ;;  %v1281_v16 = vsel %vm900_vm0, %v1159_v44, 0.0 }
 0x152   : > { %v1057_v2 = vadd.f32 %v1056_v45, %v1055_v62  ;;  %v1254_v5 = vadd.f32 %v1253_v0, %v1252_v61  ;;  %v1158_v45 = vmul.f32 %v2061_v32, %v2061_v32 }
 0x154   : > { %v1256_v8 = vadd.f32 %v1255_v7, %v1254_v5  ;;  %v1059_v9 = vadd.f32 %v1058_v63, %v1057_v2  ;;  %v1080_v5 = vsel %vm900_vm0, %v2061_v32, 0.0  ;;  %v1277_v7 = vsel %vm900_vm0, %v1157_v59, 0.0 }
 0x155   : > { %v1084_v32 = vsel %vm900_vm0, %v2106_v25, 0.0  ;;  %v1163_v25 = vmul.f32 %v2115_v36, %v2115_v36 }
 0x156   : > { %v1061_v17 = vadd.f32 %v1060_v52, %v1059_v9  ;;  %v1258_v12 = vadd.f32 %v1257_v10, %v1256_v8  ;;  %v1279_v8 = vsel %vm900_vm0, %v1158_v45, 0.0  ;;  %v1082_v9 = vsel %vm900_vm0, %v2079_v56, 0.0 }
 0x157   : > { %v1283_v56 = vsel %vm900_vm0, %v1160_v1, 0.0  ;;  %v1289_v47 = vsel %vm900_vm0, %v1163_v25, 0.0 }
 0x158   : > { %v1260_v13 = vadd.f32 %v1259_v4, %v1258_v12  ;;  %v1063_v55 = vadd.f32 %v1062_v19, %v1061_v17  ;;  %v1161_v17 = vmul.f32 %v2124_v50, %v2124_v50  ;;  %v1162_v4 = vmul.f32 %v2097_v15, %v2097_v15 }
 0x159   : > { %v1086_v19 = vsel %vm900_vm0, %v2124_v50, 0.0 }
 0x15a   : > { %v1065_v26 = vadd.f32 %v1064_v23, %v1063_v55  ;;  %v1262_v28 = vadd.f32 %v1261_v24, %v1260_v13  ;;  %v1088_v23 = vsel %vm900_vm0, %v2097_v15, 0.0  ;;  %v1285_v29 = vsel %vm900_vm0, %v1161_v17, 0.0 }
 0x15c   : > { %v1264_v31 = vadd.f32 %v1263_v6, %v1262_v28  ;;  %v1067_v33 = vadd.f32 %v1066_v30, %v1065_v26  ;;  %v1287_v28 = vsel %vm900_vm0, %v1162_v4, 0.0  ;;  %v1090_v6 = vsel %vm900_vm0, %v2115_v36, 0.0 }
 0x15e   : > { %v1069_v43 = vadd.f32 %v1068_v21, %v1067_v33  ;;  %v1266_v38 = vadd.f32 %v1265_v35, %v1264_v31 }
 0x160   : > { %v1268_v46 = vadd.f32 %v1267_v37, %v1266_v38  ;;  %v1071_v40 = vadd.f32 %v1070_v42, %v1069_v43 }
 0x162   : > { %v1073_v51 = vadd.f32 %v1072_v49, %v1071_v40  ;;  %v1270_v20 = vadd.f32 %v1269_v48, %v1268_v46 }
 0x164   : > { %v1272_v41 = vadd.f32 %v1271_v53, %v1270_v20  ;;  %v1075_v57 = vadd.f32 %v1074_v54, %v1073_v51 }
 0x166   : > { %v1077_v61 = vadd.f32 %v1076_v58, %v1075_v57  ;;  %v1274_v62 = vadd.f32 %v1273_v34, %v1272_v41 }
 0x168   : > { %v1276_v0 = vadd.f32 %v1275_v14, %v1274_v62  ;;  %v1079_v2 = vadd.f32 %v1078_v60, %v1077_v61 }
 0x16a   : > { %v1081_v63 = vadd.f32 %v1080_v5, %v1079_v2  ;;  %v1278_v11 = vadd.f32 %v1277_v7, %v1276_v0 }
 0x16c   : > { %v1280_v10 = vadd.f32 %v1279_v8, %v1278_v11  ;;  %v1083_v52 = vadd.f32 %v1082_v9, %v1081_v63 }
 0x16e   : > { %v1085_v12 = vadd.f32 %v1084_v32, %v1083_v52  ;;  %v1282_v18 = vadd.f32 %v1281_v16, %v1280_v10 }
 0x170   : > { %v1284_v13 = vadd.f32 %v1283_v56, %v1282_v18  ;;  %v1087_v55 = vadd.f32 %v1086_v19, %v1085_v12 }
 0x172   : > { %v1089_v24 = vadd.f32 %v1088_v23, %v1087_v55  ;;  %v1286_v26 = vadd.f32 %v1285_v29, %v1284_v13 }
 0x174   : > { %v1091_v30 = vadd.f32 %v1090_v6, %v1089_v24  ;;  %v1288_v50 = vadd.f32 %v1287_v28, %v1286_v26 }
 0x176   : > { %v1092_v31 = vrot.slane %v1091_v30, 4  ;;  %v1290_v15 = vadd.f32 %v1289_v47, %v1288_v50 }
 0x178   : > { %v1093_v33 = vadd.f32 %v1092_v31, %v1091_v30  ;;  %v1291_v35 = vrot.slane %v1290_v15, 4 }
 0x17a   : > { %v1094_v21 = vrot.slane %v1093_v33, 2  ;;  %v1292_v27 = vadd.f32 %v1291_v35, %v1290_v15 }
 0x17c   : > { %v1095_v43 = vadd.f32 %v1094_v21, %v1093_v33  ;;  %v1293_v38 = vrot.slane %v1292_v27, 2 }
 0x17e   : > { %v1096_v39 = vrot.slane %v1095_v43, 1  ;;  %v1294_v37 = vadd.f32 %v1293_v38, %v1292_v27 }
 0x180   : > { %v1097_v36 = vadd.f32 %v1096_v39, %v1095_v43  ;;  %v1295_v42 = vrot.slane %v1294_v37, 1 }
 0x182   : > { %1099 = vst.msk [vmem:[%s283_s7] sm:$0x1] %vm1098_vm1, %v1097_v36  ;;  %v1296_v46 = vadd.f32 %v1295_v42, %v1294_v37 }
 0x184   : > { %1297 = vst.msk [vmem:[%s289_s10] sm:$0x1] %vm1098_vm1, %v1296_v46 }
 0x185 PF: > { %s15_s17 = sadd.s32 1, %s1745_s17   ;;  %s2320_s15 = smov %s1741_s16 }
 0x186   : > { %p12_p5 = scmp.ge.s32.totalorder %s15_s17, 6   ;;  %s2321_s16 = smov %s2323_s18 }
 0x188   :  { %14 = sbr.rel (!%p12_p5) target bundleno = 2 (0x2), region = 85 }

// kernel: decoder_forward_pallas.16
= control target key start
LH: loop header
LB: loop body
LE: loop exit
PB: predicated region body
PF: predicated region fallthrough
CT: control target
= control target key end

     0   :  { %s783_s0 = inlined_call_operand.vmem [shape: f32[256,128], index: 0, kind: input, shape index: {}]   ;;  %s784_s1 = inlined_call_operand.vmem [shape: f32[1,128], index: 1, kind: input, shape index: {}]   ;;  %s785_s2 = inlined_call_operand.vmem [shape: f32[1,128], index: 2, kind: input, shape index: {}]   ;;  %s786_s3 = inlined_call_operand.vmem [shape: bf16[256,128], index: 3, kind: output, shape index: {}]  }
   0x1   :  { %v14_v0 = vld [vmem:[%s783_s0] sm:$0xff]  ;;  %v15_v1 = vld [vmem:[%s783_s0 + $0x8] sm:$0xff]  ;;  %v16_v6 = vld [vmem:[%s783_s0 + $0x10] sm:$0xff] }
   0x2   :  { %v574_v2 = vld [vmem:[%s784_s1] ss:$0 sm:$0xff]  ;;  %v17_v7 = vld [vmem:[%s783_s0 + $0x18] sm:$0xff]  ;;  %v19_v11 = vld [vmem:[%s783_s0 + $0x28] sm:$0xff] }
   0x3   :  { %v53_v3 = vmul.f32 %v574_v2, %v14_v0  ;;  %v54_v4 = vmul.f32 %v574_v2, %v15_v1  ;;  %v581_v5 = vld [vmem:[%s785_s2] ss:$0 sm:$0xff]  ;;  %v55_v8 = vmul.f32 %v574_v2, %v16_v6  ;;  %v56_v9 = vmul.f32 %v574_v2, %v17_v7  ;;  %v20_v12 = vld [vmem:[%s783_s0 + $0x30] sm:$0xff]  ;;  %v21_v17 = vld [vmem:[%s783_s0 + $0x38] sm:$0xff] }
   0x4   :  { %v18_v10 = vld [vmem:[%s783_s0 + $0x20] sm:$0xff]  ;;  %v58_v16 = vmul.f32 %v574_v2, %v19_v11  ;;  %v59_v20 = vmul.f32 %v574_v2, %v20_v12  ;;  %v60_v21 = vmul.f32 %v574_v2, %v21_v17  ;;  %v23_v35 = vld [vmem:[%s783_s0 + $0x48] sm:$0xff]  ;;  %v24_v36 = vld [vmem:[%s783_s0 + $0x50] sm:$0xff] }
   0x5   :  { %v92_v13 = vadd.f32 %v581_v5, %v53_v3  ;;  %v93_v14 = vadd.f32 %v581_v5, %v54_v4  ;;  %v57_v15 = vmul.f32 %v574_v2, %v18_v10  ;;  %v94_v18 = vadd.f32 %v581_v5, %v55_v8  ;;  %v22_v34 = vld [vmem:[%s783_s0 + $0x40] sm:$0xff]  ;;  %v25_v42 = vld [vmem:[%s783_s0 + $0x58] sm:$0xff]  ;;  %v27_v48 = vld [vmem:[%s783_s0 + $0x68] sm:$0xff] }
   0x6   :  { %v95_v19 = vadd.f32 %v581_v5, %v56_v9  ;;  %v97_v29 = vadd.f32 %v581_v5, %v58_v16  ;;  %v98_v33 = vadd.f32 %v581_v5, %v59_v20  ;;  %v99_v40 = vadd.f32 %v581_v5, %v60_v21  ;;  %v26_v47 = vld [vmem:[%s783_s0 + $0x60] sm:$0xff]  ;;  %v28_v60 = vld [vmem:[%s783_s0 + $0x70] sm:$0xff]  ;;  %v29_v7 = vld [vmem:[%s783_s0 + $0x78] sm:$0xff] }
   0x7   :  { %vm124_vm0 = vcmp.gt.f32.partialorder %v92_v13, 0.0  ;;  %vm125_vm1 = vcmp.gt.f32.partialorder %v93_v14, 0.0  ;;  %v156_v22 = vmul.f32 0.2, %v92_v13  ;;  %v157_v23 = vmul.f32 0.2, %v93_v14 }
   0x8   :  { %vm126_vm2 = vcmp.gt.f32.partialorder %v94_v18, 0.0  ;;  %vm127_vm3 = vcmp.gt.f32.partialorder %v95_v19, 0.0  ;;  %v158_v24 = vmul.f32 0.2, %v94_v18  ;;  %v159_v25 = vmul.f32 0.2, %v95_v19 }
   0x9   :  { %v188_v26 = vsel %vm124_vm0, %v92_v13, %v156_v22  ;;  %v189_v27 = vsel %vm125_vm1, %v93_v14, %v157_v23  ;;  %v96_v28 = vadd.f32 %v581_v5, %v57_v15  ;;  %vm129_vm5 = vcmp.gt.f32.partialorder %v97_v29, 0.0  ;;  %v30_v12 = vld [vmem:[%s783_s0 + $0x80] sm:$0xff]  ;;  %v31_v13 = vld [vmem:[%s783_s0 + $0x88] sm:$0xff]  ;;  %v32_v20 = vld [vmem:[%s783_s0 + $0x90] sm:$0xff] }
   0xa   :  { %v453_v30 = vpack.c.bf16 %v189_v27, %v188_v26  ;;  %v190_v31 = vsel %vm126_vm2, %v94_v18, %v158_v24  ;;  %v191_v32 = vsel %vm127_vm3, %v95_v19, %v159_v25  ;;  %v161_v39 = vmul.f32 0.2, %v97_v29  ;;  %v33_v25 = vld [vmem:[%s783_s0 + $0x98] sm:$0xff] }
   0xb   :  { %v458_v37 = vpack.c.bf16 %v191_v32, %v190_v31  ;;  %vm128_vm4 = vcmp.gt.f32.partialorder %v96_v28, 0.0  ;;  %v160_v38 = vmul.f32 0.2, %v96_v28  ;;  %vm130_vm6 = vcmp.gt.f32.partialorder %v98_v33, 0.0 }
   0xc   :  { %454 = vst [vmem:[%s786_s3] sm:$0xff] %v453_v30   ;;  %v162_v41 = vmul.f32 0.2, %v98_v33  ;;  %v61_v44 = vmul.f32 %v574_v2, %v22_v34  ;;  %v62_v45 = vmul.f32 %v574_v2, %v23_v35  ;;  %v63_v46 = vmul.f32 %v574_v2, %v24_v36 }
   0xd   :  { %530 = vst [vmem:[%s786_s3 + $0x8] sm:$0xff] %v458_v37   ;;  %v192_v43 = vsel %vm128_vm4, %v96_v28, %v160_v38  ;;  %v193_v49 = vsel %vm129_vm5, %v97_v29, %v161_v39  ;;  %vm131_vm7 = vcmp.gt.f32.partialorder %v99_v40, 0.0  ;;  %v163_v50 = vmul.f32 0.2, %v99_v40  ;;  %v35_v37 = vld [vmem:[%s783_s0 + $0xa8] sm:$0xff] }
   0xe   :  { %v194_v51 = vsel %vm130_vm6, %v98_v33, %v162_v41  ;;  %v463_v52 = vpack.c.bf16 %v193_v49, %v192_v43  ;;  %v100_v53 = vadd.f32 %v581_v5, %v61_v44  ;;  %v101_v54 = vadd.f32 %v581_v5, %v62_v45  ;;  %v34_v33 = vld [vmem:[%s783_s0 + $0xa0] sm:$0xff]  ;;  %v36_v44 = vld [vmem:[%s783_s0 + $0xb0] sm:$0xff]  ;;  %v37_v49 = vld [vmem:[%s783_s0 + $0xb8] sm:$0xff] }
   0xf   :  { %v64_v55 = vmul.f32 %v574_v2, %v25_v42  ;;  %v195_v56 = vsel %vm131_vm7, %v99_v40, %v163_v50  ;;  %v102_v57 = vadd.f32 %v581_v5, %v63_v46  ;;  %v65_v58 = vmul.f32 %v574_v2, %v26_v47  ;;  %v38_v50 = vld [vmem:[%s783_s0 + $0xc0] sm:$0xff] }
  0x10   :  { %v66_v59 = vmul.f32 %v574_v2, %v27_v48  ;;  %531 = vst [vmem:[%s786_s3 + $0x10] sm:$0xff] %v463_v52   ;;  %v468_v61 = vpack.c.bf16 %v195_v56, %v194_v51  ;;  %vm132_vm8 = vcmp.gt.f32.partialorder %v100_v53, 0.0  ;;  %vm133_vm9 = vcmp.gt.f32.partialorder %v101_v54, 0.0  ;;  %v39_v51 = vld [vmem:[%s783_s0 + $0xc8] sm:$0xff] }
  0x11   :  { %v164_v62 = vmul.f32 0.2, %v100_v53  ;;  %v165_v63 = vmul.f32 0.2, %v101_v54  ;;  %v103_v0 = vadd.f32 %v581_v5, %v64_v55  ;;  %vm134_vm10 = vcmp.gt.f32.partialorder %v102_v57, 0.0 }
  0x12   :  { %v166_v1 = vmul.f32 0.2, %v102_v57  ;;  %532 = vst [vmem:[%s786_s3 + $0x18] sm:$0xff] %v468_v61   ;;  %v104_v4 = vadd.f32 %v581_v5, %v65_v58  ;;  %v105_v6 = vadd.f32 %v581_v5, %v66_v59  ;;  %v67_v8 = vmul.f32 %v574_v2, %v28_v60 }
  0x13   :  { %v196_v3 = vsel %vm132_vm8, %v100_v53, %v164_v62  ;;  %v197_v9 = vsel %vm133_vm9, %v101_v54, %v165_v63  ;;  %vm135_vm11 = vcmp.gt.f32.partialorder %v103_v0, 0.0  ;;  %v167_v10 = vmul.f32 0.2, %v103_v0  ;;  %v40_v62 = vld [vmem:[%s783_s0 + $0xd0] sm:$0xff] }
  0x14   :  { %v198_v11 = vsel %vm134_vm10, %v102_v57, %v166_v1  ;;  %v473_v14 = vpack.c.bf16 %v197_v9, %v196_v3  ;;  %vm136_vm12 = vcmp.gt.f32.partialorder %v104_v4, 0.0  ;;  %vm137_vm13 = vcmp.gt.f32.partialorder %v105_v6, 0.0 }
  0x15   :  { %v168_v15 = vmul.f32 0.2, %v104_v4  ;;  %v199_v16 = vsel %vm135_vm11, %v103_v0, %v167_v10  ;;  %v169_v17 = vmul.f32 0.2, %v105_v6  ;;  %v68_v18 = vmul.f32 %v574_v2, %v29_v7  ;;  %v41_v10 = vld [vmem:[%s783_s0 + $0xd8] sm:$0xff] }
  0x16   :  { %v106_v19 = vadd.f32 %v581_v5, %v67_v8  ;;  %533 = vst [vmem:[%s786_s3 + $0x20] sm:$0xff] %v473_v14   ;;  %v478_v21 = vpack.c.bf16 %v199_v16, %v198_v11  ;;  %v69_v23 = vmul.f32 %v574_v2, %v30_v12  ;;  %v70_v24 = vmul.f32 %v574_v2, %v31_v13  ;;  %v42_v14 = vld [vmem:[%s783_s0 + $0xe0] sm:$0xff] }
  0x17   :  { %v200_v22 = vsel %vm136_vm12, %v104_v4, %v168_v15  ;;  %v201_v26 = vsel %vm137_vm13, %v105_v6, %v169_v17  ;;  %v107_v27 = vadd.f32 %v581_v5, %v68_v18  ;;  %v71_v32 = vmul.f32 %v574_v2, %v32_v20  ;;  %v43_v15 = vld [vmem:[%s783_s0 + $0xe8] sm:$0xff] }
  0x18   :  { %vm138_vm14 = vcmp.gt.f32.partialorder %v106_v19, 0.0  ;;  %v170_v28 = vmul.f32 0.2, %v106_v19  ;;  %534 = vst [vmem:[%s786_s3 + $0x28] sm:$0xff] %v478_v21   ;;  %v483_v29 = vpack.c.bf16 %v201_v26, %v200_v22  ;;  %v108_v30 = vadd.f32 %v581_v5, %v69_v23  ;;  %v44_v26 = vld [vmem:[%s783_s0 + $0xf0] sm:$0xff] }
  0x19   :  { %v109_v31 = vadd.f32 %v581_v5, %v70_v24  ;;  %vm139_vm15 = vcmp.gt.f32.partialorder %v107_v27, 0.0  ;;  %v171_v34 = vmul.f32 0.2, %v107_v27  ;;  %v72_v36 = vmul.f32 %v574_v2, %v33_v25 }
  0x1a   :  { %v202_v35 = vsel %vm138_vm14, %v106_v19, %v170_v28  ;;  %535 = vst [vmem:[%s786_s3 + $0x30] sm:$0xff] %v483_v29   ;;  %vm140_vm0 = vcmp.gt.f32.partialorder %v108_v30, 0.0  ;;  %v172_v38 = vmul.f32 0.2, %v108_v30  ;;  %v110_v41 = vadd.f32 %v581_v5, %v71_v32 }
  0x1b   :  { %vm141_vm1 = vcmp.gt.f32.partialorder %v109_v31, 0.0  ;;  %v173_v39 = vmul.f32 0.2, %v109_v31  ;;  %v203_v40 = vsel %vm139_vm15, %v107_v27, %v171_v34  ;;  %v111_v42 = vadd.f32 %v581_v5, %v72_v36 }
  0x1c   :  { %v73_v43 = vmul.f32 %v574_v2, %v34_v33  ;;  %v488_v45 = vpack.c.bf16 %v203_v40, %v202_v35  ;;  %v204_v46 = vsel %vm140_vm0, %v108_v30, %v172_v38  ;;  %v74_v48 = vmul.f32 %v574_v2, %v35_v37 }
  0x1d   :  { %v205_v47 = vsel %vm141_vm1, %v109_v31, %v173_v39  ;;  %vm142_vm2 = vcmp.gt.f32.partialorder %v110_v41, 0.0  ;;  %vm143_vm3 = vcmp.gt.f32.partialorder %v111_v42, 0.0  ;;  %v174_v53 = vmul.f32 0.2, %v110_v41  ;;  %v45_v31 = vld [vmem:[%s783_s0 + $0xf8] sm:$0xff] }
  0x1e   :  { %v493_v52 = vpack.c.bf16 %v205_v47, %v204_v46  ;;  %536 = vst [vmem:[%s786_s3 + $0x38] sm:$0xff] %v488_v45   ;;  %v175_v54 = vmul.f32 0.2, %v111_v42  ;;  %v112_v55 = vadd.f32 %v581_v5, %v73_v43  ;;  %v113_v56 = vadd.f32 %v581_v5, %v74_v48 }
  0x1f   :  { %v75_v57 = vmul.f32 %v574_v2, %v36_v44  ;;  %v206_v58 = vsel %vm142_vm2, %v110_v41, %v174_v53  ;;  %v76_v59 = vmul.f32 %v574_v2, %v37_v49  ;;  %v77_v60 = vmul.f32 %v574_v2, %v38_v50 }
  0x20   :  { %537 = vst [vmem:[%s786_s3 + $0x40] sm:$0xff] %v493_v52   ;;  %v78_v61 = vmul.f32 %v574_v2, %v39_v51  ;;  %v207_v63 = vsel %vm143_vm3, %v111_v42, %v175_v54  ;;  %vm144_vm4 = vcmp.gt.f32.partialorder %v112_v55, 0.0  ;;  %vm145_vm5 = vcmp.gt.f32.partialorder %v113_v56, 0.0 }
  0x21   :  { %v176_v0 = vmul.f32 0.2, %v112_v55  ;;  %v498_v1 = vpack.c.bf16 %v207_v63, %v206_v58  ;;  %v177_v3 = vmul.f32 0.2, %v113_v56  ;;  %v114_v4 = vadd.f32 %v581_v5, %v75_v57 }
  0x22   :  { %v115_v6 = vadd.f32 %v581_v5, %v76_v59  ;;  %v116_v8 = vadd.f32 %v581_v5, %v77_v60  ;;  %v117_v9 = vadd.f32 %v581_v5, %v78_v61  ;;  %v79_v11 = vmul.f32 %v574_v2, %v40_v62 }
  0x23   :  { %v208_v7 = vsel %vm144_vm4, %v112_v55, %v176_v0  ;;  %538 = vst [vmem:[%s786_s3 + $0x48] sm:$0xff] %v498_v1   ;;  %v209_v12 = vsel %vm145_vm5, %v113_v56, %v177_v3  ;;  %vm146_vm6 = vcmp.gt.f32.partialorder %v114_v4, 0.0  ;;  %v178_v13 = vmul.f32 0.2, %v114_v4 }
  0x24   :  { %vm147_vm7 = vcmp.gt.f32.partialorder %v115_v6, 0.0  ;;  %v503_v16 = vpack.c.bf16 %v209_v12, %v208_v7  ;;  %v179_v17 = vmul.f32 0.2, %v115_v6  ;;  %vm148_vm8 = vcmp.gt.f32.partialorder %v116_v8, 0.0 }
  0x25   :  { %vm149_vm9 = vcmp.gt.f32.partialorder %v117_v9, 0.0  ;;  %v210_v18 = vsel %vm146_vm6, %v114_v4, %v178_v13  ;;  %v180_v19 = vmul.f32 0.2, %v116_v8  ;;  %v181_v20 = vmul.f32 0.2, %v117_v9 }
  0x26   :  { %v80_v21 = vmul.f32 %v574_v2, %v41_v10  ;;  %539 = vst [vmem:[%s786_s3 + $0x50] sm:$0xff] %v503_v16   ;;  %v211_v22 = vsel %vm147_vm7, %v115_v6, %v179_v17  ;;  %v118_v23 = vadd.f32 %v581_v5, %v79_v11  ;;  %v81_v24 = vmul.f32 %v574_v2, %v42_v14 }
  0x27   :  { %v82_v25 = vmul.f32 %v574_v2, %v43_v15  ;;  %v508_v27 = vpack.c.bf16 %v211_v22, %v210_v18  ;;  %v212_v28 = vsel %vm148_vm8, %v116_v8, %v180_v19  ;;  %v213_v29 = vsel %vm149_vm9, %v117_v9, %v181_v20 }
  0x28   :  { %v119_v30 = vadd.f32 %v581_v5, %v80_v21  ;;  %v513_v32 = vpack.c.bf16 %v213_v29, %v212_v28  ;;  %vm150_vm10 = vcmp.gt.f32.partialorder %v118_v23, 0.0  ;;  %v182_v33 = vmul.f32 0.2, %v118_v23 }
  0x29   :  { %v120_v34 = vadd.f32 %v581_v5, %v81_v24  ;;  %540 = vst [vmem:[%s786_s3 + $0x58] sm:$0xff] %v508_v27   ;;  %v121_v36 = vadd.f32 %v581_v5, %v82_v25  ;;  %v83_v37 = vmul.f32 %v574_v2, %v44_v26  ;;  %v84_v40 = vmul.f32 %v574_v2, %v45_v31 }
  0x2a   :  { %vm151_vm11 = vcmp.gt.f32.partialorder %v119_v30, 0.0  ;;  %v183_v35 = vmul.f32 0.2, %v119_v30  ;;  %541 = vst [vmem:[%s786_s3 + $0x60] sm:$0xff] %v513_v32   ;;  %v214_v38 = vsel %vm150_vm10, %v118_v23, %v182_v33 }
  0x2b   :  { %vm152_vm12 = vcmp.gt.f32.partialorder %v120_v34, 0.0  ;;  %v184_v39 = vmul.f32 0.2, %v120_v34  ;;  %vm153_vm13 = vcmp.gt.f32.partialorder %v121_v36, 0.0  ;;  %v185_v42 = vmul.f32 0.2, %v121_v36 }
  0x2c   :  { %v215_v41 = vsel %vm151_vm11, %v119_v30, %v183_v35  ;;  %v122_v43 = vadd.f32 %v581_v5, %v83_v37  ;;  %v123_v46 = vadd.f32 %v581_v5, %v84_v40 }
  0x2d   :  { %v518_v44 = vpack.c.bf16 %v215_v41, %v214_v38  ;;  %v216_v45 = vsel %vm152_vm12, %v120_v34, %v184_v39  ;;  %v217_v47 = vsel %vm153_vm13, %v121_v36, %v185_v42 }
  0x2e   :  { %vm154_vm14 = vcmp.gt.f32.partialorder %v122_v43, 0.0  ;;  %v186_v48 = vmul.f32 0.2, %v122_v43  ;;  %v523_v49 = vpack.c.bf16 %v217_v47, %v216_v45  ;;  %vm155_vm15 = vcmp.gt.f32.partialorder %v123_v46, 0.0 }
  0x2f   :  { %542 = vst [vmem:[%s786_s3 + $0x68] sm:$0xff] %v518_v44   ;;  %v187_v50 = vmul.f32 0.2, %v123_v46 }
  0x30   :  { %v218_v2 = vsel %vm154_vm14, %v122_v43, %v186_v48  ;;  %543 = vst [vmem:[%s786_s3 + $0x70] sm:$0xff] %v523_v49  }
  0x31   :  { %v219_v51 = vsel %vm155_vm15, %v123_v46, %v187_v50 }
  0x32   :  { %v528_v52 = vpack.c.bf16 %v219_v51, %v218_v2 }
  0x34   :  { %544 = vst [vmem:[%s786_s3 + $0x78] sm:$0xff] %v528_v52  }

// kernel: decoder_forward_pallas.17
= control target key start
LH: loop header
LB: loop body
LE: loop exit
PB: predicated region body
PF: predicated region fallthrough
CT: control target
= control target key end

     0   :  { %s1044_s9 = smov 0   ;;  %s1046_s10 = smov 0   ;;  %s1251_s0 = inlined_call_operand.vmem [shape: bf16[4,1,64], index: 0, kind: input, shape index: {}]   ;;  %s1252_s1 = inlined_call_operand.vmem [shape: bf16[4,64,2048], index: 1, kind: input, shape index: {}]   ;;  %s1253_s2 = inlined_call_operand.vmem [shape: f32[4,1,2048], index: 2, kind: output, shape index: {}]  }
   0x1   :  { %s1048_s11 = smov 0   ;;  %s1050_s12 = smov 0  }
   0x2   :  { %s1052_s13 = smov 0   ;;  %s1054_s14 = smov 0  }
   0x3   :  { %s1056_s15 = smov 0  }
   0x4 LB: > { %s21_s16 = sadd.s32 1, %s1017_s13  ;;  %s24_s17 = sadd.s32 1, %s1021_s14  ;;  %s1025_s15 = sphi %s1056_s15, %s12_s15   ;;  %s1021_s14 = sphi %s1054_s14, %s1259_s14   ;;  %s1017_s13 = sphi %s1052_s13, %s1258_s13   ;;  %s1013_s12 = sphi %s1050_s12, %s1257_s12   ;;  %s1009_s11 = sphi %s1048_s11, %s1256_s11   ;;  %s1005_s10 = sphi %s1046_s10, %s1255_s10   ;;  %s1001_s9 = sphi %s1044_s9, %s1254_s9  }
   0x5   : > { %p22_p0 = scmp.ge.s32.totalorder %s21_s16, 2  ;;  %p66_p1 = scmp.ne.s32.totalorder %s1005_s10, %s1001_s9 }
   0x6   : > { %p67_p2 = scmp.eq.s32.totalorder %s1025_s15, 0  ;;  %s59_s21 = sadd.s32 1, %s1005_s10 }
   0x7   : > { %s1261_s16 = smov (%p22_p0, %s21_s16), 0  ;;  %s1263_s17 = smov (!%p22_p0, %s24_s17), %s1021_s14 }
   0x8   : > { %p68_p3 = por %p67_p2, %p66_p1  ;;  %p26_p4 = scmp.ge.s32.totalorder %s1263_s17, 4 }
   0x9   : > { %s55_s18 = ssub.s32 %s1017_s13, %s1261_s16  ;;  %p834_p6 = scmp.ge.s32.totalorder %s1025_s15, 8 }
   0xa   : > { %s1265_s17 = smov (%p26_p4, %s1263_s17), 0 }
   0xb   : > { %s54_s19 = ssub.s32 %s1021_s14, %s1265_s17  ;;  %120 = sbr.rel (%p834_p6) target bundleno = 39 (0x27), region = 16 }
   0xc   : > { %s56_s20 = sor.u32 %s55_s18, %s54_s19 }
   0xd   : > { %p57_p5 = scmp.eq.s32.totalorder %s56_s20, 0 }
   0xf   : > { %s1095_s22 = scalar_select %p57_p5, %s1005_s10, %s59_s21  }
  0x10   : > { %129 = sbr.rel (!%p68_p3) target bundleno = 39 (0x27), region = 24  ;;  %s131_s23 = sand.u32 (%p68_p3), 1, %s1005_s10  }
  0x11   : > { %s836_s24 = sshll.u32 (%p68_p3), %s1017_s13, 3  ;;  %s835_s25 = sshll.u32 (%p68_p3), %s131_s23, 8 }
  0x12   : > { %s837_s26 = sshll.u32 (%p68_p3), %s1021_s14, 7  ;;  %s1109_s4 = scalar_lea.vmem (%p68_p3), [#allocation2], %s835_s25 }
  0x13   : > { %s136_s27 = sadd.s32 (%p68_p3), %s837_s26, %s836_s24 }
  0x14   : > { %s838_s28 = sshll.u32 (%p68_p3), %s136_s27, 2 }
  0x15   : > { %s1104_s3 = scalar_lea.vmem %s1252_s1, %s838_s28 }
  0x16   : > { %v151_v0 = vld [vmem:[%s1104_s3] sm:$0xff]  ;;  %v153_v1 = vld [vmem:[%s1104_s3 + $0x8] sm:$0xff]  ;;  %v155_v2 = vld [vmem:[%s1104_s3 + $0x10] sm:$0xff] }
  0x17   : > { %152 = vst [vmem:[%s1109_s4] sm:$0xff] %v151_v0  ;;  %154 = vst [vmem:[%s1109_s4 + $0x8] sm:$0xff] %v153_v1  ;;  %v157_v3 = vld [vmem:[%s1104_s3 + $0x18] sm:$0xff]  ;;  %v159_v4 = vld [vmem:[%s1104_s3 + $0x40] sm:$0xff] }
  0x18   : > { %156 = vst [vmem:[%s1109_s4 + $0x10] sm:$0xff] %v155_v2  ;;  %v161_v5 = vld [vmem:[%s1104_s3 + $0x48] sm:$0xff]  ;;  %158 = vst [vmem:[%s1109_s4 + $0x18] sm:$0xff] %v157_v3  ;;  %v163_v6 = vld [vmem:[%s1104_s3 + $0x50] sm:$0xff] }
  0x19   : > { %160 = vst [vmem:[%s1109_s4 + $0x20] sm:$0xff] %v159_v4  ;;  %162 = vst [vmem:[%s1109_s4 + $0x28] sm:$0xff] %v161_v5  ;;  %v165_v7 = vld [vmem:[%s1104_s3 + $0x58] sm:$0xff]  ;;  %v167_v8 = vld [vmem:[%s1104_s3 + $0x80] sm:$0xff] }
  0x1a   : > { %164 = vst [vmem:[%s1109_s4 + $0x30] sm:$0xff] %v163_v6  ;;  %166 = vst [vmem:[%s1109_s4 + $0x38] sm:$0xff] %v165_v7  ;;  %v169_v9 = vld [vmem:[%s1104_s3 + $0x88] sm:$0xff]  ;;  %v171_v10 = vld [vmem:[%s1104_s3 + $0x90] sm:$0xff] }
  0x1b   : > { %168 = vst [vmem:[%s1109_s4 + $0x40] sm:$0xff] %v167_v8  ;;  %v173_v11 = vld [vmem:[%s1104_s3 + $0x98] sm:$0xff]  ;;  %170 = vst [vmem:[%s1109_s4 + $0x48] sm:$0xff] %v169_v9  ;;  %v175_v12 = vld [vmem:[%s1104_s3 + $0xc0] sm:$0xff] }
  0x1c   : > { %172 = vst [vmem:[%s1109_s4 + $0x50] sm:$0xff] %v171_v10  ;;  %174 = vst [vmem:[%s1109_s4 + $0x58] sm:$0xff] %v173_v11  ;;  %v177_v13 = vld [vmem:[%s1104_s3 + $0xc8] sm:$0xff]  ;;  %v179_v14 = vld [vmem:[%s1104_s3 + $0xd0] sm:$0xff] }
  0x1d   : > { %176 = vst [vmem:[%s1109_s4 + $0x60] sm:$0xff] %v175_v12  ;;  %178 = vst [vmem:[%s1109_s4 + $0x68] sm:$0xff] %v177_v13  ;;  %v181_v15 = vld [vmem:[%s1104_s3 + $0xd8] sm:$0xff]  ;;  %v183_v16 = vld [vmem:[%s1104_s3 + $0x100] sm:$0xff] }
  0x1e   : > { %180 = vst [vmem:[%s1109_s4 + $0x70] sm:$0xff] %v179_v14  ;;  %v185_v17 = vld [vmem:[%s1104_s3 + $0x108] sm:$0xff]  ;;  %182 = vst [vmem:[%s1109_s4 + $0x78] sm:$0xff] %v181_v15  ;;  %v187_v18 = vld [vmem:[%s1104_s3 + $0x110] sm:$0xff] }
  0x1f   : > { %184 = vst [vmem:[%s1109_s4 + $0x80] sm:$0xff] %v183_v16  ;;  %186 = vst [vmem:[%s1109_s4 + $0x88] sm:$0xff] %v185_v17  ;;  %v189_v19 = vld [vmem:[%s1104_s3 + $0x118] sm:$0xff]  ;;  %v191_v20 = vld [vmem:[%s1104_s3 + $0x140] sm:$0xff] }
  0x20   : > { %188 = vst [vmem:[%s1109_s4 + $0x90] sm:$0xff] %v187_v18  ;;  %190 = vst [vmem:[%s1109_s4 + $0x98] sm:$0xff] %v189_v19  ;;  %v193_v21 = vld [vmem:[%s1104_s3 + $0x148] sm:$0xff]  ;;  %v195_v22 = vld [vmem:[%s1104_s3 + $0x150] sm:$0xff] }
  0x21   : > { %192 = vst [vmem:[%s1109_s4 + $0xa0] sm:$0xff] %v191_v20  ;;  %v197_v23 = vld [vmem:[%s1104_s3 + $0x158] sm:$0xff]  ;;  %194 = vst [vmem:[%s1109_s4 + $0xa8] sm:$0xff] %v193_v21  ;;  %v199_v24 = vld [vmem:[%s1104_s3 + $0x180] sm:$0xff] }
  0x22   : > { %196 = vst [vmem:[%s1109_s4 + $0xb0] sm:$0xff] %v195_v22  ;;  %198 = vst [vmem:[%s1109_s4 + $0xb8] sm:$0xff] %v197_v23  ;;  %v201_v25 = vld [vmem:[%s1104_s3 + $0x188] sm:$0xff]  ;;  %v203_v26 = vld [vmem:[%s1104_s3 + $0x190] sm:$0xff] }
  0x23   : > { %200 = vst [vmem:[%s1109_s4 + $0xc0] sm:$0xff] %v199_v24  ;;  %202 = vst [vmem:[%s1109_s4 + $0xc8] sm:$0xff] %v201_v25  ;;  %v205_v27 = vld [vmem:[%s1104_s3 + $0x198] sm:$0xff]  ;;  %v207_v28 = vld [vmem:[%s1104_s3 + $0x1c0] sm:$0xff] }
  0x24   : > { %204 = vst [vmem:[%s1109_s4 + $0xd0] sm:$0xff] %v203_v26  ;;  %v209_v29 = vld [vmem:[%s1104_s3 + $0x1c8] sm:$0xff]  ;;  %206 = vst [vmem:[%s1109_s4 + $0xd8] sm:$0xff] %v205_v27  ;;  %v211_v30 = vld [vmem:[%s1104_s3 + $0x1d0] sm:$0xff] }
  0x25   : > { %208 = vst [vmem:[%s1109_s4 + $0xe0] sm:$0xff] %v207_v28  ;;  %210 = vst [vmem:[%s1109_s4 + $0xe8] sm:$0xff] %v209_v29  ;;  %v213_v31 = vld [vmem:[%s1104_s3 + $0x1d8] sm:$0xff] }
  0x26   : > { %212 = vst [vmem:[%s1109_s4 + $0xf0] sm:$0xff] %v211_v30  ;;  %214 = vst [vmem:[%s1109_s4 + $0xf8] sm:$0xff] %v213_v31 }
  0x27 PF: > { %p839_p7 = scmp.ge.s32.totalorder %s1025_s15, 1  ;;  %p219_p8 = scmp.lt.s32.totalorder %s1025_s15, 9 }
  0x29   : > { %p220_p9 = pnand %p839_p7, %p219_p8 }
  0x2a   : > { %s226_s5 = sand.u32 (!%p220_p9), 1, %s1001_s9   ;;  %p253_p10 = scmp.lt.s32.totalorder (!%p220_p9), %s1013_s12, 3 }
  0x2b   : > { %223 = sbr.rel (%p220_p9) target bundleno = 325 (0x145), region = 47  ;;  %s840_s6 = sshll.u32 (!%p220_p9), %s226_s5, 8 }
  0x2c   : > { %s1177_s7 = scalar_lea.vmem (!%p220_p9), [#allocation2], %s840_s6  ;;  %s841_s19 = sshll.u32 (!%p220_p9), %s1009_s11, 3 }
  0x2d   : > { %p260_p11 = scmp.lt.s32.totalorder (!%p220_p9), %s841_s19, 15 }
  0x30   : > { %v1027_v32 = vmov 0   ;;  %v292_v33 = vld [vmem:[%s1177_s7 + $0xc0] sm:$0xff]  ;;  %v293_v35 = vld [vmem:[%s1177_s7 + $0xc8] sm:$0xff]  ;;  %s1267_s12 = smov (!%p253_p10, %s1013_s12), 3  ;;  %v294_v63 = vld [vmem:[%s1177_s7 + $0xd0] sm:$0xff]  ;;  %vm460_vm0 = vcmask 523264  }
  0x31   : > { %496 = vmatprep.mubr.bf16.mxu0 %v1027_v32  ;;  %537 = vmatprep.mubr.bf16.mxu1 %v1027_v32  ;;  %v296_v34 = vld [vmem:[%s1177_s7 + $0xe0] sm:$0xff]  ;;  %v297_v37 = vld [vmem:[%s1177_s7 + $0xe8] sm:$0xff]  ;;  %v298_v0 = vld [vmem:[%s1177_s7 + $0xf0] sm:$0xff]  ;;  %s255_s18 = scalar_lea.vmem %s1251_s0, %s1267_s12  ;;  %s1269_s19 = smov (!%p260_p11, %s841_s19), 15 }
  0x32   : > { %v868_v36 = vcombine.high %v292_v33, %v296_v34  ;;  %v867_v38 = vcombine.low %v292_v33, %v296_v34  ;;  %v284_v39 = vld [vmem:[%s1177_s7 + $0x80] sm:$0xff]  ;;  %v870_v41 = vcombine.high %v293_v35, %v297_v37  ;;  %v869_v42 = vcombine.low %v293_v35, %v297_v37  ;;  %v285_v44 = vld [vmem:[%s1177_s7 + $0x88] sm:$0xff]  ;;  %v295_v1 = vld [vmem:[%s1177_s7 + $0xd8] sm:$0xff]  ;;  %s842_s20 = sshll.u32 %s1267_s12, 4 }
  0x33   : > { %v288_v40 = vld [vmem:[%s1177_s7 + $0xa0] sm:$0xff]  ;;  %v289_v45 = vld [vmem:[%s1177_s7 + $0xa8] sm:$0xff]  ;;  %v299_v2 = vld [vmem:[%s1177_s7 + $0xf8] sm:$0xff]  ;;  %v872_v5 = vcombine.high %v294_v63, %v298_v0  ;;  %v871_v12 = vcombine.low %v294_v63, %v298_v0  ;;  %s263_s21 = sadd.s32 %s842_s20, %s1269_s19 }
  0x34   : > { %v860_v43 = vcombine.high %v284_v39, %v288_v40  ;;  %v276_v46 = vld [vmem:[%s1177_s7 + $0x40] sm:$0xff]  ;;  %472 = vmatprep.subr.bf16.mxu0 %v868_v36  ;;  %v862_v47 = vcombine.high %v285_v44, %v289_v45  ;;  %v277_v49 = vld [vmem:[%s1177_s7 + $0x48] sm:$0xff]  ;;  %513 = vmatprep.subr.bf16.mxu1 %v870_v41  ;;  %v859_v51 = vcombine.low %v284_v39, %v288_v40  ;;  %v286_v7 = vld [vmem:[%s1177_s7 + $0x90] sm:$0xff]  ;;  %s264_s24 = scalar_lea.vmem %s1253_s2, %s263_s21 }
  0x35   : > { %v280_v48 = vld [vmem:[%s1177_s7 + $0x60] sm:$0xff]  ;;  %v281_v50 = vld [vmem:[%s1177_s7 + $0x68] sm:$0xff]  ;;  %473 = vmatpush1.bf16.msra.mxu0 %v867_v38  ;;  %514 = vmatpush1.bf16.msra.mxu1 %v869_v42  ;;  %v861_v52 = vcombine.low %v285_v44, %v289_v45  ;;  %v874_v6 = vcombine.high %v295_v1, %v299_v2  ;;  %v290_v8 = vld [vmem:[%s1177_s7 + $0xb0] sm:$0xff]  ;;  %v873_v13 = vcombine.low %v295_v1, %v299_v2 }
  0x36   : > { %474 = vmatprep.subr.bf16.mxu0 %v860_v43  ;;  %v852_v53 = vcombine.high %v276_v46, %v280_v48  ;;  %515 = vmatprep.subr.bf16.mxu1 %v862_v47  ;;  %v854_v54 = vcombine.high %v277_v49, %v281_v50  ;;  %v268_v55 = vld [vmem:[%s1177_s7] sm:$0xff]  ;;  %v269_v57 = vld [vmem:[%s1177_s7 + $0x8] sm:$0xff]  ;;  %v851_v59 = vcombine.low %v276_v46, %v280_v48  ;;  %v287_v9 = vld [vmem:[%s1177_s7 + $0x98] sm:$0xff] }
  0x37   : > { %v272_v56 = vld [vmem:[%s1177_s7 + $0x20] sm:$0xff]  ;;  %v273_v58 = vld [vmem:[%s1177_s7 + $0x28] sm:$0xff]  ;;  %v853_v60 = vcombine.low %v277_v49, %v281_v50  ;;  %v291_v10 = vld [vmem:[%s1177_s7 + $0xb8] sm:$0xff]  ;;  %v864_v14 = vcombine.high %v286_v7, %v290_v8  ;;  %v863_v20 = vcombine.low %v286_v7, %v290_v8 }
  0x38   : > { %v844_v61 = vcombine.high %v268_v55, %v272_v56  ;;  %v846_v62 = vcombine.high %v269_v57, %v273_v58  ;;  %v843_v3 = vcombine.low %v268_v55, %v272_v56  ;;  %v845_v4 = vcombine.low %v269_v57, %v273_v58  ;;  %v267_v11 = vld [vmem:[%s255_s18] sm:$0x1]  ;;  %v278_v16 = vld [vmem:[%s1177_s7 + $0x50] sm:$0xff]  ;;  %v279_v18 = vld [vmem:[%s1177_s7 + $0x58] sm:$0xff] }
  0x39   : > { %475 = vmatpush1.bf16.msra.mxu0 %v859_v51  ;;  %516 = vmatpush1.bf16.msra.mxu1 %v861_v52  ;;  %v866_v15 = vcombine.high %v287_v9, %v291_v10  ;;  %v282_v17 = vld [vmem:[%s1177_s7 + $0x70] sm:$0xff]  ;;  %v283_v19 = vld [vmem:[%s1177_s7 + $0x78] sm:$0xff]  ;;  %v865_v21 = vcombine.low %v287_v9, %v291_v10 }
  0x3a   : > { %476 = vmatprep.subr.bf16.mxu0 %v852_v53  ;;  %517 = vmatprep.subr.bf16.mxu1 %v854_v54  ;;  %v856_v22 = vcombine.high %v278_v16, %v282_v17  ;;  %v858_v23 = vcombine.high %v279_v18, %v283_v19  ;;  %v270_v24 = vld [vmem:[%s1177_s7 + $0x10] sm:$0xff]  ;;  %v271_v26 = vld [vmem:[%s1177_s7 + $0x18] sm:$0xff]  ;;  %v855_v28 = vcombine.low %v278_v16, %v282_v17 }
  0x3b   : > { %v274_v25 = vld [vmem:[%s1177_s7 + $0x30] sm:$0xff]  ;;  %v275_v27 = vld [vmem:[%s1177_s7 + $0x38] sm:$0xff]  ;;  %v857_v29 = vcombine.low %v279_v18, %v283_v19  ;;  %v1028_v18 = vmov 1966171168  }
  0x3c   : > { %v848_v30 = vcombine.high %v270_v24, %v274_v25  ;;  %v850_v31 = vcombine.high %v271_v26, %v275_v27  ;;  %v847_v33 = vcombine.low %v270_v24, %v274_v25  ;;  %v849_v34 = vcombine.low %v271_v26, %v275_v27 }
  0x3d   : > { %477 = vmatpush1.bf16.msra.mxu0 %v851_v59  ;;  %518 = vmatpush1.bf16.msra.mxu1 %v853_v60  ;;  %v689_v19 = vunpack.c.l.s4 %v1028_v18 }
  0x3e   : > { %478 = vmatprep.subr.bf16.mxu0 %v844_v61  ;;  %519 = vmatprep.subr.bf16.mxu1 %v846_v62 }
  0x3f   : > { %v690_v24 = vunpack.c.0.s8 %v689_v19 }
  0x41   : > { %479 = vmatpush1.bf16.msra.mxu0 %v843_v3  ;;  %520 = vmatpush1.bf16.msra.mxu1 %v845_v4 }
  0x42   : > { %554 = vmatprep.subr.bf16.mxu0 %v872_v5  ;;  %595 = vmatprep.subr.bf16.mxu1 %v874_v6 }
  0x44   : > { %875 = vmatmul.mubr.msk.bf16.vlgmr.msra.gmra.mxu0 %vm460_vm0, %v267_v11  ;;  %876 = vmatmul.mubr.msk.bf16.vlgmr.msra.gmra.mxu1 %vm460_vm0, %v267_v11 }
  0x45   : > { %555 = vmatpush1.bf16.msra.mxu0 %v871_v12  ;;  %596 = vmatpush1.bf16.msra.mxu1 %v873_v13 }
  0x46   : > { %556 = vmatprep.subr.bf16.mxu0 %v864_v14  ;;  %597 = vmatprep.subr.bf16.mxu1 %v866_v15 }
  0x47   : > { %578 = vmatprep.mubr.bf16.mxu0 %v1027_v32  ;;  %619 = vmatprep.mubr.bf16.mxu1 %v1027_v32 }
  0x49   : > { %557 = vmatpush1.bf16.msra.mxu0 %v863_v20  ;;  %598 = vmatpush1.bf16.msra.mxu1 %v865_v21  ;;  %v691_v20 = vlaneseq }
  0x4a   : > { %558 = vmatprep.subr.bf16.mxu0 %v856_v22  ;;  %599 = vmatprep.subr.bf16.mxu1 %v858_v23 }
  0x4b   : > { %v692_v25 = vshrl.u32 %v691_v20, 7 }
  0x4d   : > { %559 = vmatpush1.bf16.msra.mxu0 %v855_v28  ;;  %600 = vmatpush1.bf16.msra.mxu1 %v857_v29  ;;  %v693_v28 = vsub.s32 %v690_v24, %v692_v25 }
  0x4e   : > { %560 = vmatprep.subr.bf16.mxu0 %v848_v30  ;;  %601 = vmatprep.subr.bf16.mxu1 %v850_v31 }
  0x51   : > { %561 = vmatpush1.bf16.msra.mxu0 %v847_v33  ;;  %602 = vmatpush1.bf16.msra.mxu1 %v849_v34 }
  0x54   : > { %877 = vmatmul.mubr.msk.bf16.vlgmr.msra.gmra.mxu0 %vm460_vm0, %v267_v11  ;;  %878 = vmatmul.mubr.msk.bf16.vlgmr.msra.gmra.mxu1 %vm460_vm0, %v267_v11 }
 0x104   : > { %v498_v32 = vpop.f32.mrf.mxu0  ;;  %v539_v35 = vpop.f32.mrf.mxu1 }
 0x105   : > { %v628_v39 = vsub.f32 0.0, %v498_v32  ;;  %v630_v41 = vsub.f32 0.0, %v539_v35 }
 0x106   : > { %v500_v36 = vpop.f32.mrf.mxu0  ;;  %v541_v37 = vpop.f32.mrf.mxu1 }
 0x107   : > { %v629_v43 = vsub.f32 0.0, %v500_v36  ;;  %v631_v45 = vsub.f32 0.0, %v541_v37  ;;  %v636_v46 = vmul.f32 1.442695, %v628_v39  ;;  %v640_v47 = vmul.f32 1.442695, %v630_v41 }
 0x108   : > { %v502_v38 = vpop.f32.mrf.mxu0  ;;  %v543_v40 = vpop.f32.mrf.mxu1 }
 0x109   : > { %v638_v48 = vmul.f32 1.442695, %v629_v43  ;;  %v642_v49 = vmul.f32 1.442695, %v631_v45  ;;  %939 = vpow2.f32 %v636_v46 }
 0x10a   : > { %v503_v42 = vpop.f32.mrf.mxu0  ;;  %v544_v44 = vpop.f32.mrf.mxu1  ;;  %941 = vpow2.f32 %v640_v47 }
 0x10b   : > { %943 = vpow2.f32 %v638_v48 }
 0x10c   : > { %945 = vpow2.f32 %v642_v49 }
 0x114   : > { %v580_v50 = vpop.f32.mrf.mxu0  ;;  %v621_v52 = vpop.f32.mrf.mxu1 }
 0x115   : > { %v632_v51 = vsub.f32 0.0, %v580_v50  ;;  %v634_v53 = vsub.f32 0.0, %v621_v52 }
 0x116   : > { %v582_v54 = vpop.f32.mrf.mxu0  ;;  %v623_v56 = vpop.f32.mrf.mxu1 }
 0x117   : > { %v633_v55 = vsub.f32 0.0, %v582_v54  ;;  %v635_v57 = vsub.f32 0.0, %v623_v56  ;;  %v644_v59 = vmul.f32 1.442695, %v632_v51  ;;  %v648_v61 = vmul.f32 1.442695, %v634_v53  ;;  %v940_v2 = vpop.eup %939 }
 0x118   : > { %v584_v58 = vpop.f32.mrf.mxu0  ;;  %v625_v60 = vpop.f32.mrf.mxu1  ;;  %v652_v6 = vadd.f32 1.0, %v940_v2 }
 0x119   : > { %v646_v63 = vmul.f32 1.442695, %v633_v55  ;;  %v650_v1 = vmul.f32 1.442695, %v635_v57  ;;  %947 = vpow2.f32 %v644_v59  ;;  %v942_v3 = vpop.eup %941 }
 0x11a   : > { %v585_v62 = vpop.f32.mrf.mxu0  ;;  %v626_v0 = vpop.f32.mrf.mxu1  ;;  %949 = vpow2.f32 %v648_v61  ;;  %v654_v7 = vadd.f32 1.0, %v942_v3 }
 0x11b   : > { %951 = vpow2.f32 %v646_v63  ;;  %v944_v4 = vpop.eup %943 }
 0x11c   : > { %953 = vpow2.f32 %v650_v1  ;;  %v946_v5 = vpop.eup %945  ;;  %v653_v8 = vadd.f32 1.0, %v944_v4 }
 0x11d   : > { %v655_v9 = vadd.f32 1.0, %v946_v5  ;;  %955 = vrcp.f32 %v652_v6 }
 0x11e   : > { %957 = vrcp.f32 %v654_v7 }
 0x11f   : > { %959 = vrcp.f32 %v653_v8 }
 0x120   : > { %961 = vrcp.f32 %v655_v9 }
 0x126   : > { %v948_v10 = vpop.eup %947 }
 0x127   : > { %v950_v11 = vpop.eup %949  ;;  %v656_v12 = vadd.f32 1.0, %v948_v10 }
 0x128   : > { %v952_v13 = vpop.eup %951  ;;  %v658_v14 = vadd.f32 1.0, %v950_v11 }
 0x129   : > { %v954_v15 = vpop.eup %953  ;;  %963 = vrcp.f32 %v656_v12  ;;  %v657_v16 = vadd.f32 1.0, %v952_v13 }
 0x12a   : > { %965 = vrcp.f32 %v658_v14  ;;  %v659_v17 = vadd.f32 1.0, %v954_v15  ;;  %v956_v21 = vpop.eup %955 }
 0x12b   : > { %967 = vrcp.f32 %v657_v16  ;;  %v958_v22 = vpop.eup %957 }
 0x12c   : > { %969 = vrcp.f32 %v659_v17  ;;  %v960_v23 = vpop.eup %959 }
 0x12d   : > { %v962_v26 = vpop.eup %961  ;;  %v684_v27 = vcombine.low %v956_v21, %v960_v23 }
 0x12e   : > { %v685_v29 = vcombine.low %v958_v22, %v962_v26 }
 0x12f   : > { %v694_v34 = vrot.slane %v684_v27, %v693_v28 }
 0x130   : > { %v701_v32 = vrot.slane %v685_v29, %v693_v28 }
 0x132   : > { %v716_v39 = vcombine.low %v694_v34, %v701_v32 }
 0x134   : > { %v724_v42 = vrot.slane %v716_v39, %v693_v28 }
 0x136   : > { %v964_v30 = vpop.eup %963 }
 0x137   : > { %v966_v31 = vpop.eup %965 }
 0x138   : > { %v968_v33 = vpop.eup %967 }
 0x139   : > { %v970_v35 = vpop.eup %969  ;;  %v686_v36 = vcombine.low %v964_v30, %v968_v33 }
 0x13a   : > { %v687_v37 = vcombine.low %v966_v31, %v970_v35 }
 0x13b   : > { %v708_v38 = vrot.slane %v686_v36, %v693_v28 }
 0x13c   : > { %v715_v40 = vrot.slane %v687_v37, %v693_v28 }
 0x13e   : > { %v717_v41 = vcombine.low %v708_v38, %v715_v40 }
 0x140   : > { %v731_v43 = vrot.slane %v717_v41, %v693_v28 }
 0x142   : > { %v732_v44 = vcombine.low %v724_v42, %v731_v43 }
 0x144   : > { %734 = vst [vmem:[%s264_s24] sm:$0xff] %v732_v44 }
 0x145 PF: > { %s12_s15 = sadd.s32 1, %s1025_s15   ;;  %s1254_s9 = smov %s1005_s10 }
 0x146   : > { %p9_p12 = scmp.ge.s32.totalorder %s12_s15, 10   ;;  %s1255_s10 = smov %s1095_s22 }
 0x147   : > { %s1256_s11 = smov %s1017_s13  ;;  %s1257_s12 = smov %s1021_s14 }
 0x148   : > { %s1258_s13 = smov %s1261_s16  ;;  %s1259_s14 = smov %s1265_s17 }
 0x149   :  { %11 = sbr.rel (!%p9_p12) target bundleno = 4 (0x4), region = 89 }

</bundles_post_ra>
